<compile_context>
chip_gen: v7x
topology: tpu7x:2x2x1
jax: 0.10.0
libtpu: 0.0.40
codegen_flags: <defaults>
</compile_context>

<pallas_src>
import numpy as np
import jax
import jax.numpy as jnp
from jax import lax
from jax.experimental import pallas as pl
from jax.experimental.pallas import tpu as pltpu


# ----------------------------------------------------------------------------
# Fused UpsampleBlock forward
# ----------------------------------------------------------------------------
def upsample_block_forward(x, skip, t_emb, params, Ah, AwT):
    B, C, H, W = x.shape
    Ch = C // 2
    Ho, Wo = Ah.shape[0], AwT.shape[1]
    LB = Wo                  # lanes per channel block
    NL = C * LB              # packed lane width (128 at the reference sizes)
    Hb = Ho + 8              # row-padded height; rows Ho..Hb-1 stay zero (conv pad)

    assert Ho % 8 == 0 and (LB & (LB - 1)) == 0 and (C & (C - 1)) == 0
    assert NL <= 128 and Ch * 2 == C

    # --- tiny preprocessing kept in plain XLA (layout plumbing, not compute) ---
    te = jax.nn.relu(t_emb @ params["wt"].T + params["bt"])              # (B, C)
    te_pk = jnp.repeat(te, LB, axis=1)                                   # (B, NL)

    Ah_pad = jnp.concatenate([Ah, jnp.zeros((Hb - Ho, H), Ah.dtype)], 0)  # (Hb, H)

    x_stk = x.reshape(B, C * H, W)                                       # channel-major sublanes

    skip_pk = skip.transpose(0, 2, 1, 3).reshape(B, Ho, Ch * Wo)         # (B, Ho, Ch*Wo)
    skip_pk = jnp.pad(skip_pk, ((0, 0), (0, Hb - Ho), (Ch * Wo, 0)))     # (B, Hb, NL)

    def pack_w(w):
        # (Cout, Cin, 3, 3) -> (Cout*9, NL); row = co*9 + ky*3 + kx, lanes ci*LB..+LB-1
        co, ci = w.shape[0], w.shape[1]
        wp = w.transpose(0, 2, 3, 1).reshape(co, 9, ci)
        wp = jnp.repeat(wp, LB, axis=2)
        wp = jnp.pad(wp, ((0, 0), (0, 0), (0, NL - ci * LB)))
        return wp.reshape(co * 9, NL)

    w1p, w2p, w3p = (pack_w(params[k]) for k in ("w1", "w2", "w3"))

    def kernel(x_ref, skip_ref, te_ref, ahp_ref, awt_ref,
               w1_ref, w2_ref, w3_ref, b1_ref, b2_ref, b3_ref, o_ref):
        lane = lax.broadcasted_iota(jnp.int32, (Hb, NL), 1)
        row = lax.broadcasted_iota(jnp.int32, (Hb, NL), 0)
        xcol = lane & (LB - 1)                    # column inside a channel block
        mask_left = xcol != 0                     # valid lanes for the dx = -1 tap
        mask_right = xcol != (LB - 1)             # valid lanes for the dx = +1 tap
        interior = row < Ho
        half = lane < Ch * LB

        def conv3x3(src, w_ref):
            # src: (Hb, NL) channel-packed; zero outside interior rows / used blocks.
            acc = [jnp.zeros((Hb, NL), jnp.float32) for _ in range(Ch)]
            for ky in range(3):
                dy = ky - 1
                ay = src if dy == 0 else pltpu.roll(src, (-dy) % Hb, axis=0)
                for kx in range(3):
                    dx = kx - 1
                    if dx == 0:
                        t = ay
                    else:
                        t = pltpu.roll(ay, (-dx) % NL, axis=1)
                        t = jnp.where(mask_left if dx < 0 else mask_right, t, 0.0)
                    for co in range(Ch):
                        acc[co] = acc[co] + w_ref[co * 9 + ky * 3 + kx] * t
            outs = []
            for co in range(Ch):
                r = acc[co]                        # per-input-block partial sums
                span = NL // 2
                while span >= LB:                  # log2(C) roll+add channel reduction
                    r = r + pltpu.roll(r, NL - span, axis=1)
                    span //= 2
                outs.append(r)                     # lanes 0..LB-1 hold the conv result
            return outs

        def pack_blocks(vals):
            # Place vals[c] (valid at lanes 0..LB-1) into lane block c.
            out = vals[0]
            for c in range(1, len(vals)):
                out = jnp.where(lane < c * LB, out, pltpu.roll(vals[c], c * LB, axis=1))
            return out

        for b in range(B):                         # B is tiny; unrolled, single grid step
            # -- bilinear 2x upsample (align_corners=True) as two MXU matmuls --
            xw = jnp.dot(x_ref[b], awt_ref[...],
                         preferred_element_type=jnp.float32)             # (C*H, Wo)
            xw_pk = jnp.concatenate(
                [xw[c * H:(c + 1) * H, :] for c in range(C)], axis=1)    # (H, NL)
            buf1 = jnp.dot(ahp_ref[...], xw_pk,
                           preferred_element_type=jnp.float32)           # (Hb, NL), rows>=Ho zero

            # -- conv1 + ReLU, fused concat(skip) + time-emb add -> conv2 input --
            r1 = conv3x3(buf1, w1_ref)
            y = [jnp.maximum(r1[co] + b1_ref[co], 0.0) for co in range(Ch)]
            buf2 = jnp.where(half, pack_blocks(y), skip_ref[b])
            buf2 = jnp.where(interior, buf2 + te_ref[b], 0.0)

            # -- conv2 + ReLU -> conv3 input (upper lane blocks stay zero) --
            r2 = conv3x3(buf2, w2_ref)
            z = [jnp.maximum(r2[co] + b2_ref[co], 0.0) for co in range(Ch)]
            buf3 = jnp.where(jnp.logical_and(interior, half), pack_blocks(z), 0.0)

            # -- conv3 + ReLU -> lane-dense packed output slab --
            r3 = conv3x3(buf3, w3_ref)
            o = [jnp.maximum(r3[co] + b3_ref[co], 0.0) for co in range(Ch)]
            o_ref[b, :, :] = pack_blocks(o)[:Ho, :Ch * Wo]

    out_pk = pl.pallas_call(
        kernel,
        out_shape=jax.ShapeDtypeStruct((B, Ho, Ch * Wo), jnp.float32),
        in_specs=[
            pl.BlockSpec(memory_space=pltpu.MemorySpace.VMEM),   # x (B, C*H, W)
            pl.BlockSpec(memory_space=pltpu.MemorySpace.VMEM),   # skip packed (B, Hb, NL)
            pl.BlockSpec(memory_space=pltpu.MemorySpace.VMEM),   # time-emb packed (B, NL)
            pl.BlockSpec(memory_space=pltpu.MemorySpace.VMEM),   # Ah padded (Hb, H)
            pl.BlockSpec(memory_space=pltpu.MemorySpace.VMEM),   # AwT (W, Wo)
            pl.BlockSpec(memory_space=pltpu.MemorySpace.VMEM),   # w1 packed (Ch*9, NL)
            pl.BlockSpec(memory_space=pltpu.MemorySpace.VMEM),   # w2 packed
            pl.BlockSpec(memory_space=pltpu.MemorySpace.VMEM),   # w3 packed
            pl.BlockSpec(memory_space=pltpu.MemorySpace.SMEM),   # b1 (Ch,)
            pl.BlockSpec(memory_space=pltpu.MemorySpace.SMEM),   # b2
            pl.BlockSpec(memory_space=pltpu.MemorySpace.SMEM),   # b3
        ],
        out_specs=pl.BlockSpec(memory_space=pltpu.MemorySpace.VMEM),
    )(x_stk, skip_pk, te_pk, Ah_pad, AwT, w1p, w2p, w3p,
      params["b1"], params["b2"], params["b3"])

    # un-pack the lane-dense output slab back to NCHW (wrapper-side layout plumbing)
    return out_pk.reshape(B, Ho, Ch, Wo).transpose(0, 2, 1, 3)


# ----------------------------------------------------------------------------
# Interpolation matrix for align_corners=True bilinear resize
# ----------------------------------------------------------------------------
def bilinear_matrix(n_in, n_out):
    A = np.zeros((n_out, n_in), np.float32)
    if n_out == 1 or n_in == 1:
        A[:, 0] = 1.0
        return A
    scale = (n_in - 1) / (n_out - 1)
    for i in range(n_out):
        src = i * scale
        i0 = min(int(np.floor(src)), n_in - 1)
        frac = src - i0
        i1 = min(i0 + 1, n_in - 1)
        A[i, i0] += 1.0 - frac
        A[i, i1] += frac
    return A


# ----------------------------------------------------------------------------
# Pure-JAX reference (same semantics as the PyTorch module)
# ----------------------------------------------------------------------------
def reference_forward(x, skip, t_emb, params, Ah, AwT):
    te = jax.nn.relu(t_emb @ params["wt"].T + params["bt"])
    xu = jnp.einsum("ph,bchw,wq->bcpq", Ah, x, AwT)

    def conv(v, w, b):
        y = lax.conv_general_dilated(
            v, w, (1, 1), "SAME", dimension_numbers=("NCHW", "OIHW", "NCHW"))
        return y + b[None, :, None, None]

    x1 = jax.nn.relu(conv(xu, params["w1"], params["b1"]))
    xc = jnp.concatenate([x1, skip], axis=1) + te[:, :, None, None]
    x2 = jax.nn.relu(conv(xc, params["w2"], params["b2"]))
    x3 = jax.nn.relu(conv(x2, params["w3"], params["b3"]))
    return x3


if __name__ == "__main__":
    B, C, T, H, W = 2, 4, 8, 16, 16
    Ch = C // 2

    key = jax.random.PRNGKey(0)
    ks = jax.random.split(key, 12)
    params = {
        "wt": jax.random.normal(ks[0], (C, T), jnp.float32) * 0.1,   # Linear (out, in)
        "bt": jax.random.normal(ks[1], (C,), jnp.float32) * 0.1,
        "w1": jax.random.normal(ks[2], (Ch, C, 3, 3), jnp.float32) * 0.1,
        "b1": jax.random.normal(ks[3], (Ch,), jnp.float32) * 0.1,
        "w2": jax.random.normal(ks[4], (Ch, C, 3, 3), jnp.float32) * 0.1,
        "b2": jax.random.normal(ks[5], (Ch,), jnp.float32) * 0.1,
        "w3": jax.random.normal(ks[6], (Ch, Ch, 3, 3), jnp.float32) * 0.1,
        "b3": jax.random.normal(ks[7], (Ch,), jnp.float32) * 0.1,
    }

    x = jax.random.normal(ks[8], (B, C, H, W), jnp.float32)
    skip = jax.random.normal(ks[9], (B, Ch, 2 * H, 2 * W), jnp.float32)
    t_emb = jax.random.normal(ks[10], (B, T), jnp.float32)

    Ah = jnp.asarray(bilinear_matrix(H, 2 * H))        # (2H, H)
    AwT = jnp.asarray(bilinear_matrix(W, 2 * W)).T     # (W, 2W)

    fwd = jax.jit(upsample_block_forward)
    out = jax.block_until_ready(fwd(x, skip, t_emb, params, Ah, AwT))

    ref = jax.block_until_ready(reference_forward(x, skip, t_emb, params, Ah, AwT))
    assert out.shape == (B, Ch, 2 * H, 2 * W)
    assert np.allclose(np.asarray(out), np.asarray(ref), atol=1e-4), "mismatch vs reference"

    print("KERNEL_OK")
</pallas_src>

<mosaic_0001>
module attributes {stable_mosaic.version = 11 : i64} {
  func.func @kernel(%arg0: memref<2x64x16xf32, #tpu.memory_space<vmem>>, %arg1: memref<2x40x128xf32, #tpu.memory_space<vmem>>, %arg2: memref<2x128xf32, #tpu.memory_space<vmem>>, %arg3: memref<40x16xf32, #tpu.memory_space<vmem>>, %arg4: memref<16x32xf32, #tpu.memory_space<vmem>>, %arg5: memref<18x128xf32, #tpu.memory_space<vmem>>, %arg6: memref<18x128xf32, #tpu.memory_space<vmem>>, %arg7: memref<18x128xf32, #tpu.memory_space<vmem>>, %arg8: memref<2xf32, #tpu.memory_space<smem>>, %arg9: memref<2xf32, #tpu.memory_space<smem>>, %arg10: memref<2xf32, #tpu.memory_space<smem>>, %arg11: memref<2x32x64xf32, #tpu.memory_space<vmem>>) attributes {dimension_semantics = [], scalar_prefetch = 0 : i64, scratch_operands = 0 : i64, tpu.core_type = #tpu.core_type<tc>} {
    %0 = tpu.iota {dimensions = array<i32: 1>} : vector<40x128xi32>
    %1 = tpu.iota {dimensions = array<i32: 0>} : vector<40x128xi32>
    %c31_i32 = arith.constant 31 : i32
    %2 = vector.broadcast %c31_i32 : i32 to vector<40x128xi32>
    %3 = arith.andi %0, %2 : vector<40x128xi32>
    %c0_i32 = arith.constant 0 : i32
    %4 = vector.broadcast %c0_i32 : i32 to vector<40x128xi32>
    %5 = arith.cmpi ne, %3, %4 : vector<40x128xi32>
    %c31_i32_0 = arith.constant 31 : i32
    %6 = vector.broadcast %c31_i32_0 : i32 to vector<40x128xi32>
    %7 = arith.cmpi ne, %3, %6 : vector<40x128xi32>
    %c32_i32 = arith.constant 32 : i32
    %8 = vector.broadcast %c32_i32 : i32 to vector<40x128xi32>
    %9 = arith.cmpi slt, %1, %8 : vector<40x128xi32>
    %c64_i32 = arith.constant 64 : i32
    %10 = vector.broadcast %c64_i32 : i32 to vector<40x128xi32>
    %11 = arith.cmpi slt, %0, %10 : vector<40x128xi32>
    %c0 = arith.constant 0 : index
    %c0_1 = arith.constant 0 : index
    %c0_2 = arith.constant 0 : index
    %12 = vector.load %arg0[%c0, %c0_1, %c0_2] : memref<2x64x16xf32, #tpu.memory_space<vmem>>, vector<1x64x16xf32>
    %13 = vector.shape_cast %12 : vector<1x64x16xf32> to vector<64x16xf32>
    %c0_3 = arith.constant 0 : index
    %c0_4 = arith.constant 0 : index
    %14 = vector.load %arg4[%c0_3, %c0_4] : memref<16x32xf32, #tpu.memory_space<vmem>>, vector<16x32xf32>
    %cst = arith.constant dense<0.000000e+00> : vector<64x32xf32>
    %15 = tpu.matmul %13, %14, %cst {dimension_numbers = #tpu.dot_dimension_numbers<[1], [0], [0], [1], [0, 0, 1, 1], [], []>} : vector<64x16xf32>, vector<16x32xf32>, vector<64x32xf32> -> vector<64x32xf32>
    %16 = vector.extract_strided_slice %15 {offsets = [0, 0], sizes = [16, 32], strides = [1, 1]} : vector<64x32xf32> to vector<16x32xf32>
    %17 = vector.extract_strided_slice %15 {offsets = [16, 0], sizes = [16, 32], strides = [1, 1]} : vector<64x32xf32> to vector<16x32xf32>
    %18 = vector.extract_strided_slice %15 {offsets = [32, 0], sizes = [16, 32], strides = [1, 1]} : vector<64x32xf32> to vector<16x32xf32>
    %19 = vector.extract_strided_slice %15 {offsets = [48, 0], sizes = [16, 32], strides = [1, 1]} : vector<64x32xf32> to vector<16x32xf32>
    %20 = tpu.concatenate %16, %17, %18, %19 in 1 : vector<16x32xf32>, vector<16x32xf32>, vector<16x32xf32>, vector<16x32xf32> -> vector<16x128xf32>
    %c0_5 = arith.constant 0 : index
    %c0_6 = arith.constant 0 : index
    %21 = vector.load %arg3[%c0_5, %c0_6] : memref<40x16xf32, #tpu.memory_space<vmem>>, vector<40x16xf32>
    %cst_7 = arith.constant dense<0.000000e+00> : vector<40x128xf32>
    %22 = tpu.matmul %21, %20, %cst_7 {dimension_numbers = #tpu.dot_dimension_numbers<[1], [0], [0], [1], [0, 0, 1, 1], [], []>} : vector<40x16xf32>, vector<16x128xf32>, vector<40x128xf32> -> vector<40x128xf32>
    %cst_8 = arith.constant 0.000000e+00 : f32
    %23 = vector.broadcast %cst_8 : f32 to vector<40x128xf32>
    %cst_9 = arith.constant 0.000000e+00 : f32
    %24 = vector.broadcast %cst_9 : f32 to vector<40x128xf32>
    %c1_i32 = arith.constant 1 : i32
    %25 = tpu.dynamic_rotate %22 by %c1_i32 dim 0 : vector<40x128xf32>, i32 -> vector<40x128xf32>
    %c1_i32_10 = arith.constant 1 : i32
    %26 = tpu.dynamic_rotate %25 by %c1_i32_10 dim 1 : vector<40x128xf32>, i32 -> vector<40x128xf32>
    %cst_11 = arith.constant 0.000000e+00 : f32
    %27 = vector.broadcast %cst_11 : f32 to vector<40x128xf32>
    %28 = arith.select %5, %26, %27 : vector<40x128xi1>, vector<40x128xf32>
    %c0_12 = arith.constant 0 : index
    %c0_13 = arith.constant 0 : index
    %29 = vector.load %arg5[%c0_12, %c0_13] : memref<18x128xf32, #tpu.memory_space<vmem>>, vector<1x128xf32>
    %30 = vector.shape_cast %29 : vector<1x128xf32> to vector<128xf32>
    %31 = vector.shape_cast %30 : vector<128xf32> to vector<1x128xf32>
    %32 = vector.broadcast %31 : vector<1x128xf32> to vector<40x128xf32>
    %33 = arith.mulf %32, %28 : vector<40x128xf32>
    %34 = arith.addf %23, %33 : vector<40x128xf32>
    %c9 = arith.constant 9 : index
    %c0_14 = arith.constant 0 : index
    %35 = vector.load %arg5[%c9, %c0_14] : memref<18x128xf32, #tpu.memory_space<vmem>>, vector<1x128xf32>
    %36 = vector.shape_cast %35 : vector<1x128xf32> to vector<128xf32>
    %37 = vector.shape_cast %36 : vector<128xf32> to vector<1x128xf32>
    %38 = vector.broadcast %37 : vector<1x128xf32> to vector<40x128xf32>
    %39 = arith.mulf %38, %28 : vector<40x128xf32>
    %40 = arith.addf %24, %39 : vector<40x128xf32>
    %c1 = arith.constant 1 : index
    %c0_15 = arith.constant 0 : index
    %41 = vector.load %arg5[%c1, %c0_15] : memref<18x128xf32, #tpu.memory_space<vmem>>, vector<1x128xf32>
    %42 = vector.shape_cast %41 : vector<1x128xf32> to vector<128xf32>
    %43 = vector.shape_cast %42 : vector<128xf32> to vector<1x128xf32>
    %44 = vector.broadcast %43 : vector<1x128xf32> to vector<40x128xf32>
    %45 = arith.mulf %44, %25 : vector<40x128xf32>
    %46 = arith.addf %34, %45 : vector<40x128xf32>
    %c10 = arith.constant 10 : index
    %c0_16 = arith.constant 0 : index
    %47 = vector.load %arg5[%c10, %c0_16] : memref<18x128xf32, #tpu.memory_space<vmem>>, vector<1x128xf32>
    %48 = vector.shape_cast %47 : vector<1x128xf32> to vector<128xf32>
    %49 = vector.shape_cast %48 : vector<128xf32> to vector<1x128xf32>
    %50 = vector.broadcast %49 : vector<1x128xf32> to vector<40x128xf32>
    %51 = arith.mulf %50, %25 : vector<40x128xf32>
    %52 = arith.addf %40, %51 : vector<40x128xf32>
    %c127_i32 = arith.constant 127 : i32
    %53 = tpu.dynamic_rotate %25 by %c127_i32 dim 1 : vector<40x128xf32>, i32 -> vector<40x128xf32>
    %cst_17 = arith.constant 0.000000e+00 : f32
    %54 = vector.broadcast %cst_17 : f32 to vector<40x128xf32>
    %55 = arith.select %7, %53, %54 : vector<40x128xi1>, vector<40x128xf32>
    %c2 = arith.constant 2 : index
    %c0_18 = arith.constant 0 : index
    %56 = vector.load %arg5[%c2, %c0_18] : memref<18x128xf32, #tpu.memory_space<vmem>>, vector<1x128xf32>
    %57 = vector.shape_cast %56 : vector<1x128xf32> to vector<128xf32>
    %58 = vector.shape_cast %57 : vector<128xf32> to vector<1x128xf32>
    %59 = vector.broadcast %58 : vector<1x128xf32> to vector<40x128xf32>
    %60 = arith.mulf %59, %55 : vector<40x128xf32>
    %61 = arith.addf %46, %60 : vector<40x128xf32>
    %c11 = arith.constant 11 : index
    %c0_19 = arith.constant 0 : index
    %62 = vector.load %arg5[%c11, %c0_19] : memref<18x128xf32, #tpu.memory_space<vmem>>, vector<1x128xf32>
    %63 = vector.shape_cast %62 : vector<1x128xf32> to vector<128xf32>
    %64 = vector.shape_cast %63 : vector<128xf32> to vector<1x128xf32>
    %65 = vector.broadcast %64 : vector<1x128xf32> to vector<40x128xf32>
    %66 = arith.mulf %65, %55 : vector<40x128xf32>
    %67 = arith.addf %52, %66 : vector<40x128xf32>
    %c1_i32_20 = arith.constant 1 : i32
    %68 = tpu.dynamic_rotate %22 by %c1_i32_20 dim 1 : vector<40x128xf32>, i32 -> vector<40x128xf32>
    %cst_21 = arith.constant 0.000000e+00 : f32
    %69 = vector.broadcast %cst_21 : f32 to vector<40x128xf32>
    %70 = arith.select %5, %68, %69 : vector<40x128xi1>, vector<40x128xf32>
    %c3 = arith.constant 3 : index
    %c0_22 = arith.constant 0 : index
    %71 = vector.load %arg5[%c3, %c0_22] : memref<18x128xf32, #tpu.memory_space<vmem>>, vector<1x128xf32>
    %72 = vector.shape_cast %71 : vector<1x128xf32> to vector<128xf32>
    %73 = vector.shape_cast %72 : vector<128xf32> to vector<1x128xf32>
    %74 = vector.broadcast %73 : vector<1x128xf32> to vector<40x128xf32>
    %75 = arith.mulf %74, %70 : vector<40x128xf32>
    %76 = arith.addf %61, %75 : vector<40x128xf32>
    %c12 = arith.constant 12 : index
    %c0_23 = arith.constant 0 : index
    %77 = vector.load %arg5[%c12, %c0_23] : memref<18x128xf32, #tpu.memory_space<vmem>>, vector<1x128xf32>
    %78 = vector.shape_cast %77 : vector<1x128xf32> to vector<128xf32>
    %79 = vector.shape_cast %78 : vector<128xf32> to vector<1x128xf32>
    %80 = vector.broadcast %79 : vector<1x128xf32> to vector<40x128xf32>
    %81 = arith.mulf %80, %70 : vector<40x128xf32>
    %82 = arith.addf %67, %81 : vector<40x128xf32>
    %c4 = arith.constant 4 : index
    %c0_24 = arith.constant 0 : index
    %83 = vector.load %arg5[%c4, %c0_24] : memref<18x128xf32, #tpu.memory_space<vmem>>, vector<1x128xf32>
    %84 = vector.shape_cast %83 : vector<1x128xf32> to vector<128xf32>
    %85 = vector.shape_cast %84 : vector<128xf32> to vector<1x128xf32>
    %86 = vector.broadcast %85 : vector<1x128xf32> to vector<40x128xf32>
    %87 = arith.mulf %86, %22 : vector<40x128xf32>
    %88 = arith.addf %76, %87 : vector<40x128xf32>
    %c13 = arith.constant 13 : index
    %c0_25 = arith.constant 0 : index
    %89 = vector.load %arg5[%c13, %c0_25] : memref<18x128xf32, #tpu.memory_space<vmem>>, vector<1x128xf32>
    %90 = vector.shape_cast %89 : vector<1x128xf32> to vector<128xf32>
    %91 = vector.shape_cast %90 : vector<128xf32> to vector<1x128xf32>
    %92 = vector.broadcast %91 : vector<1x128xf32> to vector<40x128xf32>
    %93 = arith.mulf %92, %22 : vector<40x128xf32>
    %94 = arith.addf %82, %93 : vector<40x128xf32>
    %c127_i32_26 = arith.constant 127 : i32
    %95 = tpu.dynamic_rotate %22 by %c127_i32_26 dim 1 : vector<40x128xf32>, i32 -> vector<40x128xf32>
    %cst_27 = arith.constant 0.000000e+00 : f32
    %96 = vector.broadcast %cst_27 : f32 to vector<40x128xf32>
    %97 = arith.select %7, %95, %96 : vector<40x128xi1>, vector<40x128xf32>
    %c5 = arith.constant 5 : index
    %c0_28 = arith.constant 0 : index
    %98 = vector.load %arg5[%c5, %c0_28] : memref<18x128xf32, #tpu.memory_space<vmem>>, vector<1x128xf32>
    %99 = vector.shape_cast %98 : vector<1x128xf32> to vector<128xf32>
    %100 = vector.shape_cast %99 : vector<128xf32> to vector<1x128xf32>
    %101 = vector.broadcast %100 : vector<1x128xf32> to vector<40x128xf32>
    %102 = arith.mulf %101, %97 : vector<40x128xf32>
    %103 = arith.addf %88, %102 : vector<40x128xf32>
    %c14 = arith.constant 14 : index
    %c0_29 = arith.constant 0 : index
    %104 = vector.load %arg5[%c14, %c0_29] : memref<18x128xf32, #tpu.memory_space<vmem>>, vector<1x128xf32>
    %105 = vector.shape_cast %104 : vector<1x128xf32> to vector<128xf32>
    %106 = vector.shape_cast %105 : vector<128xf32> to vector<1x128xf32>
    %107 = vector.broadcast %106 : vector<1x128xf32> to vector<40x128xf32>
    %108 = arith.mulf %107, %97 : vector<40x128xf32>
    %109 = arith.addf %94, %108 : vector<40x128xf32>
    %c39_i32 = arith.constant 39 : i32
    %110 = tpu.dynamic_rotate %22 by %c39_i32 dim 0 : vector<40x128xf32>, i32 -> vector<40x128xf32>
    %c1_i32_30 = arith.constant 1 : i32
    %111 = tpu.dynamic_rotate %110 by %c1_i32_30 dim 1 : vector<40x128xf32>, i32 -> vector<40x128xf32>
    %cst_31 = arith.constant 0.000000e+00 : f32
    %112 = vector.broadcast %cst_31 : f32 to vector<40x128xf32>
    %113 = arith.select %5, %111, %112 : vector<40x128xi1>, vector<40x128xf32>
    %c6 = arith.constant 6 : index
    %c0_32 = arith.constant 0 : index
    %114 = vector.load %arg5[%c6, %c0_32] : memref<18x128xf32, #tpu.memory_space<vmem>>, vector<1x128xf32>
    %115 = vector.shape_cast %114 : vector<1x128xf32> to vector<128xf32>
    %116 = vector.shape_cast %115 : vector<128xf32> to vector<1x128xf32>
    %117 = vector.broadcast %116 : vector<1x128xf32> to vector<40x128xf32>
    %118 = arith.mulf %117, %113 : vector<40x128xf32>
    %119 = arith.addf %103, %118 : vector<40x128xf32>
    %c15 = arith.constant 15 : index
    %c0_33 = arith.constant 0 : index
    %120 = vector.load %arg5[%c15, %c0_33] : memref<18x128xf32, #tpu.memory_space<vmem>>, vector<1x128xf32>
    %121 = vector.shape_cast %120 : vector<1x128xf32> to vector<128xf32>
    %122 = vector.shape_cast %121 : vector<128xf32> to vector<1x128xf32>
    %123 = vector.broadcast %122 : vector<1x128xf32> to vector<40x128xf32>
    %124 = arith.mulf %123, %113 : vector<40x128xf32>
    %125 = arith.addf %109, %124 : vector<40x128xf32>
    %c7 = arith.constant 7 : index
    %c0_34 = arith.constant 0 : index
    %126 = vector.load %arg5[%c7, %c0_34] : memref<18x128xf32, #tpu.memory_space<vmem>>, vector<1x128xf32>
    %127 = vector.shape_cast %126 : vector<1x128xf32> to vector<128xf32>
    %128 = vector.shape_cast %127 : vector<128xf32> to vector<1x128xf32>
    %129 = vector.broadcast %128 : vector<1x128xf32> to vector<40x128xf32>
    %130 = arith.mulf %129, %110 : vector<40x128xf32>
    %131 = arith.addf %119, %130 : vector<40x128xf32>
    %c16 = arith.constant 16 : index
    %c0_35 = arith.constant 0 : index
    %132 = vector.load %arg5[%c16, %c0_35] : memref<18x128xf32, #tpu.memory_space<vmem>>, vector<1x128xf32>
    %133 = vector.shape_cast %132 : vector<1x128xf32> to vector<128xf32>
    %134 = vector.shape_cast %133 : vector<128xf32> to vector<1x128xf32>
    %135 = vector.broadcast %134 : vector<1x128xf32> to vector<40x128xf32>
    %136 = arith.mulf %135, %110 : vector<40x128xf32>
    %137 = arith.addf %125, %136 : vector<40x128xf32>
    %c127_i32_36 = arith.constant 127 : i32
    %138 = tpu.dynamic_rotate %110 by %c127_i32_36 dim 1 : vector<40x128xf32>, i32 -> vector<40x128xf32>
    %cst_37 = arith.constant 0.000000e+00 : f32
    %139 = vector.broadcast %cst_37 : f32 to vector<40x128xf32>
    %140 = arith.select %7, %138, %139 : vector<40x128xi1>, vector<40x128xf32>
    %c8 = arith.constant 8 : index
    %c0_38 = arith.constant 0 : index
    %141 = vector.load %arg5[%c8, %c0_38] : memref<18x128xf32, #tpu.memory_space<vmem>>, vector<1x128xf32>
    %142 = vector.shape_cast %141 : vector<1x128xf32> to vector<128xf32>
    %143 = vector.shape_cast %142 : vector<128xf32> to vector<1x128xf32>
    %144 = vector.broadcast %143 : vector<1x128xf32> to vector<40x128xf32>
    %145 = arith.mulf %144, %140 : vector<40x128xf32>
    %146 = arith.addf %131, %145 : vector<40x128xf32>
    %c17 = arith.constant 17 : index
    %c0_39 = arith.constant 0 : index
    %147 = vector.load %arg5[%c17, %c0_39] : memref<18x128xf32, #tpu.memory_space<vmem>>, vector<1x128xf32>
    %148 = vector.shape_cast %147 : vector<1x128xf32> to vector<128xf32>
    %149 = vector.shape_cast %148 : vector<128xf32> to vector<1x128xf32>
    %150 = vector.broadcast %149 : vector<1x128xf32> to vector<40x128xf32>
    %151 = arith.mulf %150, %140 : vector<40x128xf32>
    %152 = arith.addf %137, %151 : vector<40x128xf32>
    %c64_i32_40 = arith.constant 64 : i32
    %153 = tpu.dynamic_rotate %146 by %c64_i32_40 dim 1 : vector<40x128xf32>, i32 -> vector<40x128xf32>
    %154 = arith.addf %146, %153 : vector<40x128xf32>
    %c96_i32 = arith.constant 96 : i32
    %155 = tpu.dynamic_rotate %154 by %c96_i32 dim 1 : vector<40x128xf32>, i32 -> vector<40x128xf32>
    %156 = arith.addf %154, %155 : vector<40x128xf32>
    %c64_i32_41 = arith.constant 64 : i32
    %157 = tpu.dynamic_rotate %152 by %c64_i32_41 dim 1 : vector<40x128xf32>, i32 -> vector<40x128xf32>
    %158 = arith.addf %152, %157 : vector<40x128xf32>
    %c96_i32_42 = arith.constant 96 : i32
    %159 = tpu.dynamic_rotate %158 by %c96_i32_42 dim 1 : vector<40x128xf32>, i32 -> vector<40x128xf32>
    %160 = arith.addf %158, %159 : vector<40x128xf32>
    %c0_43 = arith.constant 0 : index
    %161 = memref.load %arg8[%c0_43] : memref<2xf32, #tpu.memory_space<smem>>
    %162 = vector.broadcast %161 : f32 to vector<40x128xf32>
    %163 = arith.addf %156, %162 : vector<40x128xf32>
    %cst_44 = arith.constant 0.000000e+00 : f32
    %164 = vector.broadcast %cst_44 : f32 to vector<40x128xf32>
    %165 = arith.maximumf %163, %164 : vector<40x128xf32>
    %c1_45 = arith.constant 1 : index
    %166 = memref.load %arg8[%c1_45] : memref<2xf32, #tpu.memory_space<smem>>
    %167 = vector.broadcast %166 : f32 to vector<40x128xf32>
    %168 = arith.addf %160, %167 : vector<40x128xf32>
    %cst_46 = arith.constant 0.000000e+00 : f32
    %169 = vector.broadcast %cst_46 : f32 to vector<40x128xf32>
    %170 = arith.maximumf %168, %169 : vector<40x128xf32>
    %c32_i32_47 = arith.constant 32 : i32
    %171 = vector.broadcast %c32_i32_47 : i32 to vector<40x128xi32>
    %172 = arith.cmpi slt, %0, %171 : vector<40x128xi32>
    %c32_i32_48 = arith.constant 32 : i32
    %173 = tpu.dynamic_rotate %170 by %c32_i32_48 dim 1 : vector<40x128xf32>, i32 -> vector<40x128xf32>
    %174 = arith.select %172, %165, %173 : vector<40x128xi1>, vector<40x128xf32>
    %c0_49 = arith.constant 0 : index
    %c0_50 = arith.constant 0 : index
    %c0_51 = arith.constant 0 : index
    %175 = vector.load %arg1[%c0_49, %c0_50, %c0_51] : memref<2x40x128xf32, #tpu.memory_space<vmem>>, vector<1x40x128xf32>
    %176 = vector.shape_cast %175 : vector<1x40x128xf32> to vector<40x128xf32>
    %177 = arith.select %11, %174, %176 : vector<40x128xi1>, vector<40x128xf32>
    %c0_52 = arith.constant 0 : index
    %c0_53 = arith.constant 0 : index
    %178 = vector.load %arg2[%c0_52, %c0_53] : memref<2x128xf32, #tpu.memory_space<vmem>>, vector<1x128xf32>
    %179 = vector.shape_cast %178 : vector<1x128xf32> to vector<128xf32>
    %180 = vector.shape_cast %179 : vector<128xf32> to vector<1x128xf32>
    %181 = vector.broadcast %180 : vector<1x128xf32> to vector<40x128xf32>
    %182 = arith.addf %177, %181 : vector<40x128xf32>
    %cst_54 = arith.constant 0.000000e+00 : f32
    %183 = vector.broadcast %cst_54 : f32 to vector<40x128xf32>
    %184 = arith.select %9, %182, %183 : vector<40x128xi1>, vector<40x128xf32>
    %cst_55 = arith.constant 0.000000e+00 : f32
    %185 = vector.broadcast %cst_55 : f32 to vector<40x128xf32>
    %cst_56 = arith.constant 0.000000e+00 : f32
    %186 = vector.broadcast %cst_56 : f32 to vector<40x128xf32>
    %c1_i32_57 = arith.constant 1 : i32
    %187 = tpu.dynamic_rotate %184 by %c1_i32_57 dim 0 : vector<40x128xf32>, i32 -> vector<40x128xf32>
    %c1_i32_58 = arith.constant 1 : i32
    %188 = tpu.dynamic_rotate %187 by %c1_i32_58 dim 1 : vector<40x128xf32>, i32 -> vector<40x128xf32>
    %cst_59 = arith.constant 0.000000e+00 : f32
    %189 = vector.broadcast %cst_59 : f32 to vector<40x128xf32>
    %190 = arith.select %5, %188, %189 : vector<40x128xi1>, vector<40x128xf32>
    %c0_60 = arith.constant 0 : index
    %c0_61 = arith.constant 0 : index
    %191 = vector.load %arg6[%c0_60, %c0_61] : memref<18x128xf32, #tpu.memory_space<vmem>>, vector<1x128xf32>
    %192 = vector.shape_cast %191 : vector<1x128xf32> to vector<128xf32>
    %193 = vector.shape_cast %192 : vector<128xf32> to vector<1x128xf32>
    %194 = vector.broadcast %193 : vector<1x128xf32> to vector<40x128xf32>
    %195 = arith.mulf %194, %190 : vector<40x128xf32>
    %196 = arith.addf %185, %195 : vector<40x128xf32>
    %c9_62 = arith.constant 9 : index
    %c0_63 = arith.constant 0 : index
    %197 = vector.load %arg6[%c9_62, %c0_63] : memref<18x128xf32, #tpu.memory_space<vmem>>, vector<1x128xf32>
    %198 = vector.shape_cast %197 : vector<1x128xf32> to vector<128xf32>
    %199 = vector.shape_cast %198 : vector<128xf32> to vector<1x128xf32>
    %200 = vector.broadcast %199 : vector<1x128xf32> to vector<40x128xf32>
    %201 = arith.mulf %200, %190 : vector<40x128xf32>
    %202 = arith.addf %186, %201 : vector<40x128xf32>
    %c1_64 = arith.constant 1 : index
    %c0_65 = arith.constant 0 : index
    %203 = vector.load %arg6[%c1_64, %c0_65] : memref<18x128xf32, #tpu.memory_space<vmem>>, vector<1x128xf32>
    %204 = vector.shape_cast %203 : vector<1x128xf32> to vector<128xf32>
    %205 = vector.shape_cast %204 : vector<128xf32> to vector<1x128xf32>
    %206 = vector.broadcast %205 : vector<1x128xf32> to vector<40x128xf32>
    %207 = arith.mulf %206, %187 : vector<40x128xf32>
    %208 = arith.addf %196, %207 : vector<40x128xf32>
    %c10_66 = arith.constant 10 : index
    %c0_67 = arith.constant 0 : index
    %209 = vector.load %arg6[%c10_66, %c0_67] : memref<18x128xf32, #tpu.memory_space<vmem>>, vector<1x128xf32>
    %210 = vector.shape_cast %209 : vector<1x128xf32> to vector<128xf32>
    %211 = vector.shape_cast %210 : vector<128xf32> to vector<1x128xf32>
    %212 = vector.broadcast %211 : vector<1x128xf32> to vector<40x128xf32>
    %213 = arith.mulf %212, %187 : vector<40x128xf32>
    %214 = arith.addf %202, %213 : vector<40x128xf32>
    %c127_i32_68 = arith.constant 127 : i32
    %215 = tpu.dynamic_rotate %187 by %c127_i32_68 dim 1 : vector<40x128xf32>, i32 -> vector<40x128xf32>
    %cst_69 = arith.constant 0.000000e+00 : f32
    %216 = vector.broadcast %cst_69 : f32 to vector<40x128xf32>
    %217 = arith.select %7, %215, %216 : vector<40x128xi1>, vector<40x128xf32>
    %c2_70 = arith.constant 2 : index
    %c0_71 = arith.constant 0 : index
    %218 = vector.load %arg6[%c2_70, %c0_71] : memref<18x128xf32, #tpu.memory_space<vmem>>, vector<1x128xf32>
    %219 = vector.shape_cast %218 : vector<1x128xf32> to vector<128xf32>
    %220 = vector.shape_cast %219 : vector<128xf32> to vector<1x128xf32>
    %221 = vector.broadcast %220 : vector<1x128xf32> to vector<40x128xf32>
    %222 = arith.mulf %221, %217 : vector<40x128xf32>
    %223 = arith.addf %208, %222 : vector<40x128xf32>
    %c11_72 = arith.constant 11 : index
    %c0_73 = arith.constant 0 : index
    %224 = vector.load %arg6[%c11_72, %c0_73] : memref<18x128xf32, #tpu.memory_space<vmem>>, vector<1x128xf32>
    %225 = vector.shape_cast %224 : vector<1x128xf32> to vector<128xf32>
    %226 = vector.shape_cast %225 : vector<128xf32> to vector<1x128xf32>
    %227 = vector.broadcast %226 : vector<1x128xf32> to vector<40x128xf32>
    %228 = arith.mulf %227, %217 : vector<40x128xf32>
    %229 = arith.addf %214, %228 : vector<40x128xf32>
    %c1_i32_74 = arith.constant 1 : i32
    %230 = tpu.dynamic_rotate %184 by %c1_i32_74 dim 1 : vector<40x128xf32>, i32 -> vector<40x128xf32>
    %cst_75 = arith.constant 0.000000e+00 : f32
    %231 = vector.broadcast %cst_75 : f32 to vector<40x128xf32>
    %232 = arith.select %5, %230, %231 : vector<40x128xi1>, vector<40x128xf32>
    %c3_76 = arith.constant 3 : index
    %c0_77 = arith.constant 0 : index
    %233 = vector.load %arg6[%c3_76, %c0_77] : memref<18x128xf32, #tpu.memory_space<vmem>>, vector<1x128xf32>
    %234 = vector.shape_cast %233 : vector<1x128xf32> to vector<128xf32>
    %235 = vector.shape_cast %234 : vector<128xf32> to vector<1x128xf32>
    %236 = vector.broadcast %235 : vector<1x128xf32> to vector<40x128xf32>
    %237 = arith.mulf %236, %232 : vector<40x128xf32>
    %238 = arith.addf %223, %237 : vector<40x128xf32>
    %c12_78 = arith.constant 12 : index
    %c0_79 = arith.constant 0 : index
    %239 = vector.load %arg6[%c12_78, %c0_79] : memref<18x128xf32, #tpu.memory_space<vmem>>, vector<1x128xf32>
    %240 = vector.shape_cast %239 : vector<1x128xf32> to vector<128xf32>
    %241 = vector.shape_cast %240 : vector<128xf32> to vector<1x128xf32>
    %242 = vector.broadcast %241 : vector<1x128xf32> to vector<40x128xf32>
    %243 = arith.mulf %242, %232 : vector<40x128xf32>
    %244 = arith.addf %229, %243 : vector<40x128xf32>
    %c4_80 = arith.constant 4 : index
    %c0_81 = arith.constant 0 : index
    %245 = vector.load %arg6[%c4_80, %c0_81] : memref<18x128xf32, #tpu.memory_space<vmem>>, vector<1x128xf32>
    %246 = vector.shape_cast %245 : vector<1x128xf32> to vector<128xf32>
    %247 = vector.shape_cast %246 : vector<128xf32> to vector<1x128xf32>
    %248 = vector.broadcast %247 : vector<1x128xf32> to vector<40x128xf32>
    %249 = arith.mulf %248, %184 : vector<40x128xf32>
    %250 = arith.addf %238, %249 : vector<40x128xf32>
    %c13_82 = arith.constant 13 : index
    %c0_83 = arith.constant 0 : index
    %251 = vector.load %arg6[%c13_82, %c0_83] : memref<18x128xf32, #tpu.memory_space<vmem>>, vector<1x128xf32>
    %252 = vector.shape_cast %251 : vector<1x128xf32> to vector<128xf32>
    %253 = vector.shape_cast %252 : vector<128xf32> to vector<1x128xf32>
    %254 = vector.broadcast %253 : vector<1x128xf32> to vector<40x128xf32>
    %255 = arith.mulf %254, %184 : vector<40x128xf32>
    %256 = arith.addf %244, %255 : vector<40x128xf32>
    %c127_i32_84 = arith.constant 127 : i32
    %257 = tpu.dynamic_rotate %184 by %c127_i32_84 dim 1 : vector<40x128xf32>, i32 -> vector<40x128xf32>
    %cst_85 = arith.constant 0.000000e+00 : f32
    %258 = vector.broadcast %cst_85 : f32 to vector<40x128xf32>
    %259 = arith.select %7, %257, %258 : vector<40x128xi1>, vector<40x128xf32>
    %c5_86 = arith.constant 5 : index
    %c0_87 = arith.constant 0 : index
    %260 = vector.load %arg6[%c5_86, %c0_87] : memref<18x128xf32, #tpu.memory_space<vmem>>, vector<1x128xf32>
    %261 = vector.shape_cast %260 : vector<1x128xf32> to vector<128xf32>
    %262 = vector.shape_cast %261 : vector<128xf32> to vector<1x128xf32>
    %263 = vector.broadcast %262 : vector<1x128xf32> to vector<40x128xf32>
    %264 = arith.mulf %263, %259 : vector<40x128xf32>
    %265 = arith.addf %250, %264 : vector<40x128xf32>
    %c14_88 = arith.constant 14 : index
    %c0_89 = arith.constant 0 : index
    %266 = vector.load %arg6[%c14_88, %c0_89] : memref<18x128xf32, #tpu.memory_space<vmem>>, vector<1x128xf32>
    %267 = vector.shape_cast %266 : vector<1x128xf32> to vector<128xf32>
    %268 = vector.shape_cast %267 : vector<128xf32> to vector<1x128xf32>
    %269 = vector.broadcast %268 : vector<1x128xf32> to vector<40x128xf32>
    %270 = arith.mulf %269, %259 : vector<40x128xf32>
    %271 = arith.addf %256, %270 : vector<40x128xf32>
    %c39_i32_90 = arith.constant 39 : i32
    %272 = tpu.dynamic_rotate %184 by %c39_i32_90 dim 0 : vector<40x128xf32>, i32 -> vector<40x128xf32>
    %c1_i32_91 = arith.constant 1 : i32
    %273 = tpu.dynamic_rotate %272 by %c1_i32_91 dim 1 : vector<40x128xf32>, i32 -> vector<40x128xf32>
    %cst_92 = arith.constant 0.000000e+00 : f32
    %274 = vector.broadcast %cst_92 : f32 to vector<40x128xf32>
    %275 = arith.select %5, %273, %274 : vector<40x128xi1>, vector<40x128xf32>
    %c6_93 = arith.constant 6 : index
    %c0_94 = arith.constant 0 : index
    %276 = vector.load %arg6[%c6_93, %c0_94] : memref<18x128xf32, #tpu.memory_space<vmem>>, vector<1x128xf32>
    %277 = vector.shape_cast %276 : vector<1x128xf32> to vector<128xf32>
    %278 = vector.shape_cast %277 : vector<128xf32> to vector<1x128xf32>
    %279 = vector.broadcast %278 : vector<1x128xf32> to vector<40x128xf32>
    %280 = arith.mulf %279, %275 : vector<40x128xf32>
    %281 = arith.addf %265, %280 : vector<40x128xf32>
    %c15_95 = arith.constant 15 : index
    %c0_96 = arith.constant 0 : index
    %282 = vector.load %arg6[%c15_95, %c0_96] : memref<18x128xf32, #tpu.memory_space<vmem>>, vector<1x128xf32>
    %283 = vector.shape_cast %282 : vector<1x128xf32> to vector<128xf32>
    %284 = vector.shape_cast %283 : vector<128xf32> to vector<1x128xf32>
    %285 = vector.broadcast %284 : vector<1x128xf32> to vector<40x128xf32>
    %286 = arith.mulf %285, %275 : vector<40x128xf32>
    %287 = arith.addf %271, %286 : vector<40x128xf32>
    %c7_97 = arith.constant 7 : index
    %c0_98 = arith.constant 0 : index
    %288 = vector.load %arg6[%c7_97, %c0_98] : memref<18x128xf32, #tpu.memory_space<vmem>>, vector<1x128xf32>
    %289 = vector.shape_cast %288 : vector<1x128xf32> to vector<128xf32>
    %290 = vector.shape_cast %289 : vector<128xf32> to vector<1x128xf32>
    %291 = vector.broadcast %290 : vector<1x128xf32> to vector<40x128xf32>
    %292 = arith.mulf %291, %272 : vector<40x128xf32>
    %293 = arith.addf %281, %292 : vector<40x128xf32>
    %c16_99 = arith.constant 16 : index
    %c0_100 = arith.constant 0 : index
    %294 = vector.load %arg6[%c16_99, %c0_100] : memref<18x128xf32, #tpu.memory_space<vmem>>, vector<1x128xf32>
    %295 = vector.shape_cast %294 : vector<1x128xf32> to vector<128xf32>
    %296 = vector.shape_cast %295 : vector<128xf32> to vector<1x128xf32>
    %297 = vector.broadcast %296 : vector<1x128xf32> to vector<40x128xf32>
    %298 = arith.mulf %297, %272 : vector<40x128xf32>
    %299 = arith.addf %287, %298 : vector<40x128xf32>
    %c127_i32_101 = arith.constant 127 : i32
    %300 = tpu.dynamic_rotate %272 by %c127_i32_101 dim 1 : vector<40x128xf32>, i32 -> vector<40x128xf32>
    %cst_102 = arith.constant 0.000000e+00 : f32
    %301 = vector.broadcast %cst_102 : f32 to vector<40x128xf32>
    %302 = arith.select %7, %300, %301 : vector<40x128xi1>, vector<40x128xf32>
    %c8_103 = arith.constant 8 : index
    %c0_104 = arith.constant 0 : index
    %303 = vector.load %arg6[%c8_103, %c0_104] : memref<18x128xf32, #tpu.memory_space<vmem>>, vector<1x128xf32>
    %304 = vector.shape_cast %303 : vector<1x128xf32> to vector<128xf32>
    %305 = vector.shape_cast %304 : vector<128xf32> to vector<1x128xf32>
    %306 = vector.broadcast %305 : vector<1x128xf32> to vector<40x128xf32>
    %307 = arith.mulf %306, %302 : vector<40x128xf32>
    %308 = arith.addf %293, %307 : vector<40x128xf32>
    %c17_105 = arith.constant 17 : index
    %c0_106 = arith.constant 0 : index
    %309 = vector.load %arg6[%c17_105, %c0_106] : memref<18x128xf32, #tpu.memory_space<vmem>>, vector<1x128xf32>
    %310 = vector.shape_cast %309 : vector<1x128xf32> to vector<128xf32>
    %311 = vector.shape_cast %310 : vector<128xf32> to vector<1x128xf32>
    %312 = vector.broadcast %311 : vector<1x128xf32> to vector<40x128xf32>
    %313 = arith.mulf %312, %302 : vector<40x128xf32>
    %314 = arith.addf %299, %313 : vector<40x128xf32>
    %c64_i32_107 = arith.constant 64 : i32
    %315 = tpu.dynamic_rotate %308 by %c64_i32_107 dim 1 : vector<40x128xf32>, i32 -> vector<40x128xf32>
    %316 = arith.addf %308, %315 : vector<40x128xf32>
    %c96_i32_108 = arith.constant 96 : i32
    %317 = tpu.dynamic_rotate %316 by %c96_i32_108 dim 1 : vector<40x128xf32>, i32 -> vector<40x128xf32>
    %318 = arith.addf %316, %317 : vector<40x128xf32>
    %c64_i32_109 = arith.constant 64 : i32
    %319 = tpu.dynamic_rotate %314 by %c64_i32_109 dim 1 : vector<40x128xf32>, i32 -> vector<40x128xf32>
    %320 = arith.addf %314, %319 : vector<40x128xf32>
    %c96_i32_110 = arith.constant 96 : i32
    %321 = tpu.dynamic_rotate %320 by %c96_i32_110 dim 1 : vector<40x128xf32>, i32 -> vector<40x128xf32>
    %322 = arith.addf %320, %321 : vector<40x128xf32>
    %c0_111 = arith.constant 0 : index
    %323 = memref.load %arg9[%c0_111] : memref<2xf32, #tpu.memory_space<smem>>
    %324 = vector.broadcast %323 : f32 to vector<40x128xf32>
    %325 = arith.addf %318, %324 : vector<40x128xf32>
    %cst_112 = arith.constant 0.000000e+00 : f32
    %326 = vector.broadcast %cst_112 : f32 to vector<40x128xf32>
    %327 = arith.maximumf %325, %326 : vector<40x128xf32>
    %c1_113 = arith.constant 1 : index
    %328 = memref.load %arg9[%c1_113] : memref<2xf32, #tpu.memory_space<smem>>
    %329 = vector.broadcast %328 : f32 to vector<40x128xf32>
    %330 = arith.addf %322, %329 : vector<40x128xf32>
    %cst_114 = arith.constant 0.000000e+00 : f32
    %331 = vector.broadcast %cst_114 : f32 to vector<40x128xf32>
    %332 = arith.maximumf %330, %331 : vector<40x128xf32>
    %333 = arith.andi %9, %11 : vector<40x128xi1>
    %c32_i32_115 = arith.constant 32 : i32
    %334 = vector.broadcast %c32_i32_115 : i32 to vector<40x128xi32>
    %335 = arith.cmpi slt, %0, %334 : vector<40x128xi32>
    %c32_i32_116 = arith.constant 32 : i32
    %336 = tpu.dynamic_rotate %332 by %c32_i32_116 dim 1 : vector<40x128xf32>, i32 -> vector<40x128xf32>
    %337 = arith.select %335, %327, %336 : vector<40x128xi1>, vector<40x128xf32>
    %cst_117 = arith.constant 0.000000e+00 : f32
    %338 = vector.broadcast %cst_117 : f32 to vector<40x128xf32>
    %339 = arith.select %333, %337, %338 : vector<40x128xi1>, vector<40x128xf32>
    %cst_118 = arith.constant 0.000000e+00 : f32
    %340 = vector.broadcast %cst_118 : f32 to vector<40x128xf32>
    %cst_119 = arith.constant 0.000000e+00 : f32
    %341 = vector.broadcast %cst_119 : f32 to vector<40x128xf32>
    %c1_i32_120 = arith.constant 1 : i32
    %342 = tpu.dynamic_rotate %339 by %c1_i32_120 dim 0 : vector<40x128xf32>, i32 -> vector<40x128xf32>
    %c1_i32_121 = arith.constant 1 : i32
    %343 = tpu.dynamic_rotate %342 by %c1_i32_121 dim 1 : vector<40x128xf32>, i32 -> vector<40x128xf32>
    %cst_122 = arith.constant 0.000000e+00 : f32
    %344 = vector.broadcast %cst_122 : f32 to vector<40x128xf32>
    %345 = arith.select %5, %343, %344 : vector<40x128xi1>, vector<40x128xf32>
    %c0_123 = arith.constant 0 : index
    %c0_124 = arith.constant 0 : index
    %346 = vector.load %arg7[%c0_123, %c0_124] : memref<18x128xf32, #tpu.memory_space<vmem>>, vector<1x128xf32>
    %347 = vector.shape_cast %346 : vector<1x128xf32> to vector<128xf32>
    %348 = vector.shape_cast %347 : vector<128xf32> to vector<1x128xf32>
    %349 = vector.broadcast %348 : vector<1x128xf32> to vector<40x128xf32>
    %350 = arith.mulf %349, %345 : vector<40x128xf32>
    %351 = arith.addf %340, %350 : vector<40x128xf32>
    %c9_125 = arith.constant 9 : index
    %c0_126 = arith.constant 0 : index
    %352 = vector.load %arg7[%c9_125, %c0_126] : memref<18x128xf32, #tpu.memory_space<vmem>>, vector<1x128xf32>
    %353 = vector.shape_cast %352 : vector<1x128xf32> to vector<128xf32>
    %354 = vector.shape_cast %353 : vector<128xf32> to vector<1x128xf32>
    %355 = vector.broadcast %354 : vector<1x128xf32> to vector<40x128xf32>
    %356 = arith.mulf %355, %345 : vector<40x128xf32>
    %357 = arith.addf %341, %356 : vector<40x128xf32>
    %c1_127 = arith.constant 1 : index
    %c0_128 = arith.constant 0 : index
    %358 = vector.load %arg7[%c1_127, %c0_128] : memref<18x128xf32, #tpu.memory_space<vmem>>, vector<1x128xf32>
    %359 = vector.shape_cast %358 : vector<1x128xf32> to vector<128xf32>
    %360 = vector.shape_cast %359 : vector<128xf32> to vector<1x128xf32>
    %361 = vector.broadcast %360 : vector<1x128xf32> to vector<40x128xf32>
    %362 = arith.mulf %361, %342 : vector<40x128xf32>
    %363 = arith.addf %351, %362 : vector<40x128xf32>
    %c10_129 = arith.constant 10 : index
    %c0_130 = arith.constant 0 : index
    %364 = vector.load %arg7[%c10_129, %c0_130] : memref<18x128xf32, #tpu.memory_space<vmem>>, vector<1x128xf32>
    %365 = vector.shape_cast %364 : vector<1x128xf32> to vector<128xf32>
    %366 = vector.shape_cast %365 : vector<128xf32> to vector<1x128xf32>
    %367 = vector.broadcast %366 : vector<1x128xf32> to vector<40x128xf32>
    %368 = arith.mulf %367, %342 : vector<40x128xf32>
    %369 = arith.addf %357, %368 : vector<40x128xf32>
    %c127_i32_131 = arith.constant 127 : i32
    %370 = tpu.dynamic_rotate %342 by %c127_i32_131 dim 1 : vector<40x128xf32>, i32 -> vector<40x128xf32>
    %cst_132 = arith.constant 0.000000e+00 : f32
    %371 = vector.broadcast %cst_132 : f32 to vector<40x128xf32>
    %372 = arith.select %7, %370, %371 : vector<40x128xi1>, vector<40x128xf32>
    %c2_133 = arith.constant 2 : index
    %c0_134 = arith.constant 0 : index
    %373 = vector.load %arg7[%c2_133, %c0_134] : memref<18x128xf32, #tpu.memory_space<vmem>>, vector<1x128xf32>
    %374 = vector.shape_cast %373 : vector<1x128xf32> to vector<128xf32>
    %375 = vector.shape_cast %374 : vector<128xf32> to vector<1x128xf32>
    %376 = vector.broadcast %375 : vector<1x128xf32> to vector<40x128xf32>
    %377 = arith.mulf %376, %372 : vector<40x128xf32>
    %378 = arith.addf %363, %377 : vector<40x128xf32>
    %c11_135 = arith.constant 11 : index
    %c0_136 = arith.constant 0 : index
    %379 = vector.load %arg7[%c11_135, %c0_136] : memref<18x128xf32, #tpu.memory_space<vmem>>, vector<1x128xf32>
    %380 = vector.shape_cast %379 : vector<1x128xf32> to vector<128xf32>
    %381 = vector.shape_cast %380 : vector<128xf32> to vector<1x128xf32>
    %382 = vector.broadcast %381 : vector<1x128xf32> to vector<40x128xf32>
    %383 = arith.mulf %382, %372 : vector<40x128xf32>
    %384 = arith.addf %369, %383 : vector<40x128xf32>
    %c1_i32_137 = arith.constant 1 : i32
    %385 = tpu.dynamic_rotate %339 by %c1_i32_137 dim 1 : vector<40x128xf32>, i32 -> vector<40x128xf32>
    %cst_138 = arith.constant 0.000000e+00 : f32
    %386 = vector.broadcast %cst_138 : f32 to vector<40x128xf32>
    %387 = arith.select %5, %385, %386 : vector<40x128xi1>, vector<40x128xf32>
    %c3_139 = arith.constant 3 : index
    %c0_140 = arith.constant 0 : index
    %388 = vector.load %arg7[%c3_139, %c0_140] : memref<18x128xf32, #tpu.memory_space<vmem>>, vector<1x128xf32>
    %389 = vector.shape_cast %388 : vector<1x128xf32> to vector<128xf32>
    %390 = vector.shape_cast %389 : vector<128xf32> to vector<1x128xf32>
    %391 = vector.broadcast %390 : vector<1x128xf32> to vector<40x128xf32>
    %392 = arith.mulf %391, %387 : vector<40x128xf32>
    %393 = arith.addf %378, %392 : vector<40x128xf32>
    %c12_141 = arith.constant 12 : index
    %c0_142 = arith.constant 0 : index
    %394 = vector.load %arg7[%c12_141, %c0_142] : memref<18x128xf32, #tpu.memory_space<vmem>>, vector<1x128xf32>
    %395 = vector.shape_cast %394 : vector<1x128xf32> to vector<128xf32>
    %396 = vector.shape_cast %395 : vector<128xf32> to vector<1x128xf32>
    %397 = vector.broadcast %396 : vector<1x128xf32> to vector<40x128xf32>
    %398 = arith.mulf %397, %387 : vector<40x128xf32>
    %399 = arith.addf %384, %398 : vector<40x128xf32>
    %c4_143 = arith.constant 4 : index
    %c0_144 = arith.constant 0 : index
    %400 = vector.load %arg7[%c4_143, %c0_144] : memref<18x128xf32, #tpu.memory_space<vmem>>, vector<1x128xf32>
    %401 = vector.shape_cast %400 : vector<1x128xf32> to vector<128xf32>
    %402 = vector.shape_cast %401 : vector<128xf32> to vector<1x128xf32>
    %403 = vector.broadcast %402 : vector<1x128xf32> to vector<40x128xf32>
    %404 = arith.mulf %403, %339 : vector<40x128xf32>
    %405 = arith.addf %393, %404 : vector<40x128xf32>
    %c13_145 = arith.constant 13 : index
    %c0_146 = arith.constant 0 : index
    %406 = vector.load %arg7[%c13_145, %c0_146] : memref<18x128xf32, #tpu.memory_space<vmem>>, vector<1x128xf32>
    %407 = vector.shape_cast %406 : vector<1x128xf32> to vector<128xf32>
    %408 = vector.shape_cast %407 : vector<128xf32> to vector<1x128xf32>
    %409 = vector.broadcast %408 : vector<1x128xf32> to vector<40x128xf32>
    %410 = arith.mulf %409, %339 : vector<40x128xf32>
    %411 = arith.addf %399, %410 : vector<40x128xf32>
    %c127_i32_147 = arith.constant 127 : i32
    %412 = tpu.dynamic_rotate %339 by %c127_i32_147 dim 1 : vector<40x128xf32>, i32 -> vector<40x128xf32>
    %cst_148 = arith.constant 0.000000e+00 : f32
    %413 = vector.broadcast %cst_148 : f32 to vector<40x128xf32>
    %414 = arith.select %7, %412, %413 : vector<40x128xi1>, vector<40x128xf32>
    %c5_149 = arith.constant 5 : index
    %c0_150 = arith.constant 0 : index
    %415 = vector.load %arg7[%c5_149, %c0_150] : memref<18x128xf32, #tpu.memory_space<vmem>>, vector<1x128xf32>
    %416 = vector.shape_cast %415 : vector<1x128xf32> to vector<128xf32>
    %417 = vector.shape_cast %416 : vector<128xf32> to vector<1x128xf32>
    %418 = vector.broadcast %417 : vector<1x128xf32> to vector<40x128xf32>
    %419 = arith.mulf %418, %414 : vector<40x128xf32>
    %420 = arith.addf %405, %419 : vector<40x128xf32>
    %c14_151 = arith.constant 14 : index
    %c0_152 = arith.constant 0 : index
    %421 = vector.load %arg7[%c14_151, %c0_152] : memref<18x128xf32, #tpu.memory_space<vmem>>, vector<1x128xf32>
    %422 = vector.shape_cast %421 : vector<1x128xf32> to vector<128xf32>
    %423 = vector.shape_cast %422 : vector<128xf32> to vector<1x128xf32>
    %424 = vector.broadcast %423 : vector<1x128xf32> to vector<40x128xf32>
    %425 = arith.mulf %424, %414 : vector<40x128xf32>
    %426 = arith.addf %411, %425 : vector<40x128xf32>
    %c39_i32_153 = arith.constant 39 : i32
    %427 = tpu.dynamic_rotate %339 by %c39_i32_153 dim 0 : vector<40x128xf32>, i32 -> vector<40x128xf32>
    %c1_i32_154 = arith.constant 1 : i32
    %428 = tpu.dynamic_rotate %427 by %c1_i32_154 dim 1 : vector<40x128xf32>, i32 -> vector<40x128xf32>
    %cst_155 = arith.constant 0.000000e+00 : f32
    %429 = vector.broadcast %cst_155 : f32 to vector<40x128xf32>
    %430 = arith.select %5, %428, %429 : vector<40x128xi1>, vector<40x128xf32>
    %c6_156 = arith.constant 6 : index
    %c0_157 = arith.constant 0 : index
    %431 = vector.load %arg7[%c6_156, %c0_157] : memref<18x128xf32, #tpu.memory_space<vmem>>, vector<1x128xf32>
    %432 = vector.shape_cast %431 : vector<1x128xf32> to vector<128xf32>
    %433 = vector.shape_cast %432 : vector<128xf32> to vector<1x128xf32>
    %434 = vector.broadcast %433 : vector<1x128xf32> to vector<40x128xf32>
    %435 = arith.mulf %434, %430 : vector<40x128xf32>
    %436 = arith.addf %420, %435 : vector<40x128xf32>
    %c15_158 = arith.constant 15 : index
    %c0_159 = arith.constant 0 : index
    %437 = vector.load %arg7[%c15_158, %c0_159] : memref<18x128xf32, #tpu.memory_space<vmem>>, vector<1x128xf32>
    %438 = vector.shape_cast %437 : vector<1x128xf32> to vector<128xf32>
    %439 = vector.shape_cast %438 : vector<128xf32> to vector<1x128xf32>
    %440 = vector.broadcast %439 : vector<1x128xf32> to vector<40x128xf32>
    %441 = arith.mulf %440, %430 : vector<40x128xf32>
    %442 = arith.addf %426, %441 : vector<40x128xf32>
    %c7_160 = arith.constant 7 : index
    %c0_161 = arith.constant 0 : index
    %443 = vector.load %arg7[%c7_160, %c0_161] : memref<18x128xf32, #tpu.memory_space<vmem>>, vector<1x128xf32>
    %444 = vector.shape_cast %443 : vector<1x128xf32> to vector<128xf32>
    %445 = vector.shape_cast %444 : vector<128xf32> to vector<1x128xf32>
    %446 = vector.broadcast %445 : vector<1x128xf32> to vector<40x128xf32>
    %447 = arith.mulf %446, %427 : vector<40x128xf32>
    %448 = arith.addf %436, %447 : vector<40x128xf32>
    %c16_162 = arith.constant 16 : index
    %c0_163 = arith.constant 0 : index
    %449 = vector.load %arg7[%c16_162, %c0_163] : memref<18x128xf32, #tpu.memory_space<vmem>>, vector<1x128xf32>
    %450 = vector.shape_cast %449 : vector<1x128xf32> to vector<128xf32>
    %451 = vector.shape_cast %450 : vector<128xf32> to vector<1x128xf32>
    %452 = vector.broadcast %451 : vector<1x128xf32> to vector<40x128xf32>
    %453 = arith.mulf %452, %427 : vector<40x128xf32>
    %454 = arith.addf %442, %453 : vector<40x128xf32>
    %c127_i32_164 = arith.constant 127 : i32
    %455 = tpu.dynamic_rotate %427 by %c127_i32_164 dim 1 : vector<40x128xf32>, i32 -> vector<40x128xf32>
    %cst_165 = arith.constant 0.000000e+00 : f32
    %456 = vector.broadcast %cst_165 : f32 to vector<40x128xf32>
    %457 = arith.select %7, %455, %456 : vector<40x128xi1>, vector<40x128xf32>
    %c8_166 = arith.constant 8 : index
    %c0_167 = arith.constant 0 : index
    %458 = vector.load %arg7[%c8_166, %c0_167] : memref<18x128xf32, #tpu.memory_space<vmem>>, vector<1x128xf32>
    %459 = vector.shape_cast %458 : vector<1x128xf32> to vector<128xf32>
    %460 = vector.shape_cast %459 : vector<128xf32> to vector<1x128xf32>
    %461 = vector.broadcast %460 : vector<1x128xf32> to vector<40x128xf32>
    %462 = arith.mulf %461, %457 : vector<40x128xf32>
    %463 = arith.addf %448, %462 : vector<40x128xf32>
    %c17_168 = arith.constant 17 : index
    %c0_169 = arith.constant 0 : index
    %464 = vector.load %arg7[%c17_168, %c0_169] : memref<18x128xf32, #tpu.memory_space<vmem>>, vector<1x128xf32>
    %465 = vector.shape_cast %464 : vector<1x128xf32> to vector<128xf32>
    %466 = vector.shape_cast %465 : vector<128xf32> to vector<1x128xf32>
    %467 = vector.broadcast %466 : vector<1x128xf32> to vector<40x128xf32>
    %468 = arith.mulf %467, %457 : vector<40x128xf32>
    %469 = arith.addf %454, %468 : vector<40x128xf32>
    %c64_i32_170 = arith.constant 64 : i32
    %470 = tpu.dynamic_rotate %463 by %c64_i32_170 dim 1 : vector<40x128xf32>, i32 -> vector<40x128xf32>
    %471 = arith.addf %463, %470 : vector<40x128xf32>
    %c96_i32_171 = arith.constant 96 : i32
    %472 = tpu.dynamic_rotate %471 by %c96_i32_171 dim 1 : vector<40x128xf32>, i32 -> vector<40x128xf32>
    %473 = arith.addf %471, %472 : vector<40x128xf32>
    %c64_i32_172 = arith.constant 64 : i32
    %474 = tpu.dynamic_rotate %469 by %c64_i32_172 dim 1 : vector<40x128xf32>, i32 -> vector<40x128xf32>
    %475 = arith.addf %469, %474 : vector<40x128xf32>
    %c96_i32_173 = arith.constant 96 : i32
    %476 = tpu.dynamic_rotate %475 by %c96_i32_173 dim 1 : vector<40x128xf32>, i32 -> vector<40x128xf32>
    %477 = arith.addf %475, %476 : vector<40x128xf32>
    %c0_174 = arith.constant 0 : index
    %478 = memref.load %arg10[%c0_174] : memref<2xf32, #tpu.memory_space<smem>>
    %479 = vector.broadcast %478 : f32 to vector<40x128xf32>
    %480 = arith.addf %473, %479 : vector<40x128xf32>
    %cst_175 = arith.constant 0.000000e+00 : f32
    %481 = vector.broadcast %cst_175 : f32 to vector<40x128xf32>
    %482 = arith.maximumf %480, %481 : vector<40x128xf32>
    %c1_176 = arith.constant 1 : index
    %483 = memref.load %arg10[%c1_176] : memref<2xf32, #tpu.memory_space<smem>>
    %484 = vector.broadcast %483 : f32 to vector<40x128xf32>
    %485 = arith.addf %477, %484 : vector<40x128xf32>
    %cst_177 = arith.constant 0.000000e+00 : f32
    %486 = vector.broadcast %cst_177 : f32 to vector<40x128xf32>
    %487 = arith.maximumf %485, %486 : vector<40x128xf32>
    %c32_i32_178 = arith.constant 32 : i32
    %488 = vector.broadcast %c32_i32_178 : i32 to vector<40x128xi32>
    %489 = arith.cmpi slt, %0, %488 : vector<40x128xi32>
    %c32_i32_179 = arith.constant 32 : i32
    %490 = tpu.dynamic_rotate %487 by %c32_i32_179 dim 1 : vector<40x128xf32>, i32 -> vector<40x128xf32>
    %491 = arith.select %489, %482, %490 : vector<40x128xi1>, vector<40x128xf32>
    %492 = vector.extract_strided_slice %491 {offsets = [0, 0], sizes = [32, 64], strides = [1, 1]} : vector<40x128xf32> to vector<32x64xf32>
    %c0_180 = arith.constant 0 : index
    %c0_181 = arith.constant 0 : index
    %c0_182 = arith.constant 0 : index
    %493 = vector.load %arg11[%c0_180, %c0_181, %c0_182] : memref<2x32x64xf32, #tpu.memory_space<vmem>>, vector<1x32x64xf32>
    %494 = vector.shape_cast %493 : vector<1x32x64xf32> to vector<32x64xf32>
    %495 = vector.shape_cast %492 : vector<32x64xf32> to vector<1x32x64xf32>
    tpu.vector_store %arg11[%c0_180, %c0_181, %c0_182], %495 {strides = array<i32>} : memref<2x32x64xf32, #tpu.memory_space<vmem>>, vector<1x32x64xf32>,
    %c1_183 = arith.constant 1 : index
    %c0_184 = arith.constant 0 : index
    %c0_185 = arith.constant 0 : index
    %496 = vector.load %arg0[%c1_183, %c0_184, %c0_185] : memref<2x64x16xf32, #tpu.memory_space<vmem>>, vector<1x64x16xf32>
    %497 = vector.shape_cast %496 : vector<1x64x16xf32> to vector<64x16xf32>
    %c0_186 = arith.constant 0 : index
    %c0_187 = arith.constant 0 : index
    %498 = vector.load %arg4[%c0_186, %c0_187] : memref<16x32xf32, #tpu.memory_space<vmem>>, vector<16x32xf32>
    %cst_188 = arith.constant dense<0.000000e+00> : vector<64x32xf32>
    %499 = tpu.matmul %497, %498, %cst_188 {dimension_numbers = #tpu.dot_dimension_numbers<[1], [0], [0], [1], [0, 0, 1, 1], [], []>} : vector<64x16xf32>, vector<16x32xf32>, vector<64x32xf32> -> vector<64x32xf32>
    %500 = vector.extract_strided_slice %499 {offsets = [0, 0], sizes = [16, 32], strides = [1, 1]} : vector<64x32xf32> to vector<16x32xf32>
    %501 = vector.extract_strided_slice %499 {offsets = [16, 0], sizes = [16, 32], strides = [1, 1]} : vector<64x32xf32> to vector<16x32xf32>
    %502 = vector.extract_strided_slice %499 {offsets = [32, 0], sizes = [16, 32], strides = [1, 1]} : vector<64x32xf32> to vector<16x32xf32>
    %503 = vector.extract_strided_slice %499 {offsets = [48, 0], sizes = [16, 32], strides = [1, 1]} : vector<64x32xf32> to vector<16x32xf32>
    %504 = tpu.concatenate %500, %501, %502, %503 in 1 : vector<16x32xf32>, vector<16x32xf32>, vector<16x32xf32>, vector<16x32xf32> -> vector<16x128xf32>
    %c0_189 = arith.constant 0 : index
    %c0_190 = arith.constant 0 : index
    %505 = vector.load %arg3[%c0_189, %c0_190] : memref<40x16xf32, #tpu.memory_space<vmem>>, vector<40x16xf32>
    %cst_191 = arith.constant dense<0.000000e+00> : vector<40x128xf32>
    %506 = tpu.matmul %505, %504, %cst_191 {dimension_numbers = #tpu.dot_dimension_numbers<[1], [0], [0], [1], [0, 0, 1, 1], [], []>} : vector<40x16xf32>, vector<16x128xf32>, vector<40x128xf32> -> vector<40x128xf32>
    %cst_192 = arith.constant 0.000000e+00 : f32
    %507 = vector.broadcast %cst_192 : f32 to vector<40x128xf32>
    %cst_193 = arith.constant 0.000000e+00 : f32
    %508 = vector.broadcast %cst_193 : f32 to vector<40x128xf32>
    %c1_i32_194 = arith.constant 1 : i32
    %509 = tpu.dynamic_rotate %506 by %c1_i32_194 dim 0 : vector<40x128xf32>, i32 -> vector<40x128xf32>
    %c1_i32_195 = arith.constant 1 : i32
    %510 = tpu.dynamic_rotate %509 by %c1_i32_195 dim 1 : vector<40x128xf32>, i32 -> vector<40x128xf32>
    %cst_196 = arith.constant 0.000000e+00 : f32
    %511 = vector.broadcast %cst_196 : f32 to vector<40x128xf32>
    %512 = arith.select %5, %510, %511 : vector<40x128xi1>, vector<40x128xf32>
    %c0_197 = arith.constant 0 : index
    %c0_198 = arith.constant 0 : index
    %513 = vector.load %arg5[%c0_197, %c0_198] : memref<18x128xf32, #tpu.memory_space<vmem>>, vector<1x128xf32>
    %514 = vector.shape_cast %513 : vector<1x128xf32> to vector<128xf32>
    %515 = vector.shape_cast %514 : vector<128xf32> to vector<1x128xf32>
    %516 = vector.broadcast %515 : vector<1x128xf32> to vector<40x128xf32>
    %517 = arith.mulf %516, %512 : vector<40x128xf32>
    %518 = arith.addf %507, %517 : vector<40x128xf32>
    %c9_199 = arith.constant 9 : index
    %c0_200 = arith.constant 0 : index
    %519 = vector.load %arg5[%c9_199, %c0_200] : memref<18x128xf32, #tpu.memory_space<vmem>>, vector<1x128xf32>
    %520 = vector.shape_cast %519 : vector<1x128xf32> to vector<128xf32>
    %521 = vector.shape_cast %520 : vector<128xf32> to vector<1x128xf32>
    %522 = vector.broadcast %521 : vector<1x128xf32> to vector<40x128xf32>
    %523 = arith.mulf %522, %512 : vector<40x128xf32>
    %524 = arith.addf %508, %523 : vector<40x128xf32>
    %c1_201 = arith.constant 1 : index
    %c0_202 = arith.constant 0 : index
    %525 = vector.load %arg5[%c1_201, %c0_202] : memref<18x128xf32, #tpu.memory_space<vmem>>, vector<1x128xf32>
    %526 = vector.shape_cast %525 : vector<1x128xf32> to vector<128xf32>
    %527 = vector.shape_cast %526 : vector<128xf32> to vector<1x128xf32>
    %528 = vector.broadcast %527 : vector<1x128xf32> to vector<40x128xf32>
    %529 = arith.mulf %528, %509 : vector<40x128xf32>
    %530 = arith.addf %518, %529 : vector<40x128xf32>
    %c10_203 = arith.constant 10 : index
    %c0_204 = arith.constant 0 : index
    %531 = vector.load %arg5[%c10_203, %c0_204] : memref<18x128xf32, #tpu.memory_space<vmem>>, vector<1x128xf32>
    %532 = vector.shape_cast %531 : vector<1x128xf32> to vector<128xf32>
    %533 = vector.shape_cast %532 : vector<128xf32> to vector<1x128xf32>
    %534 = vector.broadcast %533 : vector<1x128xf32> to vector<40x128xf32>
    %535 = arith.mulf %534, %509 : vector<40x128xf32>
    %536 = arith.addf %524, %535 : vector<40x128xf32>
    %c127_i32_205 = arith.constant 127 : i32
    %537 = tpu.dynamic_rotate %509 by %c127_i32_205 dim 1 : vector<40x128xf32>, i32 -> vector<40x128xf32>
    %cst_206 = arith.constant 0.000000e+00 : f32
    %538 = vector.broadcast %cst_206 : f32 to vector<40x128xf32>
    %539 = arith.select %7, %537, %538 : vector<40x128xi1>, vector<40x128xf32>
    %c2_207 = arith.constant 2 : index
    %c0_208 = arith.constant 0 : index
    %540 = vector.load %arg5[%c2_207, %c0_208] : memref<18x128xf32, #tpu.memory_space<vmem>>, vector<1x128xf32>
    %541 = vector.shape_cast %540 : vector<1x128xf32> to vector<128xf32>
    %542 = vector.shape_cast %541 : vector<128xf32> to vector<1x128xf32>
    %543 = vector.broadcast %542 : vector<1x128xf32> to vector<40x128xf32>
    %544 = arith.mulf %543, %539 : vector<40x128xf32>
    %545 = arith.addf %530, %544 : vector<40x128xf32>
    %c11_209 = arith.constant 11 : index
    %c0_210 = arith.constant 0 : index
    %546 = vector.load %arg5[%c11_209, %c0_210] : memref<18x128xf32, #tpu.memory_space<vmem>>, vector<1x128xf32>
    %547 = vector.shape_cast %546 : vector<1x128xf32> to vector<128xf32>
    %548 = vector.shape_cast %547 : vector<128xf32> to vector<1x128xf32>
    %549 = vector.broadcast %548 : vector<1x128xf32> to vector<40x128xf32>
    %550 = arith.mulf %549, %539 : vector<40x128xf32>
    %551 = arith.addf %536, %550 : vector<40x128xf32>
    %c1_i32_211 = arith.constant 1 : i32
    %552 = tpu.dynamic_rotate %506 by %c1_i32_211 dim 1 : vector<40x128xf32>, i32 -> vector<40x128xf32>
    %cst_212 = arith.constant 0.000000e+00 : f32
    %553 = vector.broadcast %cst_212 : f32 to vector<40x128xf32>
    %554 = arith.select %5, %552, %553 : vector<40x128xi1>, vector<40x128xf32>
    %c3_213 = arith.constant 3 : index
    %c0_214 = arith.constant 0 : index
    %555 = vector.load %arg5[%c3_213, %c0_214] : memref<18x128xf32, #tpu.memory_space<vmem>>, vector<1x128xf32>
    %556 = vector.shape_cast %555 : vector<1x128xf32> to vector<128xf32>
    %557 = vector.shape_cast %556 : vector<128xf32> to vector<1x128xf32>
    %558 = vector.broadcast %557 : vector<1x128xf32> to vector<40x128xf32>
    %559 = arith.mulf %558, %554 : vector<40x128xf32>
    %560 = arith.addf %545, %559 : vector<40x128xf32>
    %c12_215 = arith.constant 12 : index
    %c0_216 = arith.constant 0 : index
    %561 = vector.load %arg5[%c12_215, %c0_216] : memref<18x128xf32, #tpu.memory_space<vmem>>, vector<1x128xf32>
    %562 = vector.shape_cast %561 : vector<1x128xf32> to vector<128xf32>
    %563 = vector.shape_cast %562 : vector<128xf32> to vector<1x128xf32>
    %564 = vector.broadcast %563 : vector<1x128xf32> to vector<40x128xf32>
    %565 = arith.mulf %564, %554 : vector<40x128xf32>
    %566 = arith.addf %551, %565 : vector<40x128xf32>
    %c4_217 = arith.constant 4 : index
    %c0_218 = arith.constant 0 : index
    %567 = vector.load %arg5[%c4_217, %c0_218] : memref<18x128xf32, #tpu.memory_space<vmem>>, vector<1x128xf32>
    %568 = vector.shape_cast %567 : vector<1x128xf32> to vector<128xf32>
    %569 = vector.shape_cast %568 : vector<128xf32> to vector<1x128xf32>
    %570 = vector.broadcast %569 : vector<1x128xf32> to vector<40x128xf32>
    %571 = arith.mulf %570, %506 : vector<40x128xf32>
    %572 = arith.addf %560, %571 : vector<40x128xf32>
    %c13_219 = arith.constant 13 : index
    %c0_220 = arith.constant 0 : index
    %573 = vector.load %arg5[%c13_219, %c0_220] : memref<18x128xf32, #tpu.memory_space<vmem>>, vector<1x128xf32>
    %574 = vector.shape_cast %573 : vector<1x128xf32> to vector<128xf32>
    %575 = vector.shape_cast %574 : vector<128xf32> to vector<1x128xf32>
    %576 = vector.broadcast %575 : vector<1x128xf32> to vector<40x128xf32>
    %577 = arith.mulf %576, %506 : vector<40x128xf32>
    %578 = arith.addf %566, %577 : vector<40x128xf32>
    %c127_i32_221 = arith.constant 127 : i32
    %579 = tpu.dynamic_rotate %506 by %c127_i32_221 dim 1 : vector<40x128xf32>, i32 -> vector<40x128xf32>
    %cst_222 = arith.constant 0.000000e+00 : f32
    %580 = vector.broadcast %cst_222 : f32 to vector<40x128xf32>
    %581 = arith.select %7, %579, %580 : vector<40x128xi1>, vector<40x128xf32>
    %c5_223 = arith.constant 5 : index
    %c0_224 = arith.constant 0 : index
    %582 = vector.load %arg5[%c5_223, %c0_224] : memref<18x128xf32, #tpu.memory_space<vmem>>, vector<1x128xf32>
    %583 = vector.shape_cast %582 : vector<1x128xf32> to vector<128xf32>
    %584 = vector.shape_cast %583 : vector<128xf32> to vector<1x128xf32>
    %585 = vector.broadcast %584 : vector<1x128xf32> to vector<40x128xf32>
    %586 = arith.mulf %585, %581 : vector<40x128xf32>
    %587 = arith.addf %572, %586 : vector<40x128xf32>
    %c14_225 = arith.constant 14 : index
    %c0_226 = arith.constant 0 : index
    %588 = vector.load %arg5[%c14_225, %c0_226] : memref<18x128xf32, #tpu.memory_space<vmem>>, vector<1x128xf32>
    %589 = vector.shape_cast %588 : vector<1x128xf32> to vector<128xf32>
    %590 = vector.shape_cast %589 : vector<128xf32> to vector<1x128xf32>
    %591 = vector.broadcast %590 : vector<1x128xf32> to vector<40x128xf32>
    %592 = arith.mulf %591, %581 : vector<40x128xf32>
    %593 = arith.addf %578, %592 : vector<40x128xf32>
    %c39_i32_227 = arith.constant 39 : i32
    %594 = tpu.dynamic_rotate %506 by %c39_i32_227 dim 0 : vector<40x128xf32>, i32 -> vector<40x128xf32>
    %c1_i32_228 = arith.constant 1 : i32
    %595 = tpu.dynamic_rotate %594 by %c1_i32_228 dim 1 : vector<40x128xf32>, i32 -> vector<40x128xf32>
    %cst_229 = arith.constant 0.000000e+00 : f32
    %596 = vector.broadcast %cst_229 : f32 to vector<40x128xf32>
    %597 = arith.select %5, %595, %596 : vector<40x128xi1>, vector<40x128xf32>
    %c6_230 = arith.constant 6 : index
    %c0_231 = arith.constant 0 : index
    %598 = vector.load %arg5[%c6_230, %c0_231] : memref<18x128xf32, #tpu.memory_space<vmem>>, vector<1x128xf32>
    %599 = vector.shape_cast %598 : vector<1x128xf32> to vector<128xf32>
    %600 = vector.shape_cast %599 : vector<128xf32> to vector<1x128xf32>
    %601 = vector.broadcast %600 : vector<1x128xf32> to vector<40x128xf32>
    %602 = arith.mulf %601, %597 : vector<40x128xf32>
    %603 = arith.addf %587, %602 : vector<40x128xf32>
    %c15_232 = arith.constant 15 : index
    %c0_233 = arith.constant 0 : index
    %604 = vector.load %arg5[%c15_232, %c0_233] : memref<18x128xf32, #tpu.memory_space<vmem>>, vector<1x128xf32>
    %605 = vector.shape_cast %604 : vector<1x128xf32> to vector<128xf32>
    %606 = vector.shape_cast %605 : vector<128xf32> to vector<1x128xf32>
    %607 = vector.broadcast %606 : vector<1x128xf32> to vector<40x128xf32>
    %608 = arith.mulf %607, %597 : vector<40x128xf32>
    %609 = arith.addf %593, %608 : vector<40x128xf32>
    %c7_234 = arith.constant 7 : index
    %c0_235 = arith.constant 0 : index
    %610 = vector.load %arg5[%c7_234, %c0_235] : memref<18x128xf32, #tpu.memory_space<vmem>>, vector<1x128xf32>
    %611 = vector.shape_cast %610 : vector<1x128xf32> to vector<128xf32>
    %612 = vector.shape_cast %611 : vector<128xf32> to vector<1x128xf32>
    %613 = vector.broadcast %612 : vector<1x128xf32> to vector<40x128xf32>
    %614 = arith.mulf %613, %594 : vector<40x128xf32>
    %615 = arith.addf %603, %614 : vector<40x128xf32>
    %c16_236 = arith.constant 16 : index
    %c0_237 = arith.constant 0 : index
    %616 = vector.load %arg5[%c16_236, %c0_237] : memref<18x128xf32, #tpu.memory_space<vmem>>, vector<1x128xf32>
    %617 = vector.shape_cast %616 : vector<1x128xf32> to vector<128xf32>
    %618 = vector.shape_cast %617 : vector<128xf32> to vector<1x128xf32>
    %619 = vector.broadcast %618 : vector<1x128xf32> to vector<40x128xf32>
    %620 = arith.mulf %619, %594 : vector<40x128xf32>
    %621 = arith.addf %609, %620 : vector<40x128xf32>
    %c127_i32_238 = arith.constant 127 : i32
    %622 = tpu.dynamic_rotate %594 by %c127_i32_238 dim 1 : vector<40x128xf32>, i32 -> vector<40x128xf32>
    %cst_239 = arith.constant 0.000000e+00 : f32
    %623 = vector.broadcast %cst_239 : f32 to vector<40x128xf32>
    %624 = arith.select %7, %622, %623 : vector<40x128xi1>, vector<40x128xf32>
    %c8_240 = arith.constant 8 : index
    %c0_241 = arith.constant 0 : index
    %625 = vector.load %arg5[%c8_240, %c0_241] : memref<18x128xf32, #tpu.memory_space<vmem>>, vector<1x128xf32>
    %626 = vector.shape_cast %625 : vector<1x128xf32> to vector<128xf32>
    %627 = vector.shape_cast %626 : vector<128xf32> to vector<1x128xf32>
    %628 = vector.broadcast %627 : vector<1x128xf32> to vector<40x128xf32>
    %629 = arith.mulf %628, %624 : vector<40x128xf32>
    %630 = arith.addf %615, %629 : vector<40x128xf32>
    %c17_242 = arith.constant 17 : index
    %c0_243 = arith.constant 0 : index
    %631 = vector.load %arg5[%c17_242, %c0_243] : memref<18x128xf32, #tpu.memory_space<vmem>>, vector<1x128xf32>
    %632 = vector.shape_cast %631 : vector<1x128xf32> to vector<128xf32>
    %633 = vector.shape_cast %632 : vector<128xf32> to vector<1x128xf32>
    %634 = vector.broadcast %633 : vector<1x128xf32> to vector<40x128xf32>
    %635 = arith.mulf %634, %624 : vector<40x128xf32>
    %636 = arith.addf %621, %635 : vector<40x128xf32>
    %c64_i32_244 = arith.constant 64 : i32
    %637 = tpu.dynamic_rotate %630 by %c64_i32_244 dim 1 : vector<40x128xf32>, i32 -> vector<40x128xf32>
    %638 = arith.addf %630, %637 : vector<40x128xf32>
    %c96_i32_245 = arith.constant 96 : i32
    %639 = tpu.dynamic_rotate %638 by %c96_i32_245 dim 1 : vector<40x128xf32>, i32 -> vector<40x128xf32>
    %640 = arith.addf %638, %639 : vector<40x128xf32>
    %c64_i32_246 = arith.constant 64 : i32
    %641 = tpu.dynamic_rotate %636 by %c64_i32_246 dim 1 : vector<40x128xf32>, i32 -> vector<40x128xf32>
    %642 = arith.addf %636, %641 : vector<40x128xf32>
    %c96_i32_247 = arith.constant 96 : i32
    %643 = tpu.dynamic_rotate %642 by %c96_i32_247 dim 1 : vector<40x128xf32>, i32 -> vector<40x128xf32>
    %644 = arith.addf %642, %643 : vector<40x128xf32>
    %c0_248 = arith.constant 0 : index
    %645 = memref.load %arg8[%c0_248] : memref<2xf32, #tpu.memory_space<smem>>
    %646 = vector.broadcast %645 : f32 to vector<40x128xf32>
    %647 = arith.addf %640, %646 : vector<40x128xf32>
    %cst_249 = arith.constant 0.000000e+00 : f32
    %648 = vector.broadcast %cst_249 : f32 to vector<40x128xf32>
    %649 = arith.maximumf %647, %648 : vector<40x128xf32>
    %c1_250 = arith.constant 1 : index
    %650 = memref.load %arg8[%c1_250] : memref<2xf32, #tpu.memory_space<smem>>
    %651 = vector.broadcast %650 : f32 to vector<40x128xf32>
    %652 = arith.addf %644, %651 : vector<40x128xf32>
    %cst_251 = arith.constant 0.000000e+00 : f32
    %653 = vector.broadcast %cst_251 : f32 to vector<40x128xf32>
    %654 = arith.maximumf %652, %653 : vector<40x128xf32>
    %c32_i32_252 = arith.constant 32 : i32
    %655 = vector.broadcast %c32_i32_252 : i32 to vector<40x128xi32>
    %656 = arith.cmpi slt, %0, %655 : vector<40x128xi32>
    %c32_i32_253 = arith.constant 32 : i32
    %657 = tpu.dynamic_rotate %654 by %c32_i32_253 dim 1 : vector<40x128xf32>, i32 -> vector<40x128xf32>
    %658 = arith.select %656, %649, %657 : vector<40x128xi1>, vector<40x128xf32>
    %c1_254 = arith.constant 1 : index
    %c0_255 = arith.constant 0 : index
    %c0_256 = arith.constant 0 : index
    %659 = vector.load %arg1[%c1_254, %c0_255, %c0_256] : memref<2x40x128xf32, #tpu.memory_space<vmem>>, vector<1x40x128xf32>
    %660 = vector.shape_cast %659 : vector<1x40x128xf32> to vector<40x128xf32>
    %661 = arith.select %11, %658, %660 : vector<40x128xi1>, vector<40x128xf32>
    %c1_257 = arith.constant 1 : index
    %c0_258 = arith.constant 0 : index
    %662 = vector.load %arg2[%c1_257, %c0_258] : memref<2x128xf32, #tpu.memory_space<vmem>>, vector<1x128xf32>
    %663 = vector.shape_cast %662 : vector<1x128xf32> to vector<128xf32>
    %664 = vector.shape_cast %663 : vector<128xf32> to vector<1x128xf32>
    %665 = vector.broadcast %664 : vector<1x128xf32> to vector<40x128xf32>
    %666 = arith.addf %661, %665 : vector<40x128xf32>
    %cst_259 = arith.constant 0.000000e+00 : f32
    %667 = vector.broadcast %cst_259 : f32 to vector<40x128xf32>
    %668 = arith.select %9, %666, %667 : vector<40x128xi1>, vector<40x128xf32>
    %cst_260 = arith.constant 0.000000e+00 : f32
    %669 = vector.broadcast %cst_260 : f32 to vector<40x128xf32>
    %cst_261 = arith.constant 0.000000e+00 : f32
    %670 = vector.broadcast %cst_261 : f32 to vector<40x128xf32>
    %c1_i32_262 = arith.constant 1 : i32
    %671 = tpu.dynamic_rotate %668 by %c1_i32_262 dim 0 : vector<40x128xf32>, i32 -> vector<40x128xf32>
    %c1_i32_263 = arith.constant 1 : i32
    %672 = tpu.dynamic_rotate %671 by %c1_i32_263 dim 1 : vector<40x128xf32>, i32 -> vector<40x128xf32>
    %cst_264 = arith.constant 0.000000e+00 : f32
    %673 = vector.broadcast %cst_264 : f32 to vector<40x128xf32>
    %674 = arith.select %5, %672, %673 : vector<40x128xi1>, vector<40x128xf32>
    %c0_265 = arith.constant 0 : index
    %c0_266 = arith.constant 0 : index
    %675 = vector.load %arg6[%c0_265, %c0_266] : memref<18x128xf32, #tpu.memory_space<vmem>>, vector<1x128xf32>
    %676 = vector.shape_cast %675 : vector<1x128xf32> to vector<128xf32>
    %677 = vector.shape_cast %676 : vector<128xf32> to vector<1x128xf32>
    %678 = vector.broadcast %677 : vector<1x128xf32> to vector<40x128xf32>
    %679 = arith.mulf %678, %674 : vector<40x128xf32>
    %680 = arith.addf %669, %679 : vector<40x128xf32>
    %c9_267 = arith.constant 9 : index
    %c0_268 = arith.constant 0 : index
    %681 = vector.load %arg6[%c9_267, %c0_268] : memref<18x128xf32, #tpu.memory_space<vmem>>, vector<1x128xf32>
    %682 = vector.shape_cast %681 : vector<1x128xf32> to vector<128xf32>
    %683 = vector.shape_cast %682 : vector<128xf32> to vector<1x128xf32>
    %684 = vector.broadcast %683 : vector<1x128xf32> to vector<40x128xf32>
    %685 = arith.mulf %684, %674 : vector<40x128xf32>
    %686 = arith.addf %670, %685 : vector<40x128xf32>
    %c1_269 = arith.constant 1 : index
    %c0_270 = arith.constant 0 : index
    %687 = vector.load %arg6[%c1_269, %c0_270] : memref<18x128xf32, #tpu.memory_space<vmem>>, vector<1x128xf32>
    %688 = vector.shape_cast %687 : vector<1x128xf32> to vector<128xf32>
    %689 = vector.shape_cast %688 : vector<128xf32> to vector<1x128xf32>
    %690 = vector.broadcast %689 : vector<1x128xf32> to vector<40x128xf32>
    %691 = arith.mulf %690, %671 : vector<40x128xf32>
    %692 = arith.addf %680, %691 : vector<40x128xf32>
    %c10_271 = arith.constant 10 : index
    %c0_272 = arith.constant 0 : index
    %693 = vector.load %arg6[%c10_271, %c0_272] : memref<18x128xf32, #tpu.memory_space<vmem>>, vector<1x128xf32>
    %694 = vector.shape_cast %693 : vector<1x128xf32> to vector<128xf32>
    %695 = vector.shape_cast %694 : vector<128xf32> to vector<1x128xf32>
    %696 = vector.broadcast %695 : vector<1x128xf32> to vector<40x128xf32>
    %697 = arith.mulf %696, %671 : vector<40x128xf32>
    %698 = arith.addf %686, %697 : vector<40x128xf32>
    %c127_i32_273 = arith.constant 127 : i32
    %699 = tpu.dynamic_rotate %671 by %c127_i32_273 dim 1 : vector<40x128xf32>, i32 -> vector<40x128xf32>
    %cst_274 = arith.constant 0.000000e+00 : f32
    %700 = vector.broadcast %cst_274 : f32 to vector<40x128xf32>
    %701 = arith.select %7, %699, %700 : vector<40x128xi1>, vector<40x128xf32>
    %c2_275 = arith.constant 2 : index
    %c0_276 = arith.constant 0 : index
    %702 = vector.load %arg6[%c2_275, %c0_276] : memref<18x128xf32, #tpu.memory_space<vmem>>, vector<1x128xf32>
    %703 = vector.shape_cast %702 : vector<1x128xf32> to vector<128xf32>
    %704 = vector.shape_cast %703 : vector<128xf32> to vector<1x128xf32>
    %705 = vector.broadcast %704 : vector<1x128xf32> to vector<40x128xf32>
    %706 = arith.mulf %705, %701 : vector<40x128xf32>
    %707 = arith.addf %692, %706 : vector<40x128xf32>
    %c11_277 = arith.constant 11 : index
    %c0_278 = arith.constant 0 : index
    %708 = vector.load %arg6[%c11_277, %c0_278] : memref<18x128xf32, #tpu.memory_space<vmem>>, vector<1x128xf32>
    %709 = vector.shape_cast %708 : vector<1x128xf32> to vector<128xf32>
    %710 = vector.shape_cast %709 : vector<128xf32> to vector<1x128xf32>
    %711 = vector.broadcast %710 : vector<1x128xf32> to vector<40x128xf32>
    %712 = arith.mulf %711, %701 : vector<40x128xf32>
    %713 = arith.addf %698, %712 : vector<40x128xf32>
    %c1_i32_279 = arith.constant 1 : i32
    %714 = tpu.dynamic_rotate %668 by %c1_i32_279 dim 1 : vector<40x128xf32>, i32 -> vector<40x128xf32>
    %cst_280 = arith.constant 0.000000e+00 : f32
    %715 = vector.broadcast %cst_280 : f32 to vector<40x128xf32>
    %716 = arith.select %5, %714, %715 : vector<40x128xi1>, vector<40x128xf32>
    %c3_281 = arith.constant 3 : index
    %c0_282 = arith.constant 0 : index
    %717 = vector.load %arg6[%c3_281, %c0_282] : memref<18x128xf32, #tpu.memory_space<vmem>>, vector<1x128xf32>
    %718 = vector.shape_cast %717 : vector<1x128xf32> to vector<128xf32>
    %719 = vector.shape_cast %718 : vector<128xf32> to vector<1x128xf32>
    %720 = vector.broadcast %719 : vector<1x128xf32> to vector<40x128xf32>
    %721 = arith.mulf %720, %716 : vector<40x128xf32>
    %722 = arith.addf %707, %721 : vector<40x128xf32>
    %c12_283 = arith.constant 12 : index
    %c0_284 = arith.constant 0 : index
    %723 = vector.load %arg6[%c12_283, %c0_284] : memref<18x128xf32, #tpu.memory_space<vmem>>, vector<1x128xf32>
    %724 = vector.shape_cast %723 : vector<1x128xf32> to vector<128xf32>
    %725 = vector.shape_cast %724 : vector<128xf32> to vector<1x128xf32>
    %726 = vector.broadcast %725 : vector<1x128xf32> to vector<40x128xf32>
    %727 = arith.mulf %726, %716 : vector<40x128xf32>
    %728 = arith.addf %713, %727 : vector<40x128xf32>
    %c4_285 = arith.constant 4 : index
    %c0_286 = arith.constant 0 : index
    %729 = vector.load %arg6[%c4_285, %c0_286] : memref<18x128xf32, #tpu.memory_space<vmem>>, vector<1x128xf32>
    %730 = vector.shape_cast %729 : vector<1x128xf32> to vector<128xf32>
    %731 = vector.shape_cast %730 : vector<128xf32> to vector<1x128xf32>
    %732 = vector.broadcast %731 : vector<1x128xf32> to vector<40x128xf32>
    %733 = arith.mulf %732, %668 : vector<40x128xf32>
    %734 = arith.addf %722, %733 : vector<40x128xf32>
    %c13_287 = arith.constant 13 : index
    %c0_288 = arith.constant 0 : index
    %735 = vector.load %arg6[%c13_287, %c0_288] : memref<18x128xf32, #tpu.memory_space<vmem>>, vector<1x128xf32>
    %736 = vector.shape_cast %735 : vector<1x128xf32> to vector<128xf32>
    %737 = vector.shape_cast %736 : vector<128xf32> to vector<1x128xf32>
    %738 = vector.broadcast %737 : vector<1x128xf32> to vector<40x128xf32>
    %739 = arith.mulf %738, %668 : vector<40x128xf32>
    %740 = arith.addf %728, %739 : vector<40x128xf32>
    %c127_i32_289 = arith.constant 127 : i32
    %741 = tpu.dynamic_rotate %668 by %c127_i32_289 dim 1 : vector<40x128xf32>, i32 -> vector<40x128xf32>
    %cst_290 = arith.constant 0.000000e+00 : f32
    %742 = vector.broadcast %cst_290 : f32 to vector<40x128xf32>
    %743 = arith.select %7, %741, %742 : vector<40x128xi1>, vector<40x128xf32>
    %c5_291 = arith.constant 5 : index
    %c0_292 = arith.constant 0 : index
    %744 = vector.load %arg6[%c5_291, %c0_292] : memref<18x128xf32, #tpu.memory_space<vmem>>, vector<1x128xf32>
    %745 = vector.shape_cast %744 : vector<1x128xf32> to vector<128xf32>
    %746 = vector.shape_cast %745 : vector<128xf32> to vector<1x128xf32>
    %747 = vector.broadcast %746 : vector<1x128xf32> to vector<40x128xf32>
    %748 = arith.mulf %747, %743 : vector<40x128xf32>
    %749 = arith.addf %734, %748 : vector<40x128xf32>
    %c14_293 = arith.constant 14 : index
    %c0_294 = arith.constant 0 : index
    %750 = vector.load %arg6[%c14_293, %c0_294] : memref<18x128xf32, #tpu.memory_space<vmem>>, vector<1x128xf32>
    %751 = vector.shape_cast %750 : vector<1x128xf32> to vector<128xf32>
    %752 = vector.shape_cast %751 : vector<128xf32> to vector<1x128xf32>
    %753 = vector.broadcast %752 : vector<1x128xf32> to vector<40x128xf32>
    %754 = arith.mulf %753, %743 : vector<40x128xf32>
    %755 = arith.addf %740, %754 : vector<40x128xf32>
    %c39_i32_295 = arith.constant 39 : i32
    %756 = tpu.dynamic_rotate %668 by %c39_i32_295 dim 0 : vector<40x128xf32>, i32 -> vector<40x128xf32>
    %c1_i32_296 = arith.constant 1 : i32
    %757 = tpu.dynamic_rotate %756 by %c1_i32_296 dim 1 : vector<40x128xf32>, i32 -> vector<40x128xf32>
    %cst_297 = arith.constant 0.000000e+00 : f32
    %758 = vector.broadcast %cst_297 : f32 to vector<40x128xf32>
    %759 = arith.select %5, %757, %758 : vector<40x128xi1>, vector<40x128xf32>
    %c6_298 = arith.constant 6 : index
    %c0_299 = arith.constant 0 : index
    %760 = vector.load %arg6[%c6_298, %c0_299] : memref<18x128xf32, #tpu.memory_space<vmem>>, vector<1x128xf32>
    %761 = vector.shape_cast %760 : vector<1x128xf32> to vector<128xf32>
    %762 = vector.shape_cast %761 : vector<128xf32> to vector<1x128xf32>
    %763 = vector.broadcast %762 : vector<1x128xf32> to vector<40x128xf32>
    %764 = arith.mulf %763, %759 : vector<40x128xf32>
    %765 = arith.addf %749, %764 : vector<40x128xf32>
    %c15_300 = arith.constant 15 : index
    %c0_301 = arith.constant 0 : index
    %766 = vector.load %arg6[%c15_300, %c0_301] : memref<18x128xf32, #tpu.memory_space<vmem>>, vector<1x128xf32>
    %767 = vector.shape_cast %766 : vector<1x128xf32> to vector<128xf32>
    %768 = vector.shape_cast %767 : vector<128xf32> to vector<1x128xf32>
    %769 = vector.broadcast %768 : vector<1x128xf32> to vector<40x128xf32>
    %770 = arith.mulf %769, %759 : vector<40x128xf32>
    %771 = arith.addf %755, %770 : vector<40x128xf32>
    %c7_302 = arith.constant 7 : index
    %c0_303 = arith.constant 0 : index
    %772 = vector.load %arg6[%c7_302, %c0_303] : memref<18x128xf32, #tpu.memory_space<vmem>>, vector<1x128xf32>
    %773 = vector.shape_cast %772 : vector<1x128xf32> to vector<128xf32>
    %774 = vector.shape_cast %773 : vector<128xf32> to vector<1x128xf32>
    %775 = vector.broadcast %774 : vector<1x128xf32> to vector<40x128xf32>
    %776 = arith.mulf %775, %756 : vector<40x128xf32>
    %777 = arith.addf %765, %776 : vector<40x128xf32>
    %c16_304 = arith.constant 16 : index
    %c0_305 = arith.constant 0 : index
    %778 = vector.load %arg6[%c16_304, %c0_305] : memref<18x128xf32, #tpu.memory_space<vmem>>, vector<1x128xf32>
    %779 = vector.shape_cast %778 : vector<1x128xf32> to vector<128xf32>
    %780 = vector.shape_cast %779 : vector<128xf32> to vector<1x128xf32>
    %781 = vector.broadcast %780 : vector<1x128xf32> to vector<40x128xf32>
    %782 = arith.mulf %781, %756 : vector<40x128xf32>
    %783 = arith.addf %771, %782 : vector<40x128xf32>
    %c127_i32_306 = arith.constant 127 : i32
    %784 = tpu.dynamic_rotate %756 by %c127_i32_306 dim 1 : vector<40x128xf32>, i32 -> vector<40x128xf32>
    %cst_307 = arith.constant 0.000000e+00 : f32
    %785 = vector.broadcast %cst_307 : f32 to vector<40x128xf32>
    %786 = arith.select %7, %784, %785 : vector<40x128xi1>, vector<40x128xf32>
    %c8_308 = arith.constant 8 : index
    %c0_309 = arith.constant 0 : index
    %787 = vector.load %arg6[%c8_308, %c0_309] : memref<18x128xf32, #tpu.memory_space<vmem>>, vector<1x128xf32>
    %788 = vector.shape_cast %787 : vector<1x128xf32> to vector<128xf32>
    %789 = vector.shape_cast %788 : vector<128xf32> to vector<1x128xf32>
    %790 = vector.broadcast %789 : vector<1x128xf32> to vector<40x128xf32>
    %791 = arith.mulf %790, %786 : vector<40x128xf32>
    %792 = arith.addf %777, %791 : vector<40x128xf32>
    %c17_310 = arith.constant 17 : index
    %c0_311 = arith.constant 0 : index
    %793 = vector.load %arg6[%c17_310, %c0_311] : memref<18x128xf32, #tpu.memory_space<vmem>>, vector<1x128xf32>
    %794 = vector.shape_cast %793 : vector<1x128xf32> to vector<128xf32>
    %795 = vector.shape_cast %794 : vector<128xf32> to vector<1x128xf32>
    %796 = vector.broadcast %795 : vector<1x128xf32> to vector<40x128xf32>
    %797 = arith.mulf %796, %786 : vector<40x128xf32>
    %798 = arith.addf %783, %797 : vector<40x128xf32>
    %c64_i32_312 = arith.constant 64 : i32
    %799 = tpu.dynamic_rotate %792 by %c64_i32_312 dim 1 : vector<40x128xf32>, i32 -> vector<40x128xf32>
    %800 = arith.addf %792, %799 : vector<40x128xf32>
    %c96_i32_313 = arith.constant 96 : i32
    %801 = tpu.dynamic_rotate %800 by %c96_i32_313 dim 1 : vector<40x128xf32>, i32 -> vector<40x128xf32>
    %802 = arith.addf %800, %801 : vector<40x128xf32>
    %c64_i32_314 = arith.constant 64 : i32
    %803 = tpu.dynamic_rotate %798 by %c64_i32_314 dim 1 : vector<40x128xf32>, i32 -> vector<40x128xf32>
    %804 = arith.addf %798, %803 : vector<40x128xf32>
    %c96_i32_315 = arith.constant 96 : i32
    %805 = tpu.dynamic_rotate %804 by %c96_i32_315 dim 1 : vector<40x128xf32>, i32 -> vector<40x128xf32>
    %806 = arith.addf %804, %805 : vector<40x128xf32>
    %c0_316 = arith.constant 0 : index
    %807 = memref.load %arg9[%c0_316] : memref<2xf32, #tpu.memory_space<smem>>
    %808 = vector.broadcast %807 : f32 to vector<40x128xf32>
    %809 = arith.addf %802, %808 : vector<40x128xf32>
    %cst_317 = arith.constant 0.000000e+00 : f32
    %810 = vector.broadcast %cst_317 : f32 to vector<40x128xf32>
    %811 = arith.maximumf %809, %810 : vector<40x128xf32>
    %c1_318 = arith.constant 1 : index
    %812 = memref.load %arg9[%c1_318] : memref<2xf32, #tpu.memory_space<smem>>
    %813 = vector.broadcast %812 : f32 to vector<40x128xf32>
    %814 = arith.addf %806, %813 : vector<40x128xf32>
    %cst_319 = arith.constant 0.000000e+00 : f32
    %815 = vector.broadcast %cst_319 : f32 to vector<40x128xf32>
    %816 = arith.maximumf %814, %815 : vector<40x128xf32>
    %817 = arith.andi %9, %11 : vector<40x128xi1>
    %c32_i32_320 = arith.constant 32 : i32
    %818 = vector.broadcast %c32_i32_320 : i32 to vector<40x128xi32>
    %819 = arith.cmpi slt, %0, %818 : vector<40x128xi32>
    %c32_i32_321 = arith.constant 32 : i32
    %820 = tpu.dynamic_rotate %816 by %c32_i32_321 dim 1 : vector<40x128xf32>, i32 -> vector<40x128xf32>
    %821 = arith.select %819, %811, %820 : vector<40x128xi1>, vector<40x128xf32>
    %cst_322 = arith.constant 0.000000e+00 : f32
    %822 = vector.broadcast %cst_322 : f32 to vector<40x128xf32>
    %823 = arith.select %817, %821, %822 : vector<40x128xi1>, vector<40x128xf32>
    %cst_323 = arith.constant 0.000000e+00 : f32
    %824 = vector.broadcast %cst_323 : f32 to vector<40x128xf32>
    %cst_324 = arith.constant 0.000000e+00 : f32
    %825 = vector.broadcast %cst_324 : f32 to vector<40x128xf32>
    %c1_i32_325 = arith.constant 1 : i32
    %826 = tpu.dynamic_rotate %823 by %c1_i32_325 dim 0 : vector<40x128xf32>, i32 -> vector<40x128xf32>
    %c1_i32_326 = arith.constant 1 : i32
    %827 = tpu.dynamic_rotate %826 by %c1_i32_326 dim 1 : vector<40x128xf32>, i32 -> vector<40x128xf32>
    %cst_327 = arith.constant 0.000000e+00 : f32
    %828 = vector.broadcast %cst_327 : f32 to vector<40x128xf32>
    %829 = arith.select %5, %827, %828 : vector<40x128xi1>, vector<40x128xf32>
    %c0_328 = arith.constant 0 : index
    %c0_329 = arith.constant 0 : index
    %830 = vector.load %arg7[%c0_328, %c0_329] : memref<18x128xf32, #tpu.memory_space<vmem>>, vector<1x128xf32>
    %831 = vector.shape_cast %830 : vector<1x128xf32> to vector<128xf32>
    %832 = vector.shape_cast %831 : vector<128xf32> to vector<1x128xf32>
    %833 = vector.broadcast %832 : vector<1x128xf32> to vector<40x128xf32>
    %834 = arith.mulf %833, %829 : vector<40x128xf32>
    %835 = arith.addf %824, %834 : vector<40x128xf32>
    %c9_330 = arith.constant 9 : index
    %c0_331 = arith.constant 0 : index
    %836 = vector.load %arg7[%c9_330, %c0_331] : memref<18x128xf32, #tpu.memory_space<vmem>>, vector<1x128xf32>
    %837 = vector.shape_cast %836 : vector<1x128xf32> to vector<128xf32>
    %838 = vector.shape_cast %837 : vector<128xf32> to vector<1x128xf32>
    %839 = vector.broadcast %838 : vector<1x128xf32> to vector<40x128xf32>
    %840 = arith.mulf %839, %829 : vector<40x128xf32>
    %841 = arith.addf %825, %840 : vector<40x128xf32>
    %c1_332 = arith.constant 1 : index
    %c0_333 = arith.constant 0 : index
    %842 = vector.load %arg7[%c1_332, %c0_333] : memref<18x128xf32, #tpu.memory_space<vmem>>, vector<1x128xf32>
    %843 = vector.shape_cast %842 : vector<1x128xf32> to vector<128xf32>
    %844 = vector.shape_cast %843 : vector<128xf32> to vector<1x128xf32>
    %845 = vector.broadcast %844 : vector<1x128xf32> to vector<40x128xf32>
    %846 = arith.mulf %845, %826 : vector<40x128xf32>
    %847 = arith.addf %835, %846 : vector<40x128xf32>
    %c10_334 = arith.constant 10 : index
    %c0_335 = arith.constant 0 : index
    %848 = vector.load %arg7[%c10_334, %c0_335] : memref<18x128xf32, #tpu.memory_space<vmem>>, vector<1x128xf32>
    %849 = vector.shape_cast %848 : vector<1x128xf32> to vector<128xf32>
    %850 = vector.shape_cast %849 : vector<128xf32> to vector<1x128xf32>
    %851 = vector.broadcast %850 : vector<1x128xf32> to vector<40x128xf32>
    %852 = arith.mulf %851, %826 : vector<40x128xf32>
    %853 = arith.addf %841, %852 : vector<40x128xf32>
    %c127_i32_336 = arith.constant 127 : i32
    %854 = tpu.dynamic_rotate %826 by %c127_i32_336 dim 1 : vector<40x128xf32>, i32 -> vector<40x128xf32>
    %cst_337 = arith.constant 0.000000e+00 : f32
    %855 = vector.broadcast %cst_337 : f32 to vector<40x128xf32>
    %856 = arith.select %7, %854, %855 : vector<40x128xi1>, vector<40x128xf32>
    %c2_338 = arith.constant 2 : index
    %c0_339 = arith.constant 0 : index
    %857 = vector.load %arg7[%c2_338, %c0_339] : memref<18x128xf32, #tpu.memory_space<vmem>>, vector<1x128xf32>
    %858 = vector.shape_cast %857 : vector<1x128xf32> to vector<128xf32>
    %859 = vector.shape_cast %858 : vector<128xf32> to vector<1x128xf32>
    %860 = vector.broadcast %859 : vector<1x128xf32> to vector<40x128xf32>
    %861 = arith.mulf %860, %856 : vector<40x128xf32>
    %862 = arith.addf %847, %861 : vector<40x128xf32>
    %c11_340 = arith.constant 11 : index
    %c0_341 = arith.constant 0 : index
    %863 = vector.load %arg7[%c11_340, %c0_341] : memref<18x128xf32, #tpu.memory_space<vmem>>, vector<1x128xf32>
    %864 = vector.shape_cast %863 : vector<1x128xf32> to vector<128xf32>
    %865 = vector.shape_cast %864 : vector<128xf32> to vector<1x128xf32>
    %866 = vector.broadcast %865 : vector<1x128xf32> to vector<40x128xf32>
    %867 = arith.mulf %866, %856 : vector<40x128xf32>
    %868 = arith.addf %853, %867 : vector<40x128xf32>
    %c1_i32_342 = arith.constant 1 : i32
    %869 = tpu.dynamic_rotate %823 by %c1_i32_342 dim 1 : vector<40x128xf32>, i32 -> vector<40x128xf32>
    %cst_343 = arith.constant 0.000000e+00 : f32
    %870 = vector.broadcast %cst_343 : f32 to vector<40x128xf32>
    %871 = arith.select %5, %869, %870 : vector<40x128xi1>, vector<40x128xf32>
    %c3_344 = arith.constant 3 : index
    %c0_345 = arith.constant 0 : index
    %872 = vector.load %arg7[%c3_344, %c0_345] : memref<18x128xf32, #tpu.memory_space<vmem>>, vector<1x128xf32>
    %873 = vector.shape_cast %872 : vector<1x128xf32> to vector<128xf32>
    %874 = vector.shape_cast %873 : vector<128xf32> to vector<1x128xf32>
    %875 = vector.broadcast %874 : vector<1x128xf32> to vector<40x128xf32>
    %876 = arith.mulf %875, %871 : vector<40x128xf32>
    %877 = arith.addf %862, %876 : vector<40x128xf32>
    %c12_346 = arith.constant 12 : index
    %c0_347 = arith.constant 0 : index
    %878 = vector.load %arg7[%c12_346, %c0_347] : memref<18x128xf32, #tpu.memory_space<vmem>>, vector<1x128xf32>
    %879 = vector.shape_cast %878 : vector<1x128xf32> to vector<128xf32>
    %880 = vector.shape_cast %879 : vector<128xf32> to vector<1x128xf32>
    %881 = vector.broadcast %880 : vector<1x128xf32> to vector<40x128xf32>
    %882 = arith.mulf %881, %871 : vector<40x128xf32>
    %883 = arith.addf %868, %882 : vector<40x128xf32>
    %c4_348 = arith.constant 4 : index
    %c0_349 = arith.constant 0 : index
    %884 = vector.load %arg7[%c4_348, %c0_349] : memref<18x128xf32, #tpu.memory_space<vmem>>, vector<1x128xf32>
    %885 = vector.shape_cast %884 : vector<1x128xf32> to vector<128xf32>
    %886 = vector.shape_cast %885 : vector<128xf32> to vector<1x128xf32>
    %887 = vector.broadcast %886 : vector<1x128xf32> to vector<40x128xf32>
    %888 = arith.mulf %887, %823 : vector<40x128xf32>
    %889 = arith.addf %877, %888 : vector<40x128xf32>
    %c13_350 = arith.constant 13 : index
    %c0_351 = arith.constant 0 : index
    %890 = vector.load %arg7[%c13_350, %c0_351] : memref<18x128xf32, #tpu.memory_space<vmem>>, vector<1x128xf32>
    %891 = vector.shape_cast %890 : vector<1x128xf32> to vector<128xf32>
    %892 = vector.shape_cast %891 : vector<128xf32> to vector<1x128xf32>
    %893 = vector.broadcast %892 : vector<1x128xf32> to vector<40x128xf32>
    %894 = arith.mulf %893, %823 : vector<40x128xf32>
    %895 = arith.addf %883, %894 : vector<40x128xf32>
    %c127_i32_352 = arith.constant 127 : i32
    %896 = tpu.dynamic_rotate %823 by %c127_i32_352 dim 1 : vector<40x128xf32>, i32 -> vector<40x128xf32>
    %cst_353 = arith.constant 0.000000e+00 : f32
    %897 = vector.broadcast %cst_353 : f32 to vector<40x128xf32>
    %898 = arith.select %7, %896, %897 : vector<40x128xi1>, vector<40x128xf32>
    %c5_354 = arith.constant 5 : index
    %c0_355 = arith.constant 0 : index
    %899 = vector.load %arg7[%c5_354, %c0_355] : memref<18x128xf32, #tpu.memory_space<vmem>>, vector<1x128xf32>
    %900 = vector.shape_cast %899 : vector<1x128xf32> to vector<128xf32>
    %901 = vector.shape_cast %900 : vector<128xf32> to vector<1x128xf32>
    %902 = vector.broadcast %901 : vector<1x128xf32> to vector<40x128xf32>
    %903 = arith.mulf %902, %898 : vector<40x128xf32>
    %904 = arith.addf %889, %903 : vector<40x128xf32>
    %c14_356 = arith.constant 14 : index
    %c0_357 = arith.constant 0 : index
    %905 = vector.load %arg7[%c14_356, %c0_357] : memref<18x128xf32, #tpu.memory_space<vmem>>, vector<1x128xf32>
    %906 = vector.shape_cast %905 : vector<1x128xf32> to vector<128xf32>
    %907 = vector.shape_cast %906 : vector<128xf32> to vector<1x128xf32>
    %908 = vector.broadcast %907 : vector<1x128xf32> to vector<40x128xf32>
    %909 = arith.mulf %908, %898 : vector<40x128xf32>
    %910 = arith.addf %895, %909 : vector<40x128xf32>
    %c39_i32_358 = arith.constant 39 : i32
    %911 = tpu.dynamic_rotate %823 by %c39_i32_358 dim 0 : vector<40x128xf32>, i32 -> vector<40x128xf32>
    %c1_i32_359 = arith.constant 1 : i32
    %912 = tpu.dynamic_rotate %911 by %c1_i32_359 dim 1 : vector<40x128xf32>, i32 -> vector<40x128xf32>
    %cst_360 = arith.constant 0.000000e+00 : f32
    %913 = vector.broadcast %cst_360 : f32 to vector<40x128xf32>
    %914 = arith.select %5, %912, %913 : vector<40x128xi1>, vector<40x128xf32>
    %c6_361 = arith.constant 6 : index
    %c0_362 = arith.constant 0 : index
    %915 = vector.load %arg7[%c6_361, %c0_362] : memref<18x128xf32, #tpu.memory_space<vmem>>, vector<1x128xf32>
    %916 = vector.shape_cast %915 : vector<1x128xf32> to vector<128xf32>
    %917 = vector.shape_cast %916 : vector<128xf32> to vector<1x128xf32>
    %918 = vector.broadcast %917 : vector<1x128xf32> to vector<40x128xf32>
    %919 = arith.mulf %918, %914 : vector<40x128xf32>
    %920 = arith.addf %904, %919 : vector<40x128xf32>
    %c15_363 = arith.constant 15 : index
    %c0_364 = arith.constant 0 : index
    %921 = vector.load %arg7[%c15_363, %c0_364] : memref<18x128xf32, #tpu.memory_space<vmem>>, vector<1x128xf32>
    %922 = vector.shape_cast %921 : vector<1x128xf32> to vector<128xf32>
    %923 = vector.shape_cast %922 : vector<128xf32> to vector<1x128xf32>
    %924 = vector.broadcast %923 : vector<1x128xf32> to vector<40x128xf32>
    %925 = arith.mulf %924, %914 : vector<40x128xf32>
    %926 = arith.addf %910, %925 : vector<40x128xf32>
    %c7_365 = arith.constant 7 : index
    %c0_366 = arith.constant 0 : index
    %927 = vector.load %arg7[%c7_365, %c0_366] : memref<18x128xf32, #tpu.memory_space<vmem>>, vector<1x128xf32>
    %928 = vector.shape_cast %927 : vector<1x128xf32> to vector<128xf32>
    %929 = vector.shape_cast %928 : vector<128xf32> to vector<1x128xf32>
    %930 = vector.broadcast %929 : vector<1x128xf32> to vector<40x128xf32>
    %931 = arith.mulf %930, %911 : vector<40x128xf32>
    %932 = arith.addf %920, %931 : vector<40x128xf32>
    %c16_367 = arith.constant 16 : index
    %c0_368 = arith.constant 0 : index
    %933 = vector.load %arg7[%c16_367, %c0_368] : memref<18x128xf32, #tpu.memory_space<vmem>>, vector<1x128xf32>
    %934 = vector.shape_cast %933 : vector<1x128xf32> to vector<128xf32>
    %935 = vector.shape_cast %934 : vector<128xf32> to vector<1x128xf32>
    %936 = vector.broadcast %935 : vector<1x128xf32> to vector<40x128xf32>
    %937 = arith.mulf %936, %911 : vector<40x128xf32>
    %938 = arith.addf %926, %937 : vector<40x128xf32>
    %c127_i32_369 = arith.constant 127 : i32
    %939 = tpu.dynamic_rotate %911 by %c127_i32_369 dim 1 : vector<40x128xf32>, i32 -> vector<40x128xf32>
    %cst_370 = arith.constant 0.000000e+00 : f32
    %940 = vector.broadcast %cst_370 : f32 to vector<40x128xf32>
    %941 = arith.select %7, %939, %940 : vector<40x128xi1>, vector<40x128xf32>
    %c8_371 = arith.constant 8 : index
    %c0_372 = arith.constant 0 : index
    %942 = vector.load %arg7[%c8_371, %c0_372] : memref<18x128xf32, #tpu.memory_space<vmem>>, vector<1x128xf32>
    %943 = vector.shape_cast %942 : vector<1x128xf32> to vector<128xf32>
    %944 = vector.shape_cast %943 : vector<128xf32> to vector<1x128xf32>
    %945 = vector.broadcast %944 : vector<1x128xf32> to vector<40x128xf32>
    %946 = arith.mulf %945, %941 : vector<40x128xf32>
    %947 = arith.addf %932, %946 : vector<40x128xf32>
    %c17_373 = arith.constant 17 : index
    %c0_374 = arith.constant 0 : index
    %948 = vector.load %arg7[%c17_373, %c0_374] : memref<18x128xf32, #tpu.memory_space<vmem>>, vector<1x128xf32>
    %949 = vector.shape_cast %948 : vector<1x128xf32> to vector<128xf32>
    %950 = vector.shape_cast %949 : vector<128xf32> to vector<1x128xf32>
    %951 = vector.broadcast %950 : vector<1x128xf32> to vector<40x128xf32>
    %952 = arith.mulf %951, %941 : vector<40x128xf32>
    %953 = arith.addf %938, %952 : vector<40x128xf32>
    %c64_i32_375 = arith.constant 64 : i32
    %954 = tpu.dynamic_rotate %947 by %c64_i32_375 dim 1 : vector<40x128xf32>, i32 -> vector<40x128xf32>
    %955 = arith.addf %947, %954 : vector<40x128xf32>
    %c96_i32_376 = arith.constant 96 : i32
    %956 = tpu.dynamic_rotate %955 by %c96_i32_376 dim 1 : vector<40x128xf32>, i32 -> vector<40x128xf32>
    %957 = arith.addf %955, %956 : vector<40x128xf32>
    %c64_i32_377 = arith.constant 64 : i32
    %958 = tpu.dynamic_rotate %953 by %c64_i32_377 dim 1 : vector<40x128xf32>, i32 -> vector<40x128xf32>
    %959 = arith.addf %953, %958 : vector<40x128xf32>
    %c96_i32_378 = arith.constant 96 : i32
    %960 = tpu.dynamic_rotate %959 by %c96_i32_378 dim 1 : vector<40x128xf32>, i32 -> vector<40x128xf32>
    %961 = arith.addf %959, %960 : vector<40x128xf32>
    %c0_379 = arith.constant 0 : index
    %962 = memref.load %arg10[%c0_379] : memref<2xf32, #tpu.memory_space<smem>>
    %963 = vector.broadcast %962 : f32 to vector<40x128xf32>
    %964 = arith.addf %957, %963 : vector<40x128xf32>
    %cst_380 = arith.constant 0.000000e+00 : f32
    %965 = vector.broadcast %cst_380 : f32 to vector<40x128xf32>
    %966 = arith.maximumf %964, %965 : vector<40x128xf32>
    %c1_381 = arith.constant 1 : index
    %967 = memref.load %arg10[%c1_381] : memref<2xf32, #tpu.memory_space<smem>>
    %968 = vector.broadcast %967 : f32 to vector<40x128xf32>
    %969 = arith.addf %961, %968 : vector<40x128xf32>
    %cst_382 = arith.constant 0.000000e+00 : f32
    %970 = vector.broadcast %cst_382 : f32 to vector<40x128xf32>
    %971 = arith.maximumf %969, %970 : vector<40x128xf32>
    %c32_i32_383 = arith.constant 32 : i32
    %972 = vector.broadcast %c32_i32_383 : i32 to vector<40x128xi32>
    %973 = arith.cmpi slt, %0, %972 : vector<40x128xi32>
    %c32_i32_384 = arith.constant 32 : i32
    %974 = tpu.dynamic_rotate %971 by %c32_i32_384 dim 1 : vector<40x128xf32>, i32 -> vector<40x128xf32>
    %975 = arith.select %973, %966, %974 : vector<40x128xi1>, vector<40x128xf32>
    %976 = vector.extract_strided_slice %975 {offsets = [0, 0], sizes = [32, 64], strides = [1, 1]} : vector<40x128xf32> to vector<32x64xf32>
    %c1_385 = arith.constant 1 : index
    %c0_386 = arith.constant 0 : index
    %c0_387 = arith.constant 0 : index
    %977 = vector.load %arg11[%c1_385, %c0_386, %c0_387] : memref<2x32x64xf32, #tpu.memory_space<vmem>>, vector<1x32x64xf32>
    %978 = vector.shape_cast %977 : vector<1x32x64xf32> to vector<32x64xf32>
    %979 = vector.shape_cast %976 : vector<32x64xf32> to vector<1x32x64xf32>
    tpu.vector_store %arg11[%c1_385, %c0_386, %c0_387], %979 {strides = array<i32>} : memref<2x32x64xf32, #tpu.memory_space<vmem>>, vector<1x32x64xf32>,
    return
  }
}

</mosaic_0001>

<bundles_post_ra>
// kernel: upsample_block_forward.1
= control target key start
LH: loop header
LB: loop body
LE: loop exit
PB: predicated region body
PF: predicated region fallthrough
CT: control target
= control target key end

     0   :  { %16 = vsyncpa [#allocation3], 0  ;;  %s6733_s0 = inlined_call_operand.vmem [shape: f32[2,64,16], index: 0, kind: input, shape index: {}]   ;;  %s6734_s1 = inlined_call_operand.vmem [shape: f32[2,40,128], index: 1, kind: input, shape index: {}]   ;;  %s6735_s2 = inlined_call_operand.vmem [shape: f32[2,128], index: 2, kind: input, shape index: {}]   ;;  %s6736_s3 = inlined_call_operand.vmem [shape: f32[40,16], index: 3, kind: input, shape index: {}]   ;;  %s6737_s4 = inlined_call_operand.vmem [shape: f32[16,32], index: 4, kind: input, shape index: {}]   ;;  %s6738_s5 = inlined_call_operand.vmem [shape: f32[18,128], index: 5, kind: input, shape index: {}]   ;;  %s6739_s6 = inlined_call_operand.vmem [shape: f32[18,128], index: 6, kind: input, shape index: {}]   ;;  %s6740_s7 = inlined_call_operand.vmem [shape: f32[18,128], index: 7, kind: input, shape index: {}]   ;;  %s6741_s8 = inlined_call_operand.vmem [shape: f32[2], index: 8, kind: input, shape index: {}]   ;;  %s6742_s9 = inlined_call_operand.vmem [shape: f32[2], index: 9, kind: input, shape index: {}]   ;;  %s6743_s10 = inlined_call_operand.vmem [shape: f32[2], index: 10, kind: input, shape index: {}]   ;;  %s6744_s11 = inlined_call_operand.vmem [shape: f32[2,32,64], index: 11, kind: output, shape index: {}]  }
   0x1   :  { %17 = vsyncpa [#allocation5], 0  ;;  %s50_s19 = sshll.u32 %s6742_s9, 4  ;;  %s40_s22 = sshll.u32 %s6741_s8, 4  ;;  %s51_s19 = int_to_ptr.vmem [resolvable:$true] %s50_s19  ;;  %s41_s22 = int_to_ptr.vmem [resolvable:$true] %s40_s22 }
   0x2   :  { %s3782_s23 = scalar_lea.vmem %s51_s19, 16  ;;  %p3787_p1 = scmp.lt.s32.totalorder %s51_s19, %s51_s19 }
   0x3   :  { %p3783_p0 = scmp.ne.s32.totalorder %s51_s19, %s3782_s23  ;;  %p3788_p2 = scmp.lt.s32.totalorder %s3782_s23, %s3782_s23 }
   0x5   :  { %p3789_p3 = por %p3788_p2, %p3787_p1 }
   0x7   :  { %p3790_p4 = pnand %p3789_p3, %p3783_p0 }
   0x9   :  { %3793 = shalt.err (!%p3790_p4)
}
   0xa   :  { %s3822_s24 = smov [#allocation4]   ;;  %s3794_s25 = scalar_lea.vmem %s41_s22, 16 }
   0xb   :  { %53 = dma.vmem_to_smem %s51_s19, 16, %s3822_s24, [#allocation5]  }
   0xc   :  { %p3795_p5 = scmp.ne.s32.totalorder %s41_s22, %s3794_s25  ;;  %p3799_p6 = scmp.lt.s32.totalorder %s41_s22, %s41_s22 }
   0xd   :  { %p3800_p7 = scmp.lt.s32.totalorder %s3794_s25, %s3794_s25 }
   0xf   :  { %p3801_p8 = por %p3800_p7, %p3799_p6 }
  0x11   :  { %p3802_p9 = pnand %p3801_p8, %p3795_p5 }
  0x13   :  { %3805 = shalt.err (!%p3802_p9)
}
  0x14   :  { %s3823_s9 = smov [#allocation2]   ;;  %s60_s27 = sshll.u32 %s6743_s10, 4  ;;  %s61_s27 = int_to_ptr.vmem [resolvable:$true] %s60_s27 }
  0x15   :  { %43 = dma.vmem_to_smem %s41_s22, 16, %s3823_s9, [#allocation3]  }
  0x16   :  { %s3806_s28 = scalar_lea.vmem %s61_s27, 16  ;;  %p3811_p11 = scmp.lt.s32.totalorder %s61_s27, %s61_s27 }
  0x17   :  { %p3807_p10 = scmp.ne.s32.totalorder %s61_s27, %s3806_s28  ;;  %p3812_p12 = scmp.lt.s32.totalorder %s3806_s28, %s3806_s28 }
  0x19   :  { %p3813_p13 = por %p3812_p12, %p3811_p11 }
  0x1b   :  { %p3814_p0 = pnand %p3813_p13, %p3807_p10 }
  0x1d   :  { %3817 = shalt.err (!%p3814_p0)
}
  0x1e   :  { %s3824_s29 = smov [#allocation6]  }
  0x1f   :  { %63 = dma.vmem_to_smem %s61_s27, 16, %s3824_s29, [#allocation5]  }
  0x20   :  { %3818 = dma.done.wait [#allocation3], 16  }
  0x21   :  { %3819 = vsyncadd [#allocation3], 4294967280 }
  0x22   :  { %3820 = dma.done.wait [#allocation5], 32  }
  0x23   :  { %3821 = vsyncadd [#allocation5], 4294967264 }
  0x24   :  { %73 = sfence }
  0x25   :  { %v99_v0 = vld [vmem:[%s6737_s4] sm:$0xff]  ;;  %v100_v1 = vld [vmem:[%s6737_s4 + $0x8] sm:$0xff]  ;;  %vm101_vm0 = vcmask 130048   ;;  %v93_v5 = vld [vmem:[%s6733_s0 + $0x10] sm:$0xff]  ;;  %v3825_v16 = vmov 0.0|0.0   ;;  %s3826_s27 = smov 32   ;;  %v74_v53 = vlaneseq }
  0x26   :  { %v91_v2 = vld [vmem:[%s6733_s0] sm:$0xff]  ;;  %v3911_v3 = vpack.c.bf16 %v100_v1, %v99_v0  ;;  %v92_v4 = vld [vmem:[%s6733_s0 + $0x8] sm:$0xff]  ;;  %v94_v6 = vld [vmem:[%s6733_s0 + $0x18] sm:$0xff]  ;;  %3739 = vmatprep.subr.bf16.mxu1 %v3825_v16  ;;  %vm3827_vm1 = vmmov 0   ;;  %v6745_v19 = vmov 0.0   ;;  %s3829_s28 = smov 64  }
  0x27   :  { %3659 = vmatprep.mubr.msk.f32.mxu0 %vm101_vm0, %v91_v2  ;;  %v95_v7 = vld [vmem:[%s6733_s0 + $0x20] sm:$0xff]  ;;  %v96_v8 = vld [vmem:[%s6733_s0 + $0x28] sm:$0xff]  ;;  %v97_v9 = vld [vmem:[%s6733_s0 + $0x30] sm:$0xff]  ;;  %3678 = vmatprep.mubr.msk.f32.mxu1 %vm3827_vm1, %v6745_v19  ;;  %s3830_s29 = smov 96   ;;  %vm255_vm2 = vcmask 261120   ;;  %vm258_vm3 = vcmask 523264  }
  0x28   :  { %3726 = vmatprep.subr.bf16.mxu0 %v3911_v3  ;;  %v98_v10 = vld [vmem:[%s6733_s0 + $0x38] sm:$0xff]  ;;  %vm261_vm4 = vcmask 785408   ;;  %v3960_v40 = vld [vmem:[%s6736_s3] sm:$0xff]  ;;  %v3965_v41 = vld [vmem:[%s6736_s3 + $0x8] sm:$0xff]  ;;  %v4035_v54 = vshrl.u32 %v74_v53, 7  ;;  %s816_s10 = sld [smem:[#allocation2]] }
  0x29   :  { %3728 = vmatpush3.bf16.msra.mxu0 %v3911_v3  ;;  %v3533_v42 = vld [vmem:[%s6733_s0 + $0x40] sm:$0xff]  ;;  %v3981_v43 = vld [vmem:[%s6736_s3 + $0x10] sm:$0xff]  ;;  %v3534_v44 = vld [vmem:[%s6733_s0 + $0x48] sm:$0xff]  ;;  %s1321_s23 = sld [smem:[#allocation4]] }
  0x2a   :  { %3729 = vmatprep.subr.bf16.mxu0 %v3825_v16  ;;  %v3535_v45 = vld [vmem:[%s6733_s0 + $0x50] sm:$0xff]  ;;  %v3999_v46 = vld [vmem:[%s6736_s3 + $0x18] sm:$0xff]  ;;  %v3537_v48 = vld [vmem:[%s6733_s0 + $0x60] sm:$0xff]  ;;  %6805 = vst [vmem:[#allocation9_spill] sm:$0xff] %v4035_v54  ;;  %vm379_vm5 = vcmp.lt.s32.totalorder %v4035_v54, 1  ;;  %vm630_vm6 = vcmp.lt.s32.totalorder %v4035_v54, 7 }
  0x2b   :  { %v3536_v47 = vld [vmem:[%s6733_s0 + $0x58] sm:$0xff]  ;;  %v4016_v49 = vld [vmem:[%s6736_s3 + $0x20] sm:$0xff]  ;;  %v3538_v50 = vld [vmem:[%s6733_s0 + $0x68] sm:$0xff]  ;;  %s3832_s3 = smov 127  }
  0x2c   :  { %3660 = vmatmul.mubr.msk.f32.vlgmr.msra.gmra.mrb[0].mxu0 %vm101_vm0, %v92_v4  ;;  %v3539_v51 = vld [vmem:[%s6733_s0 + $0x70] sm:$0xff]  ;;  %v3540_v52 = vld [vmem:[%s6733_s0 + $0x78] sm:$0xff]  ;;  %s3831_s0 = smov 1  }
  0x2d   :  { %3662 = vmatprep.mubr.msk.f32.mxu0 %vm101_vm0, %v93_v5 }
  0x30   :  { %3663 = vmatmul.mubr.msk.f32.gmra.mrb[2].mxu0 %vm101_vm0, %v94_v6 }
  0x31   :  { %3665 = vmatprep.mubr.msk.f32.mxu0 %vm101_vm0, %v95_v7 }
  0x34   :  { %3666 = vmatmul.mubr.msk.f32.gmra.mrb[4].mxu0 %vm101_vm0, %v96_v8 }
  0x35   :  { %3668 = vmatprep.mubr.msk.f32.mxu0 %vm101_vm0, %v97_v9 }
  0x38   :  { %3669 = vmatmul.mubr.msk.f32.gmra.mrb[6].mxu0 %vm101_vm0, %v98_v10 }
  0x39   :  { %3675 = vmatprep.mubr.msk.f32.mxu0 %vm3827_vm1, %v6745_v19 }
  0xff   :  { %v3661_v11 = vpop.f32.mrb[0].mxu0 }
 0x100   :  { %v192_v12 = vpop.f32.mrb[1].mxu0 }
 0x103   :  { %v3664_v13 = vpop.f32.mrb[2].mxu0 }
 0x104   :  { %v202_v14 = vpop.f32.mrb[3].mxu0 }
 0x105   :  { %v3752_v15 = vpack.i.bf16 %v3664_v13, %v202_v14 }
 0x107   :  { %3753 = vrot.lane.b32.xlu0 %v3752_v15, %s3826_s27  ;;  %v3667_v17 = vpop.f32.mrb[4].mxu0 }
 0x108   :  { %v212_v18 = vpop.f32.mrb[5].mxu0 }
 0x109   :  { %v3757_v20 = vpack.i.bf16 %v3667_v17, %v212_v18 }
 0x10b   :  { %3758 = vrot.lane.b32.xlu0 %v3757_v20, %s3829_s28  ;;  %v3670_v21 = vpop.f32.mrb[6].mxu0 }
 0x10c   :  { %v222_v22 = vpop.f32.mrb[7].mxu0 }
 0x10d   :  { %v3762_v23 = vpack.i.bf16 %v3670_v21, %v222_v22 }
 0x10f   :  { %3763 = vrot.lane.b32.xlu1 %v3762_v23, %s3830_s29 }
 0x179   :  { %v3754_v24 = vpop.permute.xlu0 %3753 }
 0x17a   :  { %v3756_v26 = vunpack.i.h.bf16 %v3754_v24  ;;  %v3755_v27 = vunpack.i.l.bf16 %v3754_v24 }
 0x17c   :  { %v257_v31 = vsel %vm255_vm2, %v3661_v11, %v3756_v26  ;;  %v256_v32 = vsel %vm255_vm2, %v192_v12, %v3755_v27 }
 0x17d   :  { %v3759_v25 = vpop.permute.xlu0 %3758 }
 0x17e   :  { %v3761_v28 = vunpack.i.h.bf16 %v3759_v25  ;;  %v3760_v29 = vunpack.i.l.bf16 %v3759_v25 }
 0x180   :  { %v260_v35 = vsel %vm258_vm3, %v257_v31, %v3761_v28  ;;  %v259_v36 = vsel %vm258_vm3, %v256_v32, %v3760_v29  ;;  %v4139_v31 = vand.u32 127, %v74_v53 }
 0x181   :  { %v3764_v30 = vpop.permute.xlu1 %3763 }
 0x182   :  { %v3766_v33 = vunpack.i.h.bf16 %v3764_v30  ;;  %v3765_v34 = vunpack.i.l.bf16 %v3764_v30  ;;  %6808 = vst [vmem:[#allocation12_spill] sm:$0xff] %v4139_v31 }
 0x184   :  { %v263_v37 = vsel %vm261_vm4, %v260_v35, %v3766_v33  ;;  %v262_v38 = vsel %vm261_vm4, %v259_v36, %v3765_v34  ;;  %v82_v33 = vand.u32 31, %v4139_v31 }
 0x185   :  { %v3730_v39 = vpack.c.bf16 %v263_v37, %v262_v38 }
 0x186   :  { %vm4142_vm7 = vcmp.ne.s32.totalorder %v82_v33, 0  ;;  %vm4171_vm8 = vcmp.ne.s32.totalorder %v82_v33, 31 }
 0x187   :  { %3731 = vmatpush3.bf16.msra.mxu0 %v3730_v39  ;;  %3740 = vmatpush3.bf16.msra.mxu1 %v3730_v39 }
 0x188   :  { %3733 = vmatprep.subr.bf16.mxu0 %v3911_v3  ;;  %3736 = vmatprep.subr.bf16.mxu1 %v3825_v16 }
 0x18a   :  { %3676 = vmatmul.mubr.msk.f32.vlgmr.msra.gmra.mrb[8].mxu0 %vm101_vm0, %v3960_v40  ;;  %3679 = vmatmul.mubr.msk.f32.vlgmr.msra.gmra.mrb[0].mxu1 %vm101_vm0, %v3965_v41 }
 0x18b   :  { %3735 = vmatpush3.bf16.msra.mxu0 %v3911_v3  ;;  %3681 = vmatprep.mubr.msk.f32.mxu1 %vm3827_vm1, %v6745_v19 }
 0x18c   :  { %3694 = vmatprep.mubr.msk.f32.mxu0 %vm101_vm0, %v3533_v42  ;;  %v4149_v42 = vld [vmem:[%s6738_s5] ss:$0 sm:$0xff] }
 0x18e   :  { %3682 = vmatmul.mubr.msk.f32.gmra.mrb[2].mxu1 %vm101_vm0, %v3981_v43  ;;  %3695 = vmatmul.mubr.msk.f32.vlgmr.msra.gmra.mrb[10].mxu0 %vm101_vm0, %v3534_v44 }
 0x18f   :  { %3684 = vmatprep.mubr.msk.f32.mxu1 %vm3827_vm1, %v6745_v19  ;;  %3697 = vmatprep.mubr.msk.f32.mxu0 %vm101_vm0, %v3535_v45 }
 0x192   :  { %3685 = vmatmul.mubr.msk.f32.gmra.mrb[4].mxu1 %vm101_vm0, %v3999_v46  ;;  %3698 = vmatmul.mubr.msk.f32.gmra.mrb[12].mxu0 %vm101_vm0, %v3536_v47 }
 0x193   :  { %3687 = vmatprep.mubr.msk.f32.mxu1 %vm3827_vm1, %v6745_v19  ;;  %3700 = vmatprep.mubr.msk.f32.mxu0 %vm101_vm0, %v3537_v48 }
 0x196   :  { %3688 = vmatmul.mubr.msk.f32.gmra.mrb[6].mxu1 %vm101_vm0, %v4016_v49  ;;  %3701 = vmatmul.mubr.msk.f32.gmra.mrb[14].mxu0 %vm101_vm0, %v3538_v50 }
 0x197   :  { %3703 = vmatprep.mubr.msk.f32.mxu0 %vm101_vm0, %v3539_v51  ;;  %3710 = vmatprep.mubr.msk.f32.mxu1 %vm3827_vm1, %v6745_v19 }
 0x19a   :  { %3704 = vmatmul.mubr.msk.f32.gmra.mrb[16].mxu0 %vm101_vm0, %v3540_v52  ;;  %v4158_v52 = vld [vmem:[%s6738_s5 + $0x1] ss:$0 sm:$0xff] }
 0x25d   :  { %v4037_v55 = vpop.f32.mrb[8].mxu0  ;;  %v4039_v56 = vpop.f32.mrb[0].mxu1 }
 0x25e   :  { %v3677_v57 = vpop.f32.mrb[9].mxu0  ;;  %v3680_v58 = vpop.f32.mrb[1].mxu1  ;;  %v374_v59 = vrot.slane %v4037_v55, 7  ;;  %v375_v60 = vrot.slane %v4039_v56, 7  ;;  %v625_v61 = vrot.slane %v4037_v55, 1  ;;  %v626_v62 = vrot.slane %v4039_v56, 1 }
 0x260   :  { %v4049_v63 = vsel %vm379_vm5, %v374_v59, %v375_v60  ;;  %v4053_v0 = vsel %vm630_vm6, %v625_v61, %v626_v62 }
 0x261   :  { %v4055_v1 = vpop.f32.mrb[10].mxu0  ;;  %v4057_v2 = vpop.f32.mrb[2].mxu1 }
 0x262   :  { %v4059_v3 = vpop.f32.mrb[11].mxu0  ;;  %v3683_v4 = vpop.f32.mrb[3].mxu1  ;;  %v376_v5 = vrot.slane %v4057_v2, 7  ;;  %v627_v6 = vrot.slane %v4057_v2, 1 }
 0x264   :  { %v4065_v7 = vsel %vm379_vm5, %v375_v60, %v376_v5  ;;  %v4069_v8 = vsel %vm630_vm6, %v626_v62, %v627_v6 }
 0x265   :  { %v3699_v9 = vpop.f32.mrb[12].mxu0  ;;  %v4071_v10 = vpop.f32.mrb[4].mxu1 }
 0x266   :  { %v1889_v11 = vpop.f32.mrb[13].mxu0  ;;  %v3686_v12 = vpop.f32.mrb[5].mxu1  ;;  %v377_v13 = vrot.slane %v4071_v10, 7  ;;  %v628_v14 = vrot.slane %v4071_v10, 1 }
 0x267   :  { %v3767_v15 = vpack.i.bf16 %v3699_v9, %v1889_v11  ;;  %v436_v12 = vmul.f32 %v4158_v52, %v4049_v63 }
 0x268   :  { %v4077_v16 = vsel %vm379_vm5, %v376_v5, %v377_v13  ;;  %v4081_v17 = vsel %vm630_vm6, %v627_v6, %v628_v14  ;;  %v4181_v13 = vld [vmem:[%s6738_s5 + $0x4] ss:$0 sm:$0xff] }
 0x269   :  { %6806 = vst [vmem:[#allocation10_spill] sm:$0xff] %v4081_v17  ;;  %v370_v18 = vpop.f32.mrb[6].mxu1  ;;  %3768 = vrot.lane.b32.xlu1 %v3767_v15, %s3826_s27  ;;  %v3702_v20 = vpop.f32.mrb[14].mxu0  ;;  %v4191_v15 = vld [vmem:[%s6738_s5 + $0x2] ss:$0 sm:$0xff] }
 0x26a   :  { %v378_v21 = vrot.slane %v370_v18, 7  ;;  %v629_v22 = vrot.slane %v370_v18, 1  ;;  %v1899_v23 = vpop.f32.mrb[15].mxu0  ;;  %v3689_v24 = vpop.f32.mrb[7].mxu1  ;;  %v4196_v18 = vld [vmem:[%s6738_s5 + $0xd] ss:$0 sm:$0xff] }
 0x26b   :  { %v3772_v25 = vpack.i.bf16 %v3702_v20, %v1899_v23  ;;  %v4201_v20 = vld [vmem:[%s6738_s5 + $0x9] ss:$0 sm:$0xff]  ;;  %v4222_v33 = vmul.f32 %v4196_v18, %v4037_v55 }
 0x26c   :  { %v4086_v26 = vsel %vm379_vm5, %v378_v21, %v374_v59  ;;  %v4090_v27 = vsel %vm630_vm6, %v628_v14, %v629_v22  ;;  %v4186_v14 = vld [vmem:[%s6738_s5 + $0xa] ss:$0 sm:$0xff] }
 0x26d   :  { %6807 = vst [vmem:[#allocation11_spill] sm:$0xff] %v4090_v27  ;;  %3773 = vrot.lane.b32.xlu0 %v3772_v25, %s3829_s28  ;;  %v3705_v28 = vpop.f32.mrb[16].mxu0  ;;  %v435_v60 = vmul.f32 %v4158_v52, %v4086_v26 }
 0x26e   :  { %v1909_v29 = vpop.f32.mrb[17].mxu0 }
 0x26f   :  { %v3777_v30 = vpack.i.bf16 %v3705_v28, %v1909_v29  ;;  %v4211_v28 = vmul.f32 %v4181_v13, %v4037_v55  ;;  %v451_v29 = vmul.f32 %v4186_v14, %v4049_v63 }
 0x271   :  { %3778 = vrot.lane.b32.xlu1 %v3777_v30, %s3830_s29  ;;  %385 = vrot.lane.b32.xlu0 %v4086_v26, %s3831_s0  ;;  %v437_v30 = vmul.f32 %v4158_v52, %v4065_v7 }
 0x275   :  { %387 = vrot.lane.b32.xlu1 %v4049_v63, %s3831_s0  ;;  %389 = vrot.lane.b32.xlu0 %v4065_v7, %s3831_s0 }
 0x279   :  { %460 = vrot.lane.b32.xlu0 %v4086_v26, %s3832_s3  ;;  %391 = vrot.lane.b32.xlu1 %v4077_v16, %s3831_s0 }
 0x27d   :  { %464 = vrot.lane.b32.xlu0 %v4065_v7, %s3832_s3  ;;  %462 = vrot.lane.b32.xlu1 %v4049_v63, %s3832_s3  ;;  %v452_v63 = vmul.f32 %v4186_v14, %v4065_v7 }
 0x281   :  { %505 = vrot.lane.b32.xlu0 %v4037_v55, %s3831_s0  ;;  %466 = vrot.lane.b32.xlu1 %v4077_v16, %s3832_s3 }
 0x285   :  { %509 = vrot.lane.b32.xlu0 %v4057_v2, %s3831_s0  ;;  %507 = vrot.lane.b32.xlu1 %v4039_v56, %s3831_s0 }
 0x289   :  { %580 = vrot.lane.b32.xlu0 %v4037_v55, %s3832_s3  ;;  %511 = vrot.lane.b32.xlu1 %v4071_v10, %s3831_s0 }
 0x28d   :  { %584 = vrot.lane.b32.xlu0 %v4057_v2, %s3832_s3  ;;  %582 = vrot.lane.b32.xlu1 %v4039_v56, %s3832_s3 }
 0x291   :  { %636 = vrot.lane.b32.xlu0 %v4053_v0, %s3831_s0  ;;  %586 = vrot.lane.b32.xlu1 %v4071_v10, %s3832_s3 }
 0x295   :  { %640 = vrot.lane.b32.xlu0 %v4081_v17, %s3831_s0  ;;  %638 = vrot.lane.b32.xlu1 %v4069_v8, %s3831_s0 }
 0x299   :  { %711 = vrot.lane.b32.xlu0 %v4053_v0, %s3832_s3  ;;  %642 = vrot.lane.b32.xlu1 %v4090_v27, %s3831_s0 }
 0x29d   :  { %713 = vrot.lane.b32.xlu1 %v4069_v8, %s3832_s3 }
 0x2db   :  { %v3769_v32 = vpop.permute.xlu1 %3768 }
 0x2dc   :  { %v3771_v34 = vunpack.i.h.bf16 %v3769_v32  ;;  %v3770_v36 = vunpack.i.l.bf16 %v3769_v32 }
 0x2de   :  { %v1943_v44 = vsel %vm255_vm2, %v4055_v1, %v3771_v34  ;;  %v1942_v48 = vsel %vm255_vm2, %v4059_v3, %v3770_v36  ;;  %v450_v34 = vmul.f32 %v4186_v14, %v4086_v26  ;;  %v4233_v36 = vld [vmem:[%s6738_s5 + $0xb] ss:$0 sm:$0xff] }
 0x2df   :  { %v3774_v35 = vpop.permute.xlu0 %3773 }
 0x2e0   :  { %v3776_v38 = vunpack.i.h.bf16 %v3774_v35  ;;  %v3775_v39 = vunpack.i.l.bf16 %v3774_v35 }
 0x2e2   :  { %v1945_v57 = vsel %vm258_vm3, %v1943_v44, %v3776_v38  ;;  %v1944_v58 = vsel %vm258_vm3, %v1942_v48, %v3775_v39  ;;  %v438_v44 = vmul.f32 %v4158_v52, %v4077_v16 }
 0x2e3   :  { %v3779_v45 = vpop.permute.xlu1 %3778  ;;  %v386_v47 = vpop.permute.xlu0 %385 }
 0x2e4   :  { %v3781_v50 = vunpack.i.h.bf16 %v3779_v45  ;;  %v3780_v51 = vunpack.i.l.bf16 %v3779_v45  ;;  %v395_v53 = vsel %vm4142_vm7, %v386_v47, 0.0  ;;  %v453_v47 = vmul.f32 %v4186_v14, %v4077_v16 }
 0x2e5   :  { %v405_v59 = vmul.f32 %v4149_v42, %v395_v53  ;;  %v4259_v16 = vmul.f32 %v4196_v18, %v4039_v56 }
 0x2e6   :  { %v1947_v61 = vsel %vm261_vm4, %v1945_v57, %v3781_v50  ;;  %v1946_v62 = vsel %vm261_vm4, %v1944_v58, %v3780_v51  ;;  %v4250_v50 = vmul.f32 %v4181_v13, %v4039_v56 }
 0x2e7   :  { %v440_v1 = vadd.f32 %v435_v60, %v405_v59  ;;  %v388_v3 = vpop.permute.xlu1 %387  ;;  %v390_v4 = vpop.permute.xlu0 %389  ;;  %v3737_v5 = vpack.c.bf16 %v1947_v61, %v1946_v62  ;;  %v4266_v61 = vld [vmem:[%s6738_s5 + $0x3] ss:$0 sm:$0xff]  ;;  %v4271_v62 = vld [vmem:[%s6738_s5 + $0xc] ss:$0 sm:$0xff] }
 0x2e8   :  { %v396_v6 = vsel %vm4142_vm7, %v388_v3, 0.0  ;;  %v397_v22 = vsel %vm4142_vm7, %v390_v4, 0.0 }
 0x2e9   :  { %v406_v11 = vmul.f32 %v4149_v42, %v396_v6  ;;  %3738 = vmatpush3.bf16.msra.mxu1 %v3737_v5  ;;  %v407_v35 = vmul.f32 %v4149_v42, %v397_v22  ;;  %v422_v38 = vmul.f32 %v4201_v20, %v397_v22  ;;  %v421_v51 = vmul.f32 %v4201_v20, %v396_v6 }
 0x2eb   :  { %v441_v21 = vadd.f32 %v436_v12, %v406_v11  ;;  %v461_v23 = vpop.permute.xlu0 %460  ;;  %v392_v24 = vpop.permute.xlu1 %391  ;;  %v442_v59 = vadd.f32 %v437_v30, %v407_v35 }
 0x2ec   :  { %v470_v25 = vsel %vm4171_vm8, %v461_v23, 0.0  ;;  %3711 = vmatmul.mubr.msk.f32.vlgmr.msra.gmra.mrb[8].mxu1 %vm101_vm0, %v3960_v40  ;;  %v420_v40 = vmul.f32 %v4201_v20, %v395_v53  ;;  %v398_v55 = vsel %vm4142_vm7, %v392_v24, 0.0  ;;  %v557_v23 = vmul.f32 %v4181_v13, %v4057_v2 }
 0x2ed   :  { %v480_v32 = vmul.f32 %v4191_v15, %v470_v25  ;;  %3713 = vmatprep.mubr.msk.f32.mxu1 %vm3827_vm1, %v6745_v19  ;;  %v495_v53 = vmul.f32 %v4233_v36, %v470_v25  ;;  %v423_v60 = vmul.f32 %v4201_v20, %v398_v55  ;;  %v456_v24 = vadd.f32 %v451_v29, %v421_v51 }
 0x2ee   :  { %v455_v58 = vadd.f32 %v450_v34, %v420_v40 }
 0x2ef   :  { %v485_v39 = vadd.f32 %v480_v32, %v440_v1  ;;  %v465_v26 = vpop.permute.xlu0 %464  ;;  %v463_v45 = vpop.permute.xlu1 %462  ;;  %v457_v1 = vadd.f32 %v452_v63, %v422_v38  ;;  %v458_v40 = vadd.f32 %v453_v47, %v423_v60 }
 0x2f0   :  { %v472_v7 = vsel %vm4171_vm8, %v465_v26, 0.0  ;;  %v471_v48 = vsel %vm4171_vm8, %v463_v45, 0.0  ;;  %3714 = vmatmul.mubr.msk.f32.gmra.mrb[10].mxu1 %vm101_vm0, %v3965_v41  ;;  %v408_v41 = vmul.f32 %v4149_v42, %v398_v55  ;;  %v500_v25 = vadd.f32 %v495_v53, %v455_v58 }
 0x2f1   :  { %v481_v57 = vmul.f32 %v4191_v15, %v471_v48  ;;  %3716 = vmatprep.mubr.msk.f32.mxu1 %vm3827_vm1, %v6745_v19  ;;  %v482_v56 = vmul.f32 %v4191_v15, %v472_v7  ;;  %v497_v3 = vmul.f32 %v4233_v36, %v472_v7  ;;  %v496_v11 = vmul.f32 %v4233_v36, %v471_v48 }
 0x2f2   :  { %v443_v32 = vadd.f32 %v438_v44, %v408_v41  ;;  %v572_v44 = vmul.f32 %v4196_v18, %v4057_v2 }
 0x2f3   :  { %v486_v4 = vadd.f32 %v481_v57, %v441_v21  ;;  %v506_v5 = vpop.permute.xlu0 %505  ;;  %v467_v6 = vpop.permute.xlu1 %466  ;;  %v487_v63 = vadd.f32 %v482_v56, %v442_v59  ;;  %v501_v45 = vadd.f32 %v496_v11, %v456_v24  ;;  %v4327_v24 = vld [vmem:[%s6738_s5 + $0xe] ss:$0 sm:$0xff] }
 0x2f4   :  { %v515_v12 = vsel %vm4142_vm7, %v506_v5, 0.0  ;;  %v473_v22 = vsel %vm4171_vm8, %v467_v6, 0.0  ;;  %3717 = vmatmul.mubr.msk.f32.gmra.mrb[12].mxu1 %vm101_vm0, %v3981_v43  ;;  %v502_v43 = vadd.f32 %v497_v3, %v457_v1 }
 0x2f5   :  { %v525_v21 = vmul.f32 %v4266_v61, %v515_v12  ;;  %v540_v30 = vmul.f32 %v4271_v62, %v515_v12  ;;  %3719 = vmatprep.mubr.msk.f32.mxu1 %vm3827_vm1, %v6745_v19  ;;  %v483_v34 = vmul.f32 %v4191_v15, %v473_v22  ;;  %v498_v35 = vmul.f32 %v4233_v36, %v473_v22 }
 0x2f6   :  { %v573_v22 = vmul.f32 %v4196_v18, %v4071_v10 }
 0x2f7   :  { %v530_v38 = vadd.f32 %v525_v21, %v485_v39  ;;  %v545_v55 = vadd.f32 %v540_v30, %v500_v25  ;;  %v510_v26 = vpop.permute.xlu0 %509  ;;  %v508_v29 = vpop.permute.xlu1 %507  ;;  %v488_v57 = vadd.f32 %v483_v34, %v443_v32  ;;  %v503_v58 = vadd.f32 %v498_v35, %v458_v40 }
 0x2f8   :  { %v517_v7 = vsel %vm4142_vm7, %v510_v26, 0.0  ;;  %v516_v48 = vsel %vm4142_vm7, %v508_v29, 0.0  ;;  %3720 = vmatmul.mubr.msk.f32.gmra.mrb[14].mxu1 %vm101_vm0, %v3999_v46  ;;  %v4307_v46 = vld [vmem:[%s6738_s5 + $0x5] ss:$0 sm:$0xff] }
 0x2f9   :  { %v527_v47 = vmul.f32 %v4266_v61, %v517_v7  ;;  %v542_v39 = vmul.f32 %v4271_v62, %v517_v7  ;;  %v526_v51 = vmul.f32 %v4266_v61, %v516_v48  ;;  %v541_v53 = vmul.f32 %v4271_v62, %v516_v48  ;;  %3722 = vmatprep.mubr.msk.f32.mxu1 %vm3827_vm1, %v6745_v19  ;;  %v4362_v48 = vld [vmem:[%s6738_s5 + $0x7] ss:$0 sm:$0xff] }
 0x2fa   :  { %v560_v2 = vadd.f32 %v4211_v28, %v530_v38  ;;  %v575_v59 = vadd.f32 %v4222_v33, %v545_v55  ;;  %v558_v28 = vmul.f32 %v4181_v13, %v4071_v10  ;;  %v4344_v38 = vld [vmem:[%s6738_s5 + $0x6] ss:$0 sm:$0xff] }
 0x2fb   :  { %v532_v41 = vadd.f32 %v527_v47, %v487_v63  ;;  %v547_v60 = vadd.f32 %v542_v39, %v502_v43  ;;  %v531_v1 = vadd.f32 %v526_v51, %v486_v4  ;;  %v546_v56 = vadd.f32 %v541_v53, %v501_v45  ;;  %v581_v3 = vpop.permute.xlu0 %580  ;;  %v512_v5 = vpop.permute.xlu1 %511 }
 0x2fc   :  { %v590_v6 = vsel %vm4171_vm8, %v581_v3, 0.0  ;;  %v518_v11 = vsel %vm4142_vm7, %v512_v5, 0.0  ;;  %3723 = vmatmul.mubr.msk.f32.gmra.mrb[16].mxu1 %vm101_vm0, %v4016_v49 }
 0x2fd   :  { %v600_v33 = vmul.f32 %v4307_v46, %v590_v6  ;;  %v528_v12 = vmul.f32 %v4266_v61, %v518_v11  ;;  %v543_v4 = vmul.f32 %v4271_v62, %v518_v11  ;;  %v4329_v25 = vadd.f32 %v557_v23, %v532_v41 }
 0x2fe   :  { %v4331_v49 = vadd.f32 %v572_v44, %v547_v60  ;;  %v561_v21 = vadd.f32 %v4250_v50, %v531_v1  ;;  %v576_v30 = vadd.f32 %v4259_v16, %v546_v56  ;;  %v615_v43 = vmul.f32 %v4327_v24, %v590_v6  ;;  %v4349_v50 = vld [vmem:[%s6738_s5 + $0xf] ss:$0 sm:$0xff]  ;;  %v4367_v44 = vld [vmem:[%s6738_s5 + $0x10] ss:$0 sm:$0xff] }
 0x2ff   :  { %6813 = vst [vmem:[#allocation13_spill] sm:$0xff] %v4329_v25  ;;  %v605_v32 = vadd.f32 %v600_v33, %v560_v2  ;;  %v533_v40 = vadd.f32 %v528_v12, %v488_v57  ;;  %v548_v34 = vadd.f32 %v543_v4, %v503_v58  ;;  %v4335_v35 = vpop.permute.xlu0 %584  ;;  %v583_v63 = vpop.permute.xlu1 %582  ;;  %v686_v60 = vmul.f32 %v4362_v48, %v4053_v0 }
 0x300   :  { %v591_v10 = vsel %vm4171_vm8, %v583_v63, 0.0  ;;  %v620_v47 = vadd.f32 %v615_v43, %v575_v59  ;;  %v701_v1 = vmul.f32 %v4367_v44, %v4053_v0  ;;  %v687_v6 = vmul.f32 %v4362_v48, %v4069_v8 }
 0x301   :  { %v601_v23 = vmul.f32 %v4307_v46, %v591_v10  ;;  %v4351_v16 = vadd.f32 %v558_v28, %v533_v40  ;;  %v4353_v55 = vadd.f32 %v573_v22, %v548_v34  ;;  %v616_v39 = vmul.f32 %v4327_v24, %v591_v10  ;;  %v4389_v28 = vld [vmem:[%s6738_s5 + $0x8] ss:$0 sm:$0xff] }
 0x302   :  { %v702_v11 = vmul.f32 %v4367_v44, %v4069_v8 }
 0x303   :  { %v606_v26 = vadd.f32 %v601_v23, %v561_v21  ;;  %v637_v29 = vpop.permute.xlu0 %636  ;;  %v4355_v45 = vpop.permute.xlu1 %586  ;;  %v621_v56 = vadd.f32 %v616_v39, %v576_v30 }
 0x304   :  { %v646_v7 = vsel %vm4142_vm7, %v637_v29, 0.0 }
 0x305   :  { %v656_v51 = vmul.f32 %v4344_v38, %v646_v7  ;;  %v671_v53 = vmul.f32 %v4349_v50, %v646_v7 }
 0x307   :  { %v661_v57 = vadd.f32 %v656_v51, %v605_v32  ;;  %v676_v58 = vadd.f32 %v671_v53, %v620_v47  ;;  %v4372_v2 = vpop.permute.xlu0 %640  ;;  %v639_v41 = vpop.permute.xlu1 %638 }
 0x308   :  { %v647_v59 = vsel %vm4142_vm7, %v639_v41, 0.0 }
 0x309   :  { %v657_v3 = vmul.f32 %v4344_v38, %v647_v59  ;;  %v672_v5 = vmul.f32 %v4349_v50, %v647_v59  ;;  %v4391_v0 = vadd.f32 %v701_v1, %v676_v58  ;;  %v691_v33 = vadd.f32 %v686_v60, %v661_v57 }
 0x30b   :  { %v662_v12 = vadd.f32 %v657_v3, %v606_v26  ;;  %v677_v4 = vadd.f32 %v672_v5, %v621_v56  ;;  %v712_v22 = vpop.permute.xlu0 %711  ;;  %v4393_v21 = vpop.permute.xlu1 %642 }
 0x30c   :  { %v721_v30 = vsel %vm4171_vm8, %v712_v22, 0.0 }
 0x30d   :  { %v731_v32 = vmul.f32 %v4389_v28, %v721_v30  ;;  %v4398_v40 = vadd.f32 %v702_v11, %v677_v4  ;;  %v692_v8 = vadd.f32 %v687_v6, %v662_v12 }
 0x30f   :  { %v714_v34 = vpop.permute.xlu1 %713  ;;  %v4402_v10 = vadd.f32 %v731_v32, %v691_v33 }
 0x310   :  { %v722_v63 = vsel %vm4171_vm8, %v714_v34, 0.0 }
 0x311   :  { %6814 = vst [vmem:[#allocation14_spill] sm:$0xff] %v4402_v10  ;;  %v732_v43 = vmul.f32 %v4389_v28, %v722_v63 }
 0x313   :  { %v4405_v23 = vadd.f32 %v732_v43, %v692_v8 }
 0x315   :  { %6815 = vst [vmem:[#allocation15_spill] sm:$0xff] %v4405_v23 }
 0x3bf   :  { %v4407_v26 = vpop.f32.mrb[8].mxu1 }
 0x3c0   :  { %2188 = vrot.lane.b32.xlu0 %v4407_v26, %s3831_s0  ;;  %v3712_v29 = vpop.f32.mrb[9].mxu1  ;;  %v2308_v47 = vrot.slane %v4407_v26, 1  ;;  %v2058_v53 = vrot.slane %v4407_v26, 7 }
 0x3c3   :  { %v4411_v7 = vpop.f32.mrb[10].mxu1 }
 0x3c4   :  { %2263 = vrot.lane.b32.xlu0 %v4407_v26, %s3832_s3  ;;  %2190 = vrot.lane.b32.xlu1 %v4411_v7, %s3831_s0  ;;  %v2309_v39 = vrot.slane %v4411_v7, 1  ;;  %v3715_v51 = vpop.f32.mrb[11].mxu1  ;;  %v2059_v57 = vrot.slane %v4411_v7, 7 }
 0x3c6   :  { %v4423_v58 = vsel %vm630_vm6, %v2308_v47, %v2309_v39  ;;  %v4427_v41 = vsel %vm379_vm5, %v2058_v53, %v2059_v57 }
 0x3c7   :  { %v4429_v60 = vpop.f32.mrb[12].mxu1 }
 0x3c8   :  { %2318 = vrot.lane.b32.xlu0 %v4423_v58, %s3831_s0  ;;  %2265 = vrot.lane.b32.xlu1 %v4411_v7, %s3832_s3  ;;  %v3718_v1 = vpop.f32.mrb[13].mxu1  ;;  %v2060_v59 = vrot.slane %v4429_v60, 7  ;;  %v2310_v56 = vrot.slane %v4429_v60, 1  ;;  %v2240_v10 = vmul.f32 %v4181_v13, %v4429_v60 }
 0x3ca   :  { %v4439_v3 = vsel %vm379_vm5, %v2059_v57, %v2060_v59  ;;  %v4443_v5 = vsel %vm630_vm6, %v2309_v39, %v2310_v56  ;;  %v4500_v39 = vld [vmem:[%s6738_s5 + $0x11] ss:$0 sm:$0xff]  ;;  %s3493_s5 = sld [smem:[#allocation2 + $0x1]] }
 0x3cb   :  { %v4445_v6 = vpop.f32.mrb[14].mxu1  ;;  %v746_v51 = vmul.f32 %v4500_v39, %v721_v30  ;;  %v592_v30 = vsel %vm4171_vm8, %v4335_v35, 0.0  ;;  %v2384_v23 = vmul.f32 %v4367_v44, %v4443_v5 }
 0x3cc   :  { %2192 = vrot.lane.b32.xlu0 %v4429_v60, %s3831_s0  ;;  %2070 = vrot.lane.b32.xlu1 %v4427_v41, %s3831_s0  ;;  %v3721_v11 = vpop.f32.mrb[15].mxu1  ;;  %v2311_v33 = vrot.slane %v4445_v6, 1  ;;  %v2061_v12 = vrot.slane %v4445_v6, 7  ;;  %v4564_v31 = vmul.f32 %v4307_v46, %v592_v30 }
 0x3cd   :  { %v4513_v57 = vadd.f32 %v746_v51, %v4391_v0  ;;  %v593_v0 = vsel %vm4171_vm8, %v4355_v45, 0.0  ;;  %v4542_v11 = vsel %vm4142_vm7, %v4393_v21, 0.0  ;;  %v703_v21 = vmul.f32 %v4367_v44, %v4081_v17 }
 0x3ce   :  { %v4455_v4 = vsel %vm630_vm6, %v2310_v56, %v2311_v33  ;;  %v4459_v22 = vsel %vm379_vm5, %v2060_v59, %v2061_v12  ;;  %v617_v59 = vmul.f32 %v4327_v24, %v592_v30  ;;  %v618_v56 = vmul.f32 %v4327_v24, %v593_v0  ;;  %6819 = vst [vmem:[#allocation19_spill] sm:$0xff] %v4542_v11 }
 0x3cf   :  { %v2054_v32 = vpop.f32.mrb[16].mxu1  ;;  %6816 = vst [vmem:[#allocation16_spill] sm:$0xff] %v4513_v57  ;;  %v603_v51 = vmul.f32 %v4307_v46, %v593_v0  ;;  %6820 = vst [vmem:[#allocation20_spill] sm:$0xff] %v4564_v31  ;;  %v4581_v30 = vmul.f32 %v4181_v13, %v4407_v26 }
 0x3d0   :  { %v2062_v8 = vrot.slane %v2054_v32, 7  ;;  %v2312_v34 = vrot.slane %v2054_v32, 1  ;;  %2267 = vrot.lane.b32.xlu0 %v4429_v60, %s3832_s3  ;;  %2145 = vrot.lane.b32.xlu1 %v4427_v41, %s3832_s3  ;;  %v3724_v43 = vpop.f32.mrb[17].mxu1  ;;  %v622_v45 = vadd.f32 %v617_v59, %v4331_v49  ;;  %v623_v12 = vadd.f32 %v618_v56, %v4353_v55 }
 0x3d1   :  { %v704_v43 = vmul.f32 %v4367_v44, %v4090_v27 }
 0x3d2   :  { %v4467_v29 = vsel %vm379_vm5, %v2062_v8, %v2058_v53  ;;  %v4471_v47 = vsel %vm630_vm6, %v2311_v33, %v2312_v34  ;;  %v747_v53 = vmul.f32 %v4500_v39, %v722_v63  ;;  %v674_v8 = vmul.f32 %v4349_v50, %v4542_v11 }
 0x3d4   :  { %2072 = vrot.lane.b32.xlu0 %v4439_v3, %s3831_s0  ;;  %2320 = vrot.lane.b32.xlu1 %v4443_v5, %s3831_s0  ;;  %v4520_v1 = vadd.f32 %v747_v53, %v4398_v40  ;;  %v4537_v40 = vsel %vm4142_vm7, %v4372_v2, 0.0  ;;  %v679_v53 = vadd.f32 %v674_v8, %v623_v12  ;;  %v2119_v12 = vmul.f32 %v4158_v52, %v4427_v41 }
 0x3d5   :  { %6818 = vst [vmem:[#allocation18_spill] sm:$0xff] %v4537_v40  ;;  %v673_v32 = vmul.f32 %v4349_v50, %v4537_v40 }
 0x3d6   :  { %6817 = vst [vmem:[#allocation17_spill] sm:$0xff] %v4520_v1 }
 0x3d7   :  { %v678_v49 = vadd.f32 %v673_v32, %v622_v45  ;;  %v2134_v32 = vmul.f32 %v4186_v14, %v4427_v41 }
 0x3d8   :  { %2147 = vrot.lane.b32.xlu0 %v4439_v3, %s3832_s3  ;;  %2194 = vrot.lane.b32.xlu1 %v4445_v6, %s3831_s0 }
 0x3d9   :  { %v4571_v0 = vadd.f32 %v703_v21, %v678_v49  ;;  %v2239_v21 = vmul.f32 %v4181_v13, %v4411_v7 }
 0x3dc   :  { %2322 = vrot.lane.b32.xlu0 %v4455_v4, %s3831_s0  ;;  %2269 = vrot.lane.b32.xlu1 %v4445_v6, %s3832_s3 }
 0x3e0   :  { %2068 = vrot.lane.b32.xlu0 %v4467_v29, %s3831_s0  ;;  %2074 = vrot.lane.b32.xlu1 %v4459_v22, %s3831_s0 }
 0x3e4   :  { %2143 = vrot.lane.b32.xlu0 %v4467_v29, %s3832_s3  ;;  %2149 = vrot.lane.b32.xlu1 %v4459_v22, %s3832_s3 }
 0x3e8   :  { %715 = vrot.lane.b32.xlu0 %v4081_v17, %s3832_s3  ;;  %717 = vrot.lane.b32.xlu1 %v4090_v27, %s3832_s3  ;;  %v2120_v17 = vmul.f32 %v4158_v52, %v4439_v3 }
 0x3ec   :  { %2393 = vrot.lane.b32.xlu0 %v4423_v58, %s3832_s3  ;;  %2395 = vrot.lane.b32.xlu1 %v4443_v5, %s3832_s3 }
 0x3f0   :  { %2397 = vrot.lane.b32.xlu0 %v4455_v4, %s3832_s3  ;;  %2324 = vrot.lane.b32.xlu1 %v4471_v47, %s3831_s0 }
 0x3f4   :  { %2399 = vrot.lane.b32.xlu1 %v4471_v47, %s3832_s3  ;;  %786 = vrot.lane.b32.xlu0 %v4513_v57, %s3829_s28  ;;  %v4569_v57 = vadd.f32 %v704_v43, %v679_v53  ;;  %v4591_v43 = vmul.f32 %v4196_v18, %v4407_v26 }
 0x3f8   :  { %788 = vrot.lane.b32.xlu1 %v4520_v1, %s3829_s28  ;;  %v4567_v1 = vadd.f32 %v603_v51, %v4351_v16 }
 0x3fa   :  { %6821 = vst [vmem:[#allocation21_spill] sm:$0xff] %v4567_v1 }
 0x432   :  { %v4530_v63 = vpop.permute.xlu0 %2188 }
 0x436   :  { %v4544_v35 = vpop.permute.xlu0 %2263  ;;  %v2191_v33 = vpop.permute.xlu1 %2190 }
 0x437   :  { %v2199_v45 = vsel %vm4142_vm7, %v2191_v33, 0.0  ;;  %v2254_v33 = vmul.f32 %v4196_v18, %v4411_v7  ;;  %v2255_v7 = vmul.f32 %v4196_v18, %v4429_v60 }
 0x438   :  { %v2224_v26 = vmul.f32 %v4271_v62, %v2199_v45 }
 0x43a   :  { %v4552_v2 = vpop.permute.xlu0 %2318  ;;  %v2266_v34 = vpop.permute.xlu1 %2265 }
 0x43e   :  { %v2193_v55 = vpop.permute.xlu0 %2192  ;;  %v2071_v59 = vpop.permute.xlu1 %2070 }
 0x43f   :  { %v2079_v56 = vsel %vm4142_vm7, %v2071_v59, 0.0 }
 0x440   :  { %v2089_v19 = vmul.f32 %v4149_v42, %v2079_v56  ;;  %v2104_v54 = vmul.f32 %v4201_v20, %v2079_v56  ;;  %v2369_v56 = vmul.f32 %v4362_v48, %v4443_v5  ;;  %v2135_v5 = vmul.f32 %v4186_v14, %v4439_v3 }
 0x442   :  { %v2268_v8 = vpop.permute.xlu0 %2267  ;;  %v2146_v59 = vpop.permute.xlu1 %2145  ;;  %v2124_v41 = vadd.f32 %v2119_v12, %v2089_v19  ;;  %v2139_v51 = vadd.f32 %v2134_v32, %v2104_v54  ;;  %v2274_v19 = vsel %vm4171_vm8, %v2266_v34, 0.0 }
 0x443   :  { %v2154_v16 = vsel %vm4171_vm8, %v2146_v59, 0.0  ;;  %v2209_v59 = vmul.f32 %v4266_v61, %v2199_v45 }
 0x444   :  { %v2164_v49 = vmul.f32 %v4191_v15, %v2154_v16  ;;  %v2179_v53 = vmul.f32 %v4233_v36, %v2154_v16 }
 0x446   :  { %v2169_v54 = vadd.f32 %v2164_v49, %v2124_v41  ;;  %v2184_v12 = vadd.f32 %v2179_v53, %v2139_v51  ;;  %v2073_v32 = vpop.permute.xlu0 %2072  ;;  %v2321_v16 = vpop.permute.xlu1 %2320  ;;  %v2284_v51 = vmul.f32 %v4307_v46, %v2274_v19  ;;  %v2299_v49 = vmul.f32 %v4327_v24, %v2274_v19 }
 0x447   :  { %v2080_v1 = vsel %vm4142_vm7, %v2073_v32, 0.0  ;;  %v2329_v60 = vsel %vm4142_vm7, %v2321_v16, 0.0  ;;  %v4621_v53 = vmul.f32 %v4181_v13, %v4445_v6  ;;  %v2200_v32 = vsel %vm4142_vm7, %v2193_v55, 0.0 }
 0x448   :  { %v2214_v45 = vadd.f32 %v2209_v59, %v2169_v54  ;;  %v2229_v27 = vadd.f32 %v2224_v26, %v2184_v12  ;;  %v2090_v34 = vmul.f32 %v4149_v42, %v2080_v1  ;;  %v2105_v41 = vmul.f32 %v4201_v20, %v2080_v1 }
 0x449   :  { %v2339_v54 = vmul.f32 %v4344_v38, %v2329_v60  ;;  %v2354_v19 = vmul.f32 %v4349_v50, %v2329_v60  ;;  %v2198_v55 = vsel %vm4142_vm7, %v4530_v63, 0.0  ;;  %v2121_v63 = vmul.f32 %v4158_v52, %v4459_v22 }
 0x44a   :  { %v2244_v59 = vadd.f32 %v2239_v21, %v2214_v45  ;;  %v2259_v26 = vadd.f32 %v2254_v33, %v2229_v27  ;;  %v2148_v12 = vpop.permute.xlu0 %2147  ;;  %v2195_v1 = vpop.permute.xlu1 %2194  ;;  %v2125_v16 = vadd.f32 %v2120_v17, %v2090_v34  ;;  %v2140_v40 = vadd.f32 %v2135_v5, %v2105_v41 }
 0x44b   :  { %v2155_v3 = vsel %vm4171_vm8, %v2148_v12, 0.0  ;;  %v2370_v27 = vmul.f32 %v4362_v48, %v4455_v4  ;;  %v2210_v17 = vmul.f32 %v4266_v61, %v2200_v32  ;;  %v2225_v21 = vmul.f32 %v4271_v62, %v2200_v32 }
 0x44c   :  { %v2289_v31 = vadd.f32 %v2284_v51, %v2244_v59  ;;  %v2304_v25 = vadd.f32 %v2299_v49, %v2259_v26  ;;  %v2165_v13 = vmul.f32 %v4191_v15, %v2155_v3  ;;  %v2180_v11 = vmul.f32 %v4233_v36, %v2155_v3 }
 0x44d   :  { %v2385_v49 = vmul.f32 %v4367_v44, %v4455_v4  ;;  %v2275_v5 = vsel %vm4171_vm8, %v2268_v8, 0.0  ;;  %v2136_v59 = vmul.f32 %v4186_v14, %v4459_v22  ;;  %v2133_v4 = vmul.f32 %v4186_v14, %v4467_v29 }
 0x44e   :  { %v2344_v33 = vadd.f32 %v2339_v54, %v2289_v31  ;;  %v2359_v60 = vadd.f32 %v2354_v19, %v2304_v25  ;;  %v2170_v45 = vadd.f32 %v2165_v13, %v2125_v16  ;;  %v2185_v34 = vadd.f32 %v2180_v11, %v2140_v40  ;;  %v2323_v41 = vpop.permute.xlu0 %2322  ;;  %v4638_v51 = vpop.permute.xlu1 %2269 }
 0x44f   :  { %v2330_v25 = vsel %vm4142_vm7, %v2323_v41, 0.0  ;;  %v2118_v40 = vmul.f32 %v4158_v52, %v4467_v29  ;;  %v2208_v11 = vmul.f32 %v4266_v61, %v2198_v55  ;;  %v2285_v54 = vmul.f32 %v4307_v46, %v2275_v5 }
 0x450   :  { %v2215_v32 = vadd.f32 %v2210_v17, %v2170_v45  ;;  %v2230_v31 = vadd.f32 %v2225_v21, %v2185_v34  ;;  %v4655_v8 = vadd.f32 %v2384_v23, %v2359_v60  ;;  %v4657_v26 = vadd.f32 %v2369_v56, %v2344_v33 }
 0x451   :  { %v2300_v22 = vmul.f32 %v4327_v24, %v2275_v5  ;;  %v2340_v13 = vmul.f32 %v4344_v38, %v2330_v25  ;;  %v2355_v52 = vmul.f32 %v4349_v50, %v2330_v25 }
 0x452   :  { %v2245_v12 = vadd.f32 %v2240_v10, %v2215_v32  ;;  %v2260_v16 = vadd.f32 %v2255_v7, %v2230_v31  ;;  %v2069_v19 = vpop.permute.xlu0 %2068  ;;  %v2075_v3 = vpop.permute.xlu1 %2074  ;;  %v2223_v10 = vmul.f32 %v4271_v62, %v2198_v55  ;;  %v2201_v7 = vsel %vm4142_vm7, %v2195_v1, 0.0 }
 0x453   :  { %v2078_v17 = vsel %vm4142_vm7, %v2069_v19, 0.0  ;;  %v2081_v14 = vsel %vm4142_vm7, %v2075_v3, 0.0 }
 0x454   :  { %v2290_v23 = vadd.f32 %v2285_v54, %v2245_v12  ;;  %v2305_v29 = vadd.f32 %v2300_v22, %v2260_v16  ;;  %v2088_v56 = vmul.f32 %v4149_v42, %v2078_v17  ;;  %v2103_v21 = vmul.f32 %v4201_v20, %v2078_v17 }
 0x455   :  { %v2091_v33 = vmul.f32 %v4149_v42, %v2081_v14  ;;  %v2106_v60 = vmul.f32 %v4201_v20, %v2081_v14 }
 0x456   :  { %v2345_v45 = vadd.f32 %v2340_v13, %v2290_v23  ;;  %v2360_v34 = vadd.f32 %v2355_v52, %v2305_v29  ;;  %v2123_v41 = vadd.f32 %v2118_v40, %v2088_v56  ;;  %v2138_v5 = vadd.f32 %v2133_v4, %v2103_v21  ;;  %v2144_v32 = vpop.permute.xlu0 %2143  ;;  %v2150_v31 = vpop.permute.xlu1 %2149 }
 0x457   :  { %v2126_v25 = vadd.f32 %v2121_v63, %v2091_v33  ;;  %v2141_v54 = vadd.f32 %v2136_v59, %v2106_v60  ;;  %v2153_v22 = vsel %vm4171_vm8, %v2144_v32, 0.0  ;;  %v2156_v55 = vsel %vm4171_vm8, %v2150_v31, 0.0 }
 0x458   :  { %v2163_v1 = vmul.f32 %v4191_v15, %v2153_v22  ;;  %v2178_v42 = vmul.f32 %v4233_v36, %v2153_v22  ;;  %v2166_v20 = vmul.f32 %v4191_v15, %v2156_v55  ;;  %v2181_v12 = vmul.f32 %v4233_v36, %v2156_v55 }
 0x459   :  { %v2211_v40 = vmul.f32 %v4266_v61, %v2201_v7  ;;  %v2226_v4 = vmul.f32 %v4271_v62, %v2201_v7  ;;  %v4684_v63 = vadd.f32 %v2385_v49, %v2360_v34  ;;  %v4686_v59 = vadd.f32 %v2370_v27, %v2345_v45 }
 0x45a   :  { %v2168_v16 = vadd.f32 %v2163_v1, %v2123_v41  ;;  %v2183_v19 = vadd.f32 %v2178_v42, %v2138_v5  ;;  %v2171_v3 = vadd.f32 %v2166_v20, %v2126_v25  ;;  %v2186_v13 = vadd.f32 %v2181_v12, %v2141_v54  ;;  %v716_v52 = vpop.permute.xlu0 %715  ;;  %v718_v17 = vpop.permute.xlu1 %717 }
 0x45b   :  { %v2273_v15 = vsel %vm4171_vm8, %v4544_v35, 0.0  ;;  %v4693_v36 = vsel %vm4171_vm8, %v716_v52, 0.0  ;;  %v4697_v61 = vsel %vm4171_vm8, %v718_v17, 0.0  ;;  %v2256_v62 = vmul.f32 %v4196_v18, %v4445_v6 }
 0x45c   :  { %v2213_v27 = vadd.f32 %v2208_v11, %v2168_v16  ;;  %v2228_v49 = vadd.f32 %v2223_v10, %v2183_v19  ;;  %v2216_v14 = vadd.f32 %v2211_v40, %v2171_v3  ;;  %v2231_v23 = vadd.f32 %v2226_v4, %v2186_v13 }
 0x45d   :  { %v2328_v29 = vsel %vm4142_vm7, %v4552_v2, 0.0  ;;  %v2276_v35 = vsel %vm4171_vm8, %v4638_v51, 0.0  ;;  %v748_v56 = vmul.f32 %v4500_v39, %v4693_v36  ;;  %v749_v21 = vmul.f32 %v4500_v39, %v4697_v61 }
 0x45e   :  { %v2243_v18 = vadd.f32 %v4581_v30, %v2213_v27  ;;  %v2258_v6 = vadd.f32 %v4591_v43, %v2228_v49  ;;  %v2394_v11 = vpop.permute.xlu0 %2393  ;;  %v2396_v10 = vpop.permute.xlu1 %2395  ;;  %v2246_v7 = vadd.f32 %v4621_v53, %v2216_v14  ;;  %v2261_v33 = vadd.f32 %v2256_v62, %v2231_v23  ;;  %v6822_v49 = vld [vmem:[#allocation19_spill] sm:$0xff] }
 0x45f   :  { %v2298_v2 = vmul.f32 %v4327_v24, %v2273_v15  ;;  %v2404_v51 = vsel %vm4171_vm8, %v2396_v10, 0.0  ;;  %v4718_v60 = vadd.f32 %v749_v21, %v4569_v57  ;;  %v4721_v45 = vadd.f32 %v748_v56, %v4571_v0  ;;  %v6825_v21 = vld [vmem:[#allocation18_spill] sm:$0xff] }
 0x460   :  { %v2368_v30 = vmul.f32 %v4362_v48, %v4423_v58  ;;  %v2383_v43 = vmul.f32 %v4367_v44, %v4423_v58  ;;  %v2283_v53 = vmul.f32 %v4307_v46, %v2273_v15  ;;  %v2429_v34 = vmul.f32 %v4500_v39, %v2404_v51 }
 0x461   :  { %v2353_v41 = vmul.f32 %v4349_v50, %v2328_v29  ;;  %v2286_v5 = vmul.f32 %v4307_v46, %v2276_v35  ;;  %792 = vrot.lane.b32.xlu1 %v4718_v60, %s3829_s28  ;;  %790 = vrot.lane.b32.xlu0 %v4721_v45, %s3829_s28  ;;  %v2303_v57 = vadd.f32 %v2298_v2, %v2258_v6  ;;  %v2403_v58 = vsel %vm4171_vm8, %v2394_v11, 0.0  ;;  %v6827_v2 = vld [vmem:[#allocation21_spill] sm:$0xff] }
 0x462   :  { %v2338_v0 = vmul.f32 %v4344_v38, %v2328_v29  ;;  %v2301_v32 = vmul.f32 %v4327_v24, %v2276_v35  ;;  %v2398_v31 = vpop.permute.xlu0 %2397  ;;  %v2325_v25 = vpop.permute.xlu1 %2324  ;;  %v4740_v54 = vadd.f32 %v2429_v34, %v4655_v8  ;;  %v2288_v1 = vadd.f32 %v2283_v53, %v2243_v18 }
 0x463   :  { %v2291_v46 = vadd.f32 %v2286_v5, %v2246_v7  ;;  %v2331_v22 = vsel %vm4142_vm7, %v2325_v25, 0.0  ;;  %v2358_v55 = vadd.f32 %v2353_v41, %v2303_v57  ;;  %v2405_v42 = vsel %vm4171_vm8, %v2398_v31, 0.0  ;;  %v6826_v7 = vld [vmem:[#allocation11_spill] sm:$0xff]  ;;  %v6830_v5 = vld [vmem:[#allocation14_spill] sm:$0xff] }
 0x464   :  { %v2306_v20 = vadd.f32 %v2301_v32, %v2261_v33  ;;  %v2341_v24 = vmul.f32 %v4344_v38, %v2331_v22  ;;  %v2356_v12 = vmul.f32 %v4349_v50, %v2331_v22  ;;  %v2371_v40 = vmul.f32 %v4362_v48, %v4471_v47 }
 0x465   :  { %v2428_v8 = vmul.f32 %v4500_v39, %v2403_v58  ;;  %2470 = vrot.lane.b32.xlu1 %v4740_v54, %s3829_s28  ;;  %v2388_v4 = vadd.f32 %v2383_v43, %v2358_v55  ;;  %v2343_v16 = vadd.f32 %v2338_v0, %v2288_v1  ;;  %v2386_v19 = vmul.f32 %v4367_v44, %v4471_v47  ;;  %v6823_v44 = vld [vmem:[#allocation13_spill] sm:$0xff]  ;;  %v6824_v47 = vld [vmem:[#allocation20_spill] sm:$0xff] }
 0x466   :  { %v2413_v3 = vmul.f32 %v4389_v28, %v2403_v58  ;;  %v2346_v13 = vadd.f32 %v2341_v24, %v2291_v46  ;;  %v2361_v52 = vadd.f32 %v2356_v12, %v2306_v20  ;;  %v2400_v17 = vpop.permute.xlu1 %2399  ;;  %v2430_v50 = vmul.f32 %v4500_v39, %v2405_v42  ;;  %v787_v25 = vpop.permute.xlu0 %786  ;;  %v6831_v46 = vld [vmem:[#allocation16_spill] sm:$0xff]  ;;  %v6832_v1 = vld [vmem:[#allocation17_spill] sm:$0xff] }
 0x467   :  { %v2406_v15 = vsel %vm4171_vm8, %v2400_v17, 0.0  ;;  %v2433_v62 = vadd.f32 %v2428_v8, %v2388_v4  ;;  %v2373_v27 = vadd.f32 %v2368_v30, %v2343_v16  ;;  %v659_v14 = vmul.f32 %v4344_v38, %v6822_v49  ;;  %v6828_v30 = vld [vmem:[#allocation10_spill] sm:$0xff] }
 0x468   :  { %v2431_v23 = vmul.f32 %v4500_v39, %v2406_v15  ;;  %v2391_v29 = vadd.f32 %v2386_v19, %v2361_v52  ;;  %v2376_v35 = vadd.f32 %v2371_v40, %v2346_v13  ;;  %v607_v56 = vadd.f32 %v6824_v47, %v6823_v44 }
 0x469   :  { %v658_v18 = vmul.f32 %v4344_v38, %v6825_v21  ;;  %2468 = vrot.lane.b32.xlu0 %v2433_v62, %s3829_s28  ;;  %v4767_v6 = vadd.f32 %v2413_v3, %v2373_v27  ;;  %v2435_v10 = vadd.f32 %v2430_v50, %v4684_v63  ;;  %v689_v33 = vmul.f32 %v4362_v48, %v6826_v7  ;;  %v6829_v63 = vld [vmem:[#allocation15_spill] sm:$0xff] }
 0x46a   :  { %v2436_v11 = vadd.f32 %v2431_v23, %v2391_v29  ;;  %v664_v39 = vadd.f32 %v659_v14, %v6827_v2  ;;  %v688_v43 = vmul.f32 %v4362_v48, %v6828_v30  ;;  %v734_v38 = vmul.f32 %v4389_v28, %v4697_v61  ;;  %v789_v55 = vpop.permute.xlu1 %788 }
 0x46b   :  { %v663_v53 = vadd.f32 %v658_v18, %v607_v56  ;;  %v733_v34 = vmul.f32 %v4389_v28, %v4693_v36  ;;  %v2414_v0 = vmul.f32 %v4389_v28, %v2404_v51  ;;  %v2415_v32 = vmul.f32 %v4389_v28, %v2405_v42 }
 0x46c   :  { %2474 = vrot.lane.b32.xlu1 %v2436_v11, %s3829_s28  ;;  %v694_v41 = vadd.f32 %v689_v33, %v664_v39  ;;  %v2416_v36 = vmul.f32 %v4389_v28, %v2406_v15  ;;  %v796_v22 = vadd.f32 %v787_v25, %v6831_v46  ;;  %v797_v42 = vadd.f32 %v789_v55, %v6832_v1  ;;  %v6833_v1 = vld [vmem:[#allocation12_spill] sm:$0xff] }
 0x46d   :  { %2472 = vrot.lane.b32.xlu0 %v2435_v10, %s3829_s28  ;;  %v693_v57 = vadd.f32 %v688_v43, %v663_v53  ;;  %v2419_v61 = vadd.f32 %v2414_v0, %v4657_v26  ;;  %v2420_v31 = vadd.f32 %v2415_v32, %v4686_v59  ;;  %vm840_vm9 = vcmp.lt.s32.totalorder %v6833_v1, 32 }
 0x46e   :  { %v739_v48 = vadd.f32 %v734_v38, %v694_v41  ;;  %v2421_v51 = vadd.f32 %v2416_v36, %v2376_v35  ;;  %v4844_v35 = vstv %s3493_s5  ;;  %vm90_vm10 = vcmp.lt.s32.totalorder %v6833_v1, 64 }
 0x46f   :  { %v738_v58 = vadd.f32 %v733_v34, %v693_v57 }
 0x470   :  { %758 = vrot.lane.b32.xlu1 %v6829_v63, %s3829_s28 }
 0x471   :  { %756 = vrot.lane.b32.xlu0 %v6830_v5, %s3829_s28 }
 0x474   :  { %762 = vrot.lane.b32.xlu1 %v739_v48, %s3829_s28 }
 0x475   :  { %760 = vrot.lane.b32.xlu0 %v738_v58, %s3829_s28 }
 0x478   :  { %2440 = vrot.lane.b32.xlu1 %v2419_v61, %s3829_s28 }
 0x479   :  { %2442 = vrot.lane.b32.xlu0 %v2420_v31, %s3829_s28 }
 0x47c   :  { %2444 = vrot.lane.b32.xlu1 %v2421_v51, %s3829_s28 }
 0x47d   :  { %801 = vrot.lane.b32.xlu0 %v796_v22, %s3830_s29 }
 0x480   :  { %803 = vrot.lane.b32.xlu1 %v797_v42, %s3830_s29 }
 0x4d3   :  { %v793_v28 = vpop.permute.xlu1 %792  ;;  %v791_v26 = vpop.permute.xlu0 %790 }
 0x4d4   :  { %v799_v59 = vadd.f32 %v793_v28, %v4718_v60  ;;  %v798_v20 = vadd.f32 %v791_v26, %v4721_v45  ;;  %v856_v26 = vld [vmem:[%s6734_s1] sm:$0xff] }
 0x4d6   :  { %807 = vrot.lane.b32.xlu1 %v799_v59, %s3830_s29  ;;  %805 = vrot.lane.b32.xlu0 %v798_v20, %s3830_s29 }
 0x4d7   :  { %v2471_v24 = vpop.permute.xlu1 %2470 }
 0x4d8   :  { %v4804_v12 = vadd.f32 %v2471_v24, %v4740_v54 }
 0x4da   :  { %2485 = vrot.lane.b32.xlu1 %v4804_v12, %s3830_s29  ;;  %2438 = vrot.lane.b32.xlu0 %v4767_v6, %s3829_s28 }
 0x4db   :  { %v2469_v40 = vpop.permute.xlu0 %2468 }
 0x4dc   :  { %v4810_v8 = vadd.f32 %v2469_v40, %v2433_v62 }
 0x4de   :  { %2483 = vrot.lane.b32.xlu0 %v4810_v8, %s3830_s29  ;;  %v2475_v60 = vpop.permute.xlu1 %2474 }
 0x4df   :  { %v4814_v45 = vadd.f32 %v2475_v60, %v2436_v11  ;;  %v2473_v4 = vpop.permute.xlu0 %2472 }
 0x4e0   :  { %v4816_v16 = vadd.f32 %v2473_v4, %v2435_v10  ;;  %v857_v4 = vld [vmem:[%s6734_s1 + $0x8] sm:$0xff] }
 0x4e1   :  { %2489 = vrot.lane.b32.xlu1 %v4814_v45, %s3830_s29 }
 0x4e2   :  { %2487 = vrot.lane.b32.xlu0 %v4816_v16, %s3830_s29  ;;  %v759_v54 = vpop.permute.xlu1 %758 }
 0x4e3   :  { %v767_v19 = vadd.f32 %v759_v54, %v6829_v63  ;;  %v757_v3 = vpop.permute.xlu0 %756 }
 0x4e4   :  { %v766_v13 = vadd.f32 %v757_v3, %v6830_v5  ;;  %v6834_v3 = vmov 0.0  }
 0x4e5   :  { %773 = vrot.lane.b32.xlu1 %v767_v19, %s3830_s29 }
 0x4e6   :  { %771 = vrot.lane.b32.xlu0 %v766_v13, %s3830_s29  ;;  %v763_v52 = vpop.permute.xlu1 %762 }
 0x4e7   :  { %v4826_v17 = vadd.f32 %v763_v52, %v739_v48  ;;  %v761_v50 = vpop.permute.xlu0 %760 }
 0x4e8   :  { %v4828_v15 = vadd.f32 %v761_v50, %v738_v58 }
 0x4e9   :  { %777 = vrot.lane.b32.xlu1 %v4826_v17, %s3830_s29 }
 0x4ea   :  { %775 = vrot.lane.b32.xlu0 %v4828_v15, %s3830_s29  ;;  %v2441_v62 = vpop.permute.xlu1 %2440 }
 0x4eb   :  { %v4834_v27 = vadd.f32 %v2441_v62, %v2419_v61  ;;  %v2443_v49 = vpop.permute.xlu0 %2442 }
 0x4ec   :  { %v4836_v14 = vadd.f32 %v2443_v49, %v2420_v31  ;;  %v4866_v31 = vstv %s816_s10 }
 0x4ed   :  { %2455 = vrot.lane.b32.xlu1 %v4834_v27, %s3830_s29 }
 0x4ee   :  { %2457 = vrot.lane.b32.xlu0 %v4836_v14, %s3830_s29  ;;  %v2445_v23 = vpop.permute.xlu1 %2444 }
 0x4ef   :  { %v4842_v29 = vadd.f32 %v2445_v23, %v2421_v51  ;;  %v802_v44 = vpop.permute.xlu0 %801 }
 0x4f0   :  { %v811_v47 = vadd.f32 %v802_v44, %v796_v22 }
 0x4f1   :  { %2459 = vrot.lane.b32.xlu1 %v4842_v29, %s3830_s29 }
 0x4f2   :  { %v830_v56 = vadd.f32 %v4844_v35, %v811_v47  ;;  %v804_v21 = vpop.permute.xlu1 %803 }
 0x4f3   :  { %v812_v18 = vadd.f32 %v804_v21, %v797_v42 }
 0x4f4   :  { %v835_v11 = vmax.f32 %v830_v56, 0.0 }
 0x4f5   :  { %v831_v10 = vadd.f32 %v4844_v35, %v812_v18 }
 0x4f6   :  { %841 = vrot.lane.b32.xlu0 %v835_v11, %s3826_s27 }
 0x4f7   :  { %v836_v7 = vmax.f32 %v831_v10, 0.0 }
 0x4f9   :  { %843 = vrot.lane.b32.xlu1 %v836_v7, %s3826_s27 }
 0x548   :  { %v808_v33 = vpop.permute.xlu1 %807  ;;  %v806_v2 = vpop.permute.xlu0 %805 }
 0x549   :  { %v814_v39 = vadd.f32 %v808_v33, %v799_v59  ;;  %v813_v30 = vadd.f32 %v806_v2, %v798_v20  ;;  %v3494_v59 = vld [vmem:[%s6735_s2] ss:$0 sm:$0xff]  ;;  %v859_v2 = vld [vmem:[%s6734_s1 + $0x18] sm:$0xff] }
 0x54b   :  { %v833_v43 = vadd.f32 %v4844_v35, %v814_v39  ;;  %v832_v53 = vadd.f32 %v4844_v35, %v813_v30  ;;  %v858_v39 = vld [vmem:[%s6734_s1 + $0x10] sm:$0xff] }
 0x54c   :  { %v4854_v38 = vpop.permute.xlu0 %2438  ;;  %v4856_v41 = vpop.permute.xlu1 %2485 }
 0x54d   :  { %v838_v34 = vmax.f32 %v833_v43, 0.0  ;;  %v837_v63 = vmax.f32 %v832_v53, 0.0 }
 0x54f   :  { %847 = vrot.lane.b32.xlu1 %v838_v34, %s3826_s27  ;;  %845 = vrot.lane.b32.xlu0 %v837_v63, %s3826_s27 }
 0x550   :  { %v4860_v5 = vpop.permute.xlu0 %2483 }
 0x553   :  { %v4862_v57 = vpop.permute.xlu1 %2489 }
 0x554   :  { %v4864_v0 = vpop.permute.xlu0 %2487 }
 0x557   :  { %v774_v48 = vpop.permute.xlu1 %773 }
 0x558   :  { %v772_v32 = vpop.permute.xlu0 %771  ;;  %v782_v51 = vadd.f32 %v774_v48, %v767_v19 }
 0x559   :  { %v781_v61 = vadd.f32 %v772_v32, %v766_v13  ;;  %v4894_v13 = vrot.slane %v6834_v3, 7 }
 0x55a   :  { %v819_v55 = vadd.f32 %v4866_v31, %v782_v51  ;;  %v2494_v51 = vadd.f32 %v4856_v41, %v4804_v12  ;;  %v4970_v12 = vadd.f32 %v4854_v38, %v4767_v6 }
 0x55b   :  { %v778_v58 = vpop.permute.xlu1 %777  ;;  %v818_v46 = vadd.f32 %v4866_v31, %v781_v61  ;;  %6835 = vst [vmem:[#allocation19_spill] sm:$0xff] %v4894_v13 }
 0x55c   :  { %v776_v36 = vpop.permute.xlu0 %775  ;;  %v824_v40 = vmax.f32 %v819_v55, 0.0  ;;  %v784_v21 = vadd.f32 %v778_v58, %v4826_v17  ;;  %v2496_v55 = vadd.f32 %v4862_v57, %v4814_v45 }
 0x55d   :  { %v823_v42 = vmax.f32 %v818_v46, 0.0  ;;  %v783_v18 = vadd.f32 %v776_v36, %v4828_v15  ;;  %v2513_v46 = vadd.f32 %v2494_v51, %v4844_v35 }
 0x55e   :  { %v821_v11 = vadd.f32 %v4866_v31, %v784_v21 }
 0x55f   :  { %v4868_v25 = vpop.permute.xlu1 %2455  ;;  %v820_v10 = vadd.f32 %v4866_v31, %v783_v18  ;;  %v2518_v41 = vmax.f32 %v2513_v46, 0.0  ;;  %v5053_v18 = vld [vmem:[%s6739_s6 + $0x1] ss:$0 sm:$0xff] }
 0x560   :  { %v4871_v22 = vpop.permute.xlu0 %2457  ;;  %v826_v7 = vmax.f32 %v821_v11, 0.0 }
 0x561   :  { %v825_v33 = vmax.f32 %v820_v10, 0.0 }
 0x563   :  { %v4875_v28 = vpop.permute.xlu1 %2459 }
 0x568   :  { %v842_v20 = vpop.permute.xlu0 %841 }
 0x569   :  { %v851_v24 = vsel %vm840_vm9, %v823_v42, %v842_v20  ;;  %v2495_v42 = vadd.f32 %v4864_v0, %v4816_v16  ;;  %v5005_v20 = vrot.slane %v6834_v3, 1 }
 0x56a   :  { %v861_v60 = vsel %vm90_vm10, %v851_v24, %v856_v26  ;;  %v2493_v26 = vadd.f32 %v4860_v5, %v4810_v8 }
 0x56b   :  { %v4891_v54 = vadd.f32 %v3494_v59, %v861_v60  ;;  %v844_v19 = vpop.permute.xlu1 %843  ;;  %v2514_v45 = vadd.f32 %v2495_v42, %v4844_v35  ;;  %6837 = vst [vmem:[#allocation13_spill] sm:$0xff] %v5005_v20  ;;  %v2465_v42 = vadd.f32 %v4871_v22, %v4836_v14  ;;  %v3574_v14 = vld [vmem:[%s6734_s1 + $0x30] sm:$0xff] }
 0x56c   :  { %v852_v52 = vsel %vm840_vm9, %v824_v40, %v844_v19  ;;  %v2512_v16 = vadd.f32 %v2493_v26, %v4844_v35 }
 0x56d   :  { %v862_v50 = vsel %vm90_vm10, %v852_v52, %v857_v4  ;;  %v881_v62 = vrot.slane %v4891_v54, 7  ;;  %v2519_v0 = vmax.f32 %v2514_v45, 0.0  ;;  %v1131_v24 = vrot.slane %v4891_v54, 1  ;;  %v5040_v52 = vld [vmem:[%s6739_s6] ss:$0 sm:$0xff] }
 0x56e   :  { %v4901_v49 = vadd.f32 %v3494_v59, %v862_v50  ;;  %v2517_v6 = vmax.f32 %v2512_v16, 0.0 }
 0x56f   :  { %v4906_v44 = vsel %vm379_vm5, %v4894_v13, %v881_v62 }
 0x570   :  { %891 = vrot.lane.b32.xlu0 %v4906_v44, %s3831_s0  ;;  %v882_v47 = vrot.slane %v4901_v49, 7 }
 0x572   :  { %v4913_v56 = vsel %vm379_vm5, %v881_v62, %v882_v47 }
 0x573   :  { %893 = vrot.lane.b32.xlu1 %v4913_v56, %s3831_s0 }
 0x5c1   :  { %v848_v30 = vpop.permute.xlu1 %847  ;;  %v846_v43 = vpop.permute.xlu0 %845 }
 0x5c2   :  { %v854_v17 = vsel %vm840_vm9, %v826_v7, %v848_v30  ;;  %v853_v15 = vsel %vm840_vm9, %v825_v33, %v846_v43  ;;  %v5072_v30 = vld [vmem:[%s6739_s6 + $0x2] ss:$0 sm:$0xff]  ;;  %v941_v43 = vmul.f32 %v5053_v18, %v4906_v44 }
 0x5c3   :  { %v864_v53 = vsel %vm90_vm10, %v854_v17, %v859_v2  ;;  %v863_v34 = vsel %vm90_vm10, %v853_v15, %v858_v39  ;;  %v2464_v39 = vadd.f32 %v4868_v25, %v4834_v27  ;;  %6839 = vst [vmem:[#allocation18_spill] sm:$0xff] %v5072_v30  ;;  %v942_v17 = vmul.f32 %v5053_v18, %v4913_v56 }
 0x5c4   :  { %v4935_v63 = vadd.f32 %v3494_v59, %v864_v53  ;;  %v4937_v48 = vadd.f32 %v3494_v59, %v863_v34  ;;  %v2515_v59 = vadd.f32 %v2496_v55, %v4844_v35  ;;  %v1132_v35 = vrot.slane %v4901_v49, 1 }
 0x5c5   :  { %v2501_v55 = vadd.f32 %v2464_v39, %v4866_v31  ;;  %v5127_v39 = vld [vmem:[%s6739_s6 + $0x4] ss:$0 sm:$0xff] }
 0x5c6   :  { %v883_v32 = vrot.slane %v4937_v48, 7  ;;  %v884_v58 = vrot.slane %v4935_v63, 7  ;;  %v2520_v57 = vmax.f32 %v2515_v59, 0.0  ;;  %v1133_v8 = vrot.slane %v4937_v48, 1 }
 0x5c7   :  { %v1134_v5 = vrot.slane %v4935_v63, 1  ;;  %v5014_v40 = vsel %vm630_vm6, %v1131_v24, %v1132_v35 }
 0x5c8   :  { %v4943_v36 = vsel %vm379_vm5, %v882_v47, %v883_v32  ;;  %v4947_v61 = vsel %vm379_vm5, %v883_v32, %v884_v58  ;;  %v5001_v38 = vsel %vm630_vm6, %v1132_v35, %v1133_v8  ;;  %v5109_v35 = vld [vmem:[%s6735_s2 + $0x1] ss:$0 sm:$0xff] }
 0x5c9   :  { %895 = vrot.lane.b32.xlu0 %v4943_v36, %s3831_s0  ;;  %897 = vrot.lane.b32.xlu1 %v4947_v61, %s3831_s0  ;;  %v5019_v60 = vsel %vm630_vm6, %v1134_v5, %v5005_v20  ;;  %v5027_v4 = vsel %vm630_vm6, %v1133_v8, %v1134_v5  ;;  %v943_v33 = vmul.f32 %v5053_v18, %v4943_v36 }
 0x5ca   :  { %6838 = vst [vmem:[#allocation20_spill] sm:$0xff] %v5019_v60  ;;  %v2502_v8 = vadd.f32 %v2465_v42, %v4866_v31  ;;  %v5164_v42 = vmul.f32 %v5127_v39, %v4891_v54 }
 0x5cd   :  { %966 = vrot.lane.b32.xlu0 %v4906_v44, %s3832_s3  ;;  %968 = vrot.lane.b32.xlu1 %v4913_v56, %s3832_s3 }
 0x5d1   :  { %970 = vrot.lane.b32.xlu0 %v4943_v36, %s3832_s3  ;;  %972 = vrot.lane.b32.xlu1 %v4947_v61, %s3832_s3 }
 0x5d5   :  { %2453 = vrot.lane.b32.xlu0 %v4970_v12, %s3830_s29  ;;  %2524 = vrot.lane.b32.xlu1 %v2518_v41, %s3826_s27 }
 0x5d9   :  { %2526 = vrot.lane.b32.xlu0 %v2519_v0, %s3826_s27  ;;  %2528 = vrot.lane.b32.xlu1 %v2520_v57, %s3826_s27  ;;  %v2466_v57 = vadd.f32 %v4875_v28, %v4842_v29 }
 0x5db   :  { %v2503_v28 = vadd.f32 %v2466_v57, %v4866_v31 }
 0x5dd   :  { %2522 = vrot.lane.b32.xlu0 %v2517_v6, %s3826_s27  ;;  %1013 = vrot.lane.b32.xlu1 %v4901_v49, %s3831_s0  ;;  %v2506_v6 = vmax.f32 %v2501_v55, 0.0  ;;  %v5160_v55 = vld [vmem:[%s6739_s6 + $0x3] ss:$0 sm:$0xff] }
 0x5de   :  { %6842 = vst [vmem:[#allocation10_spill] sm:$0xff] %v5160_v55 }
 0x5e1   :  { %1011 = vrot.lane.b32.xlu0 %v4891_v54, %s3831_s0  ;;  %1017 = vrot.lane.b32.xlu1 %v4935_v63, %s3831_s0 }
 0x5e2   :  { %v892_v19 = vpop.permute.xlu0 %891 }
 0x5e3   :  { %v5044_v50 = vsel %vm4142_vm7, %v892_v19, 0.0 }
 0x5e4   :  { %v911_v10 = vmul.f32 %v5040_v52, %v5044_v50 }
 0x5e5   :  { %1015 = vrot.lane.b32.xlu0 %v4937_v48, %s3831_s0  ;;  %1088 = vrot.lane.b32.xlu1 %v4901_v49, %s3832_s3  ;;  %v894_v3 = vpop.permute.xlu1 %893 }
 0x5e6   :  { %v5048_v62 = vsel %vm4142_vm7, %v894_v3, 0.0  ;;  %v946_v25 = vadd.f32 %v941_v43, %v911_v10  ;;  %v2507_v3 = vmax.f32 %v2502_v8, 0.0  ;;  %v3575_v10 = vld [vmem:[%s6734_s1 + $0x38] sm:$0xff] }
 0x5e7   :  { %v912_v7 = vmul.f32 %v5040_v52, %v5048_v62 }
 0x5e9   :  { %1086 = vrot.lane.b32.xlu0 %v4891_v54, %s3832_s3  ;;  %1092 = vrot.lane.b32.xlu1 %v4935_v63, %s3832_s3  ;;  %v947_v58 = vadd.f32 %v942_v17, %v912_v7 }
 0x5ed   :  { %1090 = vrot.lane.b32.xlu0 %v4937_v48, %s3832_s3  ;;  %1143 = vrot.lane.b32.xlu1 %v5001_v38, %s3831_s0 }
 0x5f1   :  { %1141 = vrot.lane.b32.xlu0 %v5014_v40, %s3831_s0  ;;  %1147 = vrot.lane.b32.xlu1 %v5019_v60, %s3831_s0 }
 0x5f5   :  { %1145 = vrot.lane.b32.xlu0 %v5027_v4, %s3831_s0  ;;  %1218 = vrot.lane.b32.xlu1 %v5001_v38, %s3832_s3 }
 0x5f9   :  { %1216 = vrot.lane.b32.xlu0 %v5014_v40, %s3832_s3 }
 0x5fd   :  { %1220 = vrot.lane.b32.xlu0 %v5027_v4, %s3832_s3 }
 0x63b   :  { %v898_v47 = vpop.permute.xlu1 %897  ;;  %v896_v21 = vpop.permute.xlu0 %895 }
 0x63c   :  { %v5057_v11 = vsel %vm4142_vm7, %v896_v21, 0.0  ;;  %v904_v7 = vsel %vm4142_vm7, %v898_v47, 0.0  ;;  %v5138_v47 = vld [vmem:[%s6739_s6 + $0x9] ss:$0 sm:$0xff] }
 0x63d   :  { %v913_v2 = vmul.f32 %v5040_v52, %v5057_v11 }
 0x63f   :  { %v948_v15 = vadd.f32 %v943_v33, %v913_v2  ;;  %v969_v53 = vpop.permute.xlu1 %968  ;;  %v967_v34 = vpop.permute.xlu0 %966 }
 0x640   :  { %v5080_v32 = vsel %vm4171_vm8, %v969_v53, 0.0  ;;  %v5084_v27 = vsel %vm4171_vm8, %v967_v34, 0.0  ;;  %v5145_v34 = vld [vmem:[%s6739_s6 + $0xa] ss:$0 sm:$0xff] }
 0x641   :  { %v987_v51 = vmul.f32 %v5072_v30, %v5080_v32  ;;  %v986_v46 = vmul.f32 %v5072_v30, %v5084_v27  ;;  %6840 = vst [vmem:[#allocation11_spill] sm:$0xff] %v5145_v34 }
 0x643   :  { %v992_v41 = vadd.f32 %v987_v51, %v947_v58  ;;  %v5093_v26 = vadd.f32 %v986_v46, %v946_v25  ;;  %v973_v59 = vpop.permute.xlu1 %972  ;;  %v971_v45 = vpop.permute.xlu0 %970  ;;  %v914_v25 = vmul.f32 %v5040_v52, %v904_v7  ;;  %v929_v58 = vmul.f32 %v5138_v47, %v904_v7  ;;  %v5152_v51 = vld [vmem:[%s6739_s6 + $0xb] ss:$0 sm:$0xff] }
 0x644   :  { %v978_v16 = vsel %vm4171_vm8, %v971_v45, 0.0  ;;  %v979_v43 = vsel %vm4171_vm8, %v973_v59, 0.0  ;;  %v944_v59 = vmul.f32 %v5053_v18, %v4947_v61  ;;  %v959_v45 = vmul.f32 %v5145_v34, %v4947_v61 }
 0x645   :  { %v988_v0 = vmul.f32 %v5072_v30, %v978_v16  ;;  %v989_v57 = vmul.f32 %v5072_v30, %v979_v43  ;;  %v1062_v7 = vmul.f32 %v5127_v39, %v4901_v49 }
 0x647   :  { %v5104_v22 = vadd.f32 %v988_v0, %v948_v15  ;;  %v2525_v5 = vpop.permute.xlu1 %2524  ;;  %v2454_v24 = vpop.permute.xlu0 %2453  ;;  %v2508_v15 = vmax.f32 %v2503_v28, 0.0  ;;  %v1004_v0 = vmul.f32 %v5152_v51, %v979_v43 }
 0x648   :  { %v2533_v29 = vsel %vm840_vm9, %v2506_v6, %v2525_v5  ;;  %v2463_v43 = vadd.f32 %v2454_v24, %v4970_v12  ;;  %v5213_v24 = vld [vmem:[%s6739_s6 + $0xc] ss:$0 sm:$0xff] }
 0x649   :  { %v2544_v19 = vsel %vm90_vm10, %v2533_v29, %v3574_v14  ;;  %v3576_v14 = vld [vmem:[%s6734_s1 + $0x40] sm:$0xff] }
 0x64a   :  { %v5117_v21 = vadd.f32 %v5109_v35, %v2544_v19  ;;  %v958_v19 = vmul.f32 %v5145_v34, %v4943_v36 }
 0x64b   :  { %v2529_v33 = vpop.permute.xlu1 %2528  ;;  %v2527_v2 = vpop.permute.xlu0 %2526 }
 0x64c   :  { %v2534_v17 = vsel %vm840_vm9, %v2507_v3, %v2527_v2  ;;  %2695 = vrot.lane.b32.xlu1 %v5117_v21, %s3831_s0  ;;  %v2535_v5 = vsel %vm840_vm9, %v2508_v15, %v2529_v33  ;;  %v6759_v61 = vrot.slane %v5117_v21, 1  ;;  %v928_v3 = vmul.f32 %v5138_v47, %v5057_v11 }
 0x64d   :  { %v2545_v53 = vsel %vm90_vm10, %v2534_v17, %v3575_v10  ;;  %v949_v33 = vadd.f32 %v944_v59, %v914_v25  ;;  %v964_v2 = vadd.f32 %v959_v45, %v929_v58  ;;  %v1003_v11 = vmul.f32 %v5152_v51, %v978_v16 }
 0x64e   :  { %v5155_v46 = vadd.f32 %v5109_v35, %v2545_v53  ;;  %v2546_v17 = vsel %vm90_vm10, %v2535_v5, %v3576_v14  ;;  %v963_v14 = vadd.f32 %v958_v19, %v928_v3  ;;  %v2500_v5 = vadd.f32 %v2463_v43, %v4866_v31  ;;  %v5245_v19 = vld [vmem:[%s6739_s6 + $0xd] ss:$0 sm:$0xff] }
 0x64f   :  { %v1014_v6 = vpop.permute.xlu1 %1013  ;;  %v5172_v8 = vpop.permute.xlu0 %2522  ;;  %v994_v58 = vadd.f32 %v989_v57, %v949_v33  ;;  %v1009_v12 = vadd.f32 %v1004_v0, %v964_v2  ;;  %v6760_v0 = vrot.slane %v5117_v21, 7  ;;  %v5237_v33 = vld [vmem:[%s6739_s6 + $0x5] ss:$0 sm:$0xff]  ;;  %v1064_v2 = vmul.f32 %v5127_v39, %v4935_v63 }
 0x650   :  { %6841 = vst [vmem:[#allocation21_spill] sm:$0xff] %v5155_v46  ;;  %v5181_v29 = vsel %vm4142_vm7, %v1014_v6, 0.0  ;;  %2770 = vrot.lane.b32.xlu1 %v5117_v21, %s3832_s3  ;;  %2697 = vrot.lane.b32.xlu0 %v5155_v46, %s3831_s0  ;;  %v6761_v28 = vrot.slane %v5155_v46, 1  ;;  %v2565_v25 = vrot.slane %v5155_v46, 7  ;;  %6844 = vst [vmem:[#allocation14_spill] sm:$0xff] %v5237_v33 }
 0x651   :  { %v1032_v10 = vmul.f32 %v5160_v55, %v5181_v29 }
 0x652   :  { %v5204_v36 = vsel %vm630_vm6, %v6759_v61, %v6761_v28  ;;  %v5251_v43 = vsel %vm379_vm5, %v6760_v0, %v2565_v25 }
 0x653   :  { %v1037_v15 = vadd.f32 %v1032_v10, %v992_v41  ;;  %v1018_v53 = vpop.permute.xlu1 %1017  ;;  %v1012_v6 = vpop.permute.xlu0 %1011  ;;  %v5232_v10 = vadd.f32 %v5109_v35, %v2546_v17  ;;  %v1008_v17 = vadd.f32 %v1003_v11, %v963_v14  ;;  %v2505_v14 = vmax.f32 %v2500_v5, 0.0 }
 0x654   :  { %v1024_v59 = vsel %vm4142_vm7, %v1018_v53, 0.0  ;;  %v5219_v16 = vsel %vm4142_vm7, %v1012_v6, 0.0  ;;  %2772 = vrot.lane.b32.xlu0 %v5155_v46, %s3832_s3  ;;  %2825 = vrot.lane.b32.xlu1 %v5204_v36, %s3831_s0 }
 0x655   :  { %v1034_v41 = vmul.f32 %v5160_v55, %v1024_v59  ;;  %v1049_v45 = vmul.f32 %v5213_v24, %v1024_v59  ;;  %v1031_v57 = vmul.f32 %v5160_v55, %v5219_v16  ;;  %6843 = vst [vmem:[#allocation15_spill] sm:$0xff] %v5232_v10  ;;  %v2816_v61 = vrot.slane %v5232_v10, 1 }
 0x656   :  { %v2532_v5 = vsel %vm840_vm9, %v2505_v14, %v5172_v8 }
 0x657   :  { %v1039_v53 = vadd.f32 %v1034_v41, %v994_v58  ;;  %v1054_v6 = vadd.f32 %v1049_v45, %v1009_v12  ;;  %v1036_v59 = vadd.f32 %v1031_v57, %v5093_v26  ;;  %v1089_v31 = vpop.permute.xlu1 %1088  ;;  %v1016_v3 = vpop.permute.xlu0 %1015  ;;  %v1079_v12 = vmul.f32 %v5245_v19, %v4935_v63 }
 0x658   :  { %v5255_v58 = vsel %vm4171_vm8, %v1089_v31, 0.0  ;;  %v1023_v26 = vsel %vm4142_vm7, %v1016_v3, 0.0  ;;  %2699 = vrot.lane.b32.xlu1 %v5232_v10, %s3831_s0  ;;  %2577 = vrot.lane.b32.xlu0 %v5251_v43, %s3831_s0  ;;  %v1067_v41 = vadd.f32 %v1062_v7, %v1037_v15  ;;  %v2566_v15 = vrot.slane %v5232_v10, 7 }
 0x659   :  { %v1107_v11 = vmul.f32 %v5237_v33, %v5255_v58  ;;  %v1033_v45 = vmul.f32 %v5160_v55, %v1023_v26  ;;  %v1048_v57 = vmul.f32 %v5213_v24, %v1023_v26  ;;  %v5269_v31 = vadd.f32 %v1064_v2, %v1039_v53  ;;  %v3573_v26 = vld [vmem:[%s6734_s1 + $0x28] sm:$0xff] }
 0x65a   :  { %v5271_v3 = vadd.f32 %v1079_v12, %v1054_v6  ;;  %v1078_v53 = vmul.f32 %v5245_v19, %v4937_v48  ;;  %v1066_v6 = vadd.f32 %v5164_v42, %v1036_v59  ;;  %v5314_v59 = vsel %vm379_vm5, %v2565_v25, %v2566_v15  ;;  %v5335_v15 = vld [vmem:[%s6739_s6 + $0x7] ss:$0 sm:$0xff] }
 0x65b   :  { %6845 = vst [vmem:[#allocation16_spill] sm:$0xff] %v5269_v31  ;;  %v1112_v0 = vadd.f32 %v1107_v11, %v1067_v41  ;;  %v1038_v28 = vadd.f32 %v1033_v45, %v5104_v22  ;;  %v1053_v30 = vadd.f32 %v1048_v57, %v1008_v17  ;;  %v5275_v63 = vpop.permute.xlu1 %1092  ;;  %v1087_v7 = vpop.permute.xlu0 %1086  ;;  %v1063_v22 = vmul.f32 %v5127_v39, %v4937_v48  ;;  %v5302_v17 = vld [vmem:[%s6739_s6 + $0x6] ss:$0 sm:$0xff] }
 0x65c   :  { %v5286_v2 = vsel %vm4171_vm8, %v1087_v7, 0.0  ;;  %2774 = vrot.lane.b32.xlu1 %v5232_v10, %s3832_s3  ;;  %2652 = vrot.lane.b32.xlu0 %v5251_v43, %s3832_s3  ;;  %6846 = vst [vmem:[#allocation17_spill] sm:$0xff] %v5302_v17  ;;  %v2543_v11 = vsel %vm90_vm10, %v2532_v5, %v3573_v26  ;;  %v6847_v48 = vrot.slane %v5155_v46, 1  ;;  %6848 = vst [vmem:[#allocation22_spill] sm:$0xff] %v5314_v59  ;;  %v5392_v10 = vld [vmem:[%s6739_s6 + $0xf] ss:$0 sm:$0xff] }
 0x65d   :  { %v1106_v8 = vmul.f32 %v5237_v33, %v5286_v2  ;;  %v1068_v12 = vadd.f32 %v1063_v22, %v1038_v28  ;;  %v1083_v41 = vadd.f32 %v1078_v53, %v1053_v30  ;;  %v5330_v25 = vadd.f32 %v5109_v35, %v2543_v11 }
 0x65e   :  { %v5310_v42 = vsel %vm630_vm6, %v6847_v48, %v2816_v61  ;;  %v927_v48 = vmul.f32 %v5138_v47, %v5048_v62  ;;  %v1002_v55 = vmul.f32 %v5152_v51, %v5080_v32 }
 0x65f   :  { %v1111_v45 = vadd.f32 %v1106_v8, %v1066_v6  ;;  %v1144_v57 = vpop.permute.xlu1 %1143  ;;  %v1091_v14 = vpop.permute.xlu0 %1090  ;;  %v1192_v8 = vmul.f32 %v5335_v15, %v5001_v38 }
 0x660   :  { %v5318_v28 = vsel %vm4142_vm7, %v1144_v57, 0.0  ;;  %v1098_v30 = vsel %vm4171_vm8, %v1091_v14, 0.0  ;;  %2827 = vrot.lane.b32.xlu0 %v5310_v42, %s3831_s0  ;;  %2579 = vrot.lane.b32.xlu1 %v5314_v59, %s3831_s0  ;;  %v5344_v57 = vld [vmem:[%s6739_s6 + $0xe] ss:$0 sm:$0xff] }
 0x661   :  { %v1162_v7 = vmul.f32 %v5302_v17, %v5318_v28  ;;  %v1108_v26 = vmul.f32 %v5237_v33, %v1098_v30  ;;  %v1123_v11 = vmul.f32 %v5344_v57, %v1098_v30  ;;  %v2563_v30 = vrot.slane %v5330_v25, 7 }
 0x663   :  { %v1167_v5 = vadd.f32 %v1162_v7, %v1112_v0  ;;  %v1113_v22 = vadd.f32 %v1108_v26, %v1068_v12  ;;  %v5337_v53 = vpop.permute.xlu1 %1147  ;;  %v1142_v6 = vpop.permute.xlu0 %1141  ;;  %v956_v0 = vmul.f32 %v5145_v34, %v4906_v44  ;;  %v957_v12 = vmul.f32 %v5145_v34, %v4913_v56  ;;  %v5366_v7 = vld [vmem:[%s6739_s6 + $0x10] ss:$0 sm:$0xff]  ;;  %v5373_v56 = vld [vmem:[%s6739_s6 + $0x8] ss:$0 sm:$0xff] }
 0x664   :  { %v5348_v35 = vsel %vm4142_vm7, %v1142_v6, 0.0  ;;  %2654 = vrot.lane.b32.xlu1 %v5314_v59, %s3832_s3  ;;  %2693 = vrot.lane.b32.xlu0 %v5330_v25, %s3831_s0  ;;  %v1191_v26 = vmul.f32 %v5335_v15, %v5014_v40  ;;  %v1193_v6 = vmul.f32 %v5335_v15, %v5027_v4  ;;  %v1208_v62 = vmul.f32 %v5366_v7, %v5027_v4 }
 0x665   :  { %v1161_v14 = vmul.f32 %v5302_v17, %v5348_v35  ;;  %v1197_v44 = vadd.f32 %v1192_v8, %v1167_v5  ;;  %v5383_v5 = vsel %vm630_vm6, %v2816_v61, %v5005_v20  ;;  %v926_v8 = vmul.f32 %v5138_v47, %v5044_v50 }
 0x666   :  { %v1128_v50 = vadd.f32 %v1123_v11, %v1083_v41  ;;  %v962_v20 = vadd.f32 %v957_v12, %v927_v48  ;;  %v5412_v46 = vsel %vm379_vm5, %v4894_v13, %v2563_v30 }
 0x667   :  { %v1166_v1 = vadd.f32 %v1161_v14, %v1111_v45  ;;  %v1219_v31 = vpop.permute.xlu1 %1218  ;;  %v1146_v33 = vpop.permute.xlu0 %1145 }
 0x668   :  { %v1227_v4 = vsel %vm4171_vm8, %v1219_v31, 0.0  ;;  %v1153_v45 = vsel %vm4142_vm7, %v1146_v33, 0.0  ;;  %2829 = vrot.lane.b32.xlu1 %v5383_v5, %s3831_s0  ;;  %2768 = vrot.lane.b32.xlu0 %v5330_v25, %s3832_s3  ;;  %v1001_v31 = vmul.f32 %v5152_v51, %v5084_v27  ;;  %v1047_v33 = vmul.f32 %v5213_v24, %v5181_v29 }
 0x669   :  { %v1237_v32 = vmul.f32 %v5373_v56, %v1227_v4  ;;  %v1163_v61 = vmul.f32 %v5302_v17, %v1153_v45  ;;  %v1178_v14 = vmul.f32 %v5392_v10, %v1153_v45  ;;  %v6850_v17 = vrot.slane %v5117_v21, 7 }
 0x66a   :  { %v961_v27 = vadd.f32 %v956_v0, %v926_v8  ;;  %v1007_v48 = vadd.f32 %v1002_v55, %v962_v20  ;;  %v1046_v29 = vmul.f32 %v5213_v24, %v5219_v16  ;;  %v2813_v16 = vrot.slane %v5330_v25, 1 }
 0x66b   :  { %v5414_v59 = vadd.f32 %v1237_v32, %v1197_v44  ;;  %v1168_v41 = vadd.f32 %v1163_v61, %v1113_v22  ;;  %v1183_v11 = vadd.f32 %v1178_v14, %v1128_v50  ;;  %v1217_v34 = vpop.permute.xlu0 %1216  ;;  %v5420_v12 = vsel %vm379_vm5, %v2563_v30, %v6850_v17 }
 0x66c   :  { %v1226_v45 = vsel %vm4171_vm8, %v1217_v34, 0.0  ;;  %2573 = vrot.lane.b32.xlu0 %v5412_v46, %s3831_s0  ;;  %2575 = vrot.lane.b32.xlu1 %v5420_v12, %s3831_s0  ;;  %v1196_v22 = vadd.f32 %v1191_v26, %v1166_v1  ;;  %v1006_v30 = vadd.f32 %v1001_v31, %v961_v27  ;;  %v1052_v0 = vadd.f32 %v1047_v33, %v1007_v48 }
 0x66d   :  { %6849 = vst [vmem:[#allocation23_spill] sm:$0xff] %v5414_v59  ;;  %v1236_v44 = vmul.f32 %v5373_v56, %v1226_v45  ;;  %v1198_v50 = vadd.f32 %v1193_v6, %v1168_v41  ;;  %v1213_v17 = vadd.f32 %v1208_v62, %v1183_v11  ;;  %v1077_v1 = vmul.f32 %v5245_v19, %v4901_v49  ;;  %v5468_v11 = vld [vmem:[%s6739_s6 + $0x11] ss:$0 sm:$0xff]  ;;  %s3513_s6 = sld [smem:[#allocation4 + $0x1]] }
 0x66e   :  { %v1051_v8 = vadd.f32 %v1046_v29, %v1006_v30  ;;  %v1122_v6 = vmul.f32 %v5344_v57, %v5255_v58  ;;  %v1076_v62 = vmul.f32 %v5245_v19, %v4891_v54  ;;  %v1121_v32 = vmul.f32 %v5344_v57, %v5286_v2 }
 0x66f   :  { %v5431_v20 = vadd.f32 %v1236_v44, %v1196_v22  ;;  %v1221_v55 = vpop.permute.xlu0 %1220  ;;  %v1082_v61 = vadd.f32 %v1077_v1, %v1052_v0  ;;  %v6853_v31 = vrot.slane %v5117_v21, 1  ;;  %v1177_v41 = vmul.f32 %v5392_v10, %v5318_v28 }
 0x670   :  { %v1228_v34 = vsel %vm4171_vm8, %v1221_v55, 0.0  ;;  %2648 = vrot.lane.b32.xlu0 %v5412_v46, %s3832_s3  ;;  %2650 = vrot.lane.b32.xlu1 %v5420_v12, %s3832_s3  ;;  %v1081_v49 = vadd.f32 %v1076_v62, %v1051_v8  ;;  %v1176_v58 = vmul.f32 %v5392_v10, %v5348_v35  ;;  %v1207_v28 = vmul.f32 %v5366_v7, %v5001_v38 }
 0x671   :  { %6851 = vst [vmem:[#allocation24_spill] sm:$0xff] %v5431_v20  ;;  %v1238_v26 = vmul.f32 %v5373_v56, %v1228_v34  ;;  %v5455_v33 = vsel %vm630_vm6, %v2813_v16, %v6853_v31  ;;  %v1127_v54 = vadd.f32 %v1122_v6, %v1082_v61  ;;  %v1206_v35 = vmul.f32 %v5366_v7, %v5014_v40 }
 0x672   :  { %v1126_v2 = vadd.f32 %v1121_v32, %v1081_v49  ;;  %v1252_v29 = vmul.f32 %v5468_v11, %v1227_v4  ;;  %v1251_v22 = vmul.f32 %v5468_v11, %v1226_v45  ;;  %v1253_v38 = vmul.f32 %v5468_v11, %v1228_v34 }
 0x673   :  { %v5449_v14 = vadd.f32 %v1238_v26, %v1198_v50  ;;  %v1182_v27 = vadd.f32 %v1177_v41, %v1127_v54  ;;  %v5502_v16 = vsel %vm4171_vm8, %v5275_v63, 0.0  ;;  %v1209_v26 = vmul.f32 %v5366_v7, %v5019_v60 }
 0x674   :  { %2823 = vrot.lane.b32.xlu0 %v5455_v33, %s3831_s0  ;;  %1222 = vrot.lane.b32.xlu1 %v5019_v60, %s3832_s3  ;;  %v1181_v48 = vadd.f32 %v1176_v58, %v1126_v2  ;;  %v5493_v40 = vadd.f32 %v1253_v38, %v1213_v17  ;;  %6857 = vst [vmem:[#allocation29_spill] sm:$0xff] %v5502_v16  ;;  %v5509_v17 = vsel %vm4142_vm7, %v5337_v53, 0.0  ;;  %v6862_v38 = vld [vmem:[#allocation21_spill] sm:$0xff] }
 0x675   :  { %6852 = vst [vmem:[#allocation25_spill] sm:$0xff] %v5449_v14  ;;  %v1212_v44 = vadd.f32 %v1207_v28, %v1182_v27  ;;  %6858 = vst [vmem:[#allocation30_spill] sm:$0xff] %v5509_v17  ;;  %v1124_v1 = vmul.f32 %v5344_v57, %v5502_v16  ;;  %v5517_v63 = vmul.f32 %v5127_v39, %v5117_v21 }
 0x676   :  { %v1211_v50 = vadd.f32 %v1206_v35, %v1181_v48  ;;  %6856 = vst [vmem:[#allocation28_spill] sm:$0xff] %v5493_v40  ;;  %v5521_v32 = vmul.f32 %v5245_v19, %v5117_v21  ;;  %v5525_v53 = vmul.f32 %v5335_v15, %v5204_v36  ;;  %v5529_v61 = vmul.f32 %v5335_v15, %v5310_v42 }
 0x677   :  { %v5484_v30 = vadd.f32 %v1252_v29, %v1212_v44  ;;  %v1179_v31 = vmul.f32 %v5392_v10, %v5509_v17  ;;  %v5537_v41 = vmul.f32 %v5366_v7, %v5310_v42  ;;  %v5541_v21 = vmul.f32 %v5335_v15, %v5383_v5  ;;  %v6861_v44 = vld [vmem:[#allocation22_spill] sm:$0xff] }
 0x678   :  { %2898 = vrot.lane.b32.xlu0 %v5455_v33, %s3832_s3  ;;  %2900 = vrot.lane.b32.xlu1 %v5204_v36, %s3832_s3  ;;  %v5486_v0 = vadd.f32 %v1251_v22, %v1211_v50  ;;  %6859 = vst [vmem:[#allocation31_spill] sm:$0xff] %v5525_v53  ;;  %v1129_v2 = vadd.f32 %v1124_v1, %v5271_v3 }
 0x679   :  { %6854 = vst [vmem:[#allocation26_spill] sm:$0xff] %v5484_v30  ;;  %v5548_v27 = vmul.f32 %v5366_v7, %v5383_v5  ;;  %v2625_v48 = vmul.f32 %v5053_v18, %v5251_v43  ;;  %v2626_v50 = vmul.f32 %v5053_v18, %v6861_v44  ;;  %v5592_v59 = vmul.f32 %v5053_v18, %v5412_v46 }
 0x67a   :  { %6855 = vst [vmem:[#allocation27_spill] sm:$0xff] %v5486_v0  ;;  %v1184_v1 = vadd.f32 %v1179_v31, %v1129_v2  ;;  %v5577_v2 = vmul.f32 %v5053_v18, %v5420_v12 }
 0x67c   :  { %2902 = vrot.lane.b32.xlu0 %v5310_v42, %s3832_s3  ;;  %2904 = vrot.lane.b32.xlu1 %v5383_v5, %s3832_s3  ;;  %v6860_v42 = vld [vmem:[#allocation11_spill] sm:$0xff]  ;;  %v2745_v5 = vmul.f32 %v5127_v39, %v6862_v38  ;;  %v5604_v60 = vadd.f32 %v1209_v26, %v1184_v1 }
 0x67d   :  { %v2640_v28 = vmul.f32 %v6860_v42, %v5251_v43  ;;  %v2641_v3 = vmul.f32 %v6860_v42, %v6861_v44  ;;  %v2760_v43 = vmul.f32 %v5245_v19, %v6862_v38 }
 0x680   :  { %1293 = vrot.lane.b32.xlu1 %v5484_v30, %s3829_s28  ;;  %1291 = vrot.lane.b32.xlu0 %v5486_v0, %s3829_s28  ;;  %v6865_v30 = vld [vmem:[#allocation10_spill] sm:$0xff] }
 0x684   :  { %1295 = vrot.lane.b32.xlu0 %v5493_v40, %s3829_s28  ;;  %v6864_v40 = vld [vmem:[#allocation18_spill] sm:$0xff] }
 0x6be   :  { %v2696_v4 = vpop.permute.xlu1 %2695 }
 0x6c2   :  { %v5497_v45 = vpop.permute.xlu1 %2770  ;;  %v2698_v55 = vpop.permute.xlu0 %2697 }
 0x6c3   :  { %v2705_v35 = vsel %vm4142_vm7, %v2698_v55, 0.0 }
 0x6c4   :  { %v2715_v14 = vmul.f32 %v6865_v30, %v2705_v35 }
 0x6c6   :  { %v5504_v8 = vpop.permute.xlu1 %2825  ;;  %v2773_v34 = vpop.permute.xlu0 %2772 }
 0x6ca   :  { %v2700_v6 = vpop.permute.xlu1 %2699  ;;  %v2578_v62 = vpop.permute.xlu0 %2577 }
 0x6cb   :  { %v2585_v49 = vsel %vm4142_vm7, %v2578_v62, 0.0  ;;  %v2706_v18 = vsel %vm4142_vm7, %v2700_v6, 0.0  ;;  %v2779_v6 = vsel %vm4171_vm8, %v5497_v45, 0.0  ;;  %v5625_v45 = vmul.f32 %v5127_v39, %v5330_v25 }
 0x6cc   :  { %v2595_v58 = vmul.f32 %v5040_v52, %v2585_v49  ;;  %v2610_v54 = vmul.f32 %v5138_v47, %v2585_v49  ;;  %v6863_v49 = vld [vmem:[#allocation15_spill] sm:$0xff] }
 0x6cd   :  { %v5568_v55 = vmul.f32 %v5127_v39, %v6863_v49  ;;  %v2761_v31 = vmul.f32 %v5245_v19, %v6863_v49 }
 0x6ce   :  { %v2775_v29 = vpop.permute.xlu1 %2774  ;;  %v2653_v22 = vpop.permute.xlu0 %2652  ;;  %v2630_v23 = vadd.f32 %v2625_v48, %v2595_v58  ;;  %v2645_v13 = vadd.f32 %v2640_v28, %v2610_v54  ;;  %v2730_v58 = vmul.f32 %v5213_v24, %v2705_v35  ;;  %v2780_v54 = vsel %vm4171_vm8, %v2773_v34, 0.0 }
 0x6cf   :  { %v2660_v62 = vsel %vm4171_vm8, %v2653_v22, 0.0  ;;  %v5581_v22 = vmul.f32 %v6860_v42, %v5420_v12  ;;  %v5596_v12 = vmul.f32 %v6860_v42, %v5412_v46 }
 0x6d0   :  { %v2670_v0 = vmul.f32 %v6864_v40, %v2660_v62  ;;  %v2685_v44 = vmul.f32 %v5152_v51, %v2660_v62 }
 0x6d2   :  { %v2675_v48 = vadd.f32 %v2670_v0, %v2630_v23  ;;  %v2690_v28 = vadd.f32 %v2685_v44, %v2645_v13  ;;  %v2580_v38 = vpop.permute.xlu1 %2579  ;;  %v2828_v62 = vpop.permute.xlu0 %2827  ;;  %v2704_v0 = vsel %vm4142_vm7, %v2696_v4, 0.0  ;;  %v6866_v44 = vld [vmem:[#allocation14_spill] sm:$0xff] }
 0x6d3   :  { %v2586_v49 = vsel %vm4142_vm7, %v2580_v38, 0.0  ;;  %v2835_v20 = vsel %vm4142_vm7, %v2828_v62, 0.0  ;;  %v2790_v38 = vmul.f32 %v6866_v44, %v2780_v54  ;;  %v2805_v62 = vmul.f32 %v5344_v57, %v2780_v54 }
 0x6d4   :  { %v2720_v35 = vadd.f32 %v2715_v14, %v2675_v48  ;;  %v2735_v34 = vadd.f32 %v2730_v58, %v2690_v28  ;;  %v2596_v13 = vmul.f32 %v5040_v52, %v2586_v49  ;;  %v2611_v23 = vmul.f32 %v5138_v47, %v2586_v49  ;;  %v6867_v14 = vld [vmem:[#allocation17_spill] sm:$0xff] }
 0x6d5   :  { %v2845_v58 = vmul.f32 %v6867_v14, %v2835_v20  ;;  %v2860_v16 = vmul.f32 %v5392_v10, %v2835_v20  ;;  %v2781_v20 = vsel %vm4171_vm8, %v2775_v29, 0.0  ;;  %v5632_v29 = vmul.f32 %v6866_v44, %v2779_v6 }
 0x6d6   :  { %v2750_v46 = vadd.f32 %v2745_v5, %v2720_v35  ;;  %v2765_v42 = vadd.f32 %v2760_v43, %v2735_v34  ;;  %v2655_v48 = vpop.permute.xlu1 %2654  ;;  %v2694_v28 = vpop.permute.xlu0 %2693  ;;  %v2631_v17 = vadd.f32 %v2626_v50, %v2596_v13  ;;  %v2646_v49 = vadd.f32 %v2641_v3, %v2611_v23 }
 0x6d7   :  { %v2661_v4 = vsel %vm4171_vm8, %v2655_v48, 0.0  ;;  %v2716_v5 = vmul.f32 %v6865_v30, %v2706_v18  ;;  %v2731_v50 = vmul.f32 %v5213_v24, %v2706_v18  ;;  %v5629_v18 = vmul.f32 %v5245_v19, %v5330_v25 }
 0x6d8   :  { %v2795_v53 = vadd.f32 %v2790_v38, %v2750_v46  ;;  %v2810_v54 = vadd.f32 %v2805_v62, %v2765_v42  ;;  %v2671_v26 = vmul.f32 %v6864_v40, %v2661_v4  ;;  %v2686_v1 = vmul.f32 %v5152_v51, %v2661_v4 }
 0x6d9   :  { %v2714_v38 = vmul.f32 %v6865_v30, %v2704_v0  ;;  %v2729_v62 = vmul.f32 %v5213_v24, %v2704_v0  ;;  %v5637_v46 = vmul.f32 %v5344_v57, %v2779_v6  ;;  %v2791_v0 = vmul.f32 %v6866_v44, %v2781_v20 }
 0x6da   :  { %v2850_v3 = vadd.f32 %v2845_v58, %v2795_v53  ;;  %v2865_v43 = vadd.f32 %v2860_v16, %v2810_v54  ;;  %v2676_v35 = vadd.f32 %v2671_v26, %v2631_v17  ;;  %v2691_v34 = vadd.f32 %v2686_v1, %v2646_v49  ;;  %v2830_v13 = vpop.permute.xlu1 %2829  ;;  %v2769_v23 = vpop.permute.xlu0 %2768 }
 0x6db   :  { %v2836_v53 = vsel %vm4142_vm7, %v2830_v13, 0.0  ;;  %v2806_v19 = vmul.f32 %v5344_v57, %v2781_v20  ;;  %v2703_v25 = vsel %vm4142_vm7, %v2694_v28, 0.0 }
 0x6dc   :  { %v2721_v16 = vadd.f32 %v2716_v5, %v2676_v35  ;;  %v2736_v17 = vadd.f32 %v2731_v50, %v2691_v34  ;;  %v5641_v39 = vadd.f32 %v5529_v61, %v2850_v3  ;;  %v5644_v42 = vadd.f32 %v5537_v41, %v2865_v43 }
 0x6dd   :  { %v2846_v54 = vmul.f32 %v6867_v14, %v2836_v53  ;;  %v2861_v26 = vmul.f32 %v5392_v10, %v2836_v53 }
 0x6de   :  { %v2751_v58 = vadd.f32 %v5568_v55, %v2721_v16  ;;  %v2766_v48 = vadd.f32 %v2761_v31, %v2736_v17  ;;  %v2576_v49 = vpop.permute.xlu1 %2575  ;;  %v2574_v4 = vpop.permute.xlu0 %2573  ;;  %v2834_v55 = vsel %vm4142_vm7, %v5504_v8, 0.0  ;;  %v2713_v31 = vmul.f32 %v6865_v30, %v2703_v25 }
 0x6df   :  { %v2584_v61 = vsel %vm4142_vm7, %v2576_v49, 0.0  ;;  %v2583_v41 = vsel %vm4142_vm7, %v2574_v4, 0.0 }
 0x6e0   :  { %v2796_v1 = vadd.f32 %v2791_v0, %v2751_v58  ;;  %v2811_v6 = vadd.f32 %v2806_v19, %v2766_v48  ;;  %v2594_v5 = vmul.f32 %v5040_v52, %v2584_v61  ;;  %v2609_v28 = vmul.f32 %v5138_v47, %v2584_v61 }
 0x6e1   :  { %v2593_v50 = vmul.f32 %v5040_v52, %v2583_v41  ;;  %v2608_v20 = vmul.f32 %v5138_v47, %v2583_v41  ;;  %v2728_v0 = vmul.f32 %v5213_v24, %v2703_v25 }
 0x6e2   :  { %v2851_v3 = vadd.f32 %v2846_v54, %v2796_v1  ;;  %v2866_v43 = vadd.f32 %v2861_v26, %v2811_v6  ;;  %v2629_v35 = vadd.f32 %v5577_v2, %v2594_v5  ;;  %v2644_v34 = vadd.f32 %v5581_v22, %v2609_v28  ;;  %v2651_v13 = vpop.permute.xlu1 %2650  ;;  %v2649_v16 = vpop.permute.xlu0 %2648 }
 0x6e3   :  { %v2628_v17 = vadd.f32 %v5592_v59, %v2593_v50  ;;  %v2643_v53 = vadd.f32 %v5596_v12, %v2608_v20  ;;  %v2659_v8 = vsel %vm4171_vm8, %v2651_v13, 0.0  ;;  %v2658_v52 = vsel %vm4171_vm8, %v2649_v16, 0.0 }
 0x6e4   :  { %v2669_v47 = vmul.f32 %v6864_v40, %v2659_v8  ;;  %v2684_v30 = vmul.f32 %v5152_v51, %v2659_v8  ;;  %v2668_v2 = vmul.f32 %v6864_v40, %v2658_v52  ;;  %v2683_v22 = vmul.f32 %v5152_v51, %v2658_v52 }
 0x6e5   :  { %v2778_v59 = vsel %vm4171_vm8, %v2769_v23, 0.0  ;;  %v5680_v12 = vadd.f32 %v5541_v21, %v2851_v3  ;;  %v2896_v19 = vadd.f32 %v5548_v27, %v2866_v43  ;;  %v2844_v40 = vmul.f32 %v6867_v14, %v2834_v55 }
 0x6e6   :  { %v2674_v58 = vadd.f32 %v2669_v47, %v2629_v35  ;;  %v2689_v48 = vadd.f32 %v2684_v30, %v2644_v34  ;;  %v2673_v49 = vadd.f32 %v2668_v2, %v2628_v17  ;;  %v2688_v4 = vadd.f32 %v2683_v22, %v2643_v53  ;;  %v1223_v54 = vpop.permute.xlu1 %1222  ;;  %v2824_v26 = vpop.permute.xlu0 %2823 }
 0x6e7   :  { %v2859_v51 = vmul.f32 %v5392_v10, %v2834_v55  ;;  %v1229_v24 = vsel %vm4171_vm8, %v1223_v54, 0.0  ;;  %v2833_v23 = vsel %vm4142_vm7, %v2824_v26, 0.0  ;;  %v2788_v41 = vmul.f32 %v6866_v44, %v2778_v59  ;;  %v6870_v26 = vld [vmem:[#allocation30_spill] sm:$0xff] }
 0x6e8   :  { %v2719_v21 = vadd.f32 %v2714_v38, %v2674_v58  ;;  %v2734_v25 = vadd.f32 %v2729_v62, %v2689_v48  ;;  %v2718_v61 = vadd.f32 %v2713_v31, %v2673_v49  ;;  %v2733_v27 = vadd.f32 %v2728_v0, %v2688_v4  ;;  %v6869_v0 = vld [vmem:[#allocation29_spill] sm:$0xff] }
 0x6e9   :  { %v2803_v1 = vmul.f32 %v5344_v57, %v2778_v59  ;;  %v1254_v6 = vmul.f32 %v5468_v11, %v1229_v24  ;;  %v2843_v5 = vmul.f32 %v6867_v14, %v2833_v23  ;;  %v2858_v3 = vmul.f32 %v5392_v10, %v2833_v23 }
 0x6ea   :  { %v2749_v28 = vadd.f32 %v5517_v63, %v2719_v21  ;;  %v2764_v55 = vadd.f32 %v5521_v32, %v2734_v25  ;;  %v2748_v50 = vadd.f32 %v5625_v45, %v2718_v61  ;;  %v2763_v20 = vadd.f32 %v5629_v18, %v2733_v27  ;;  %v2901_v38 = vpop.permute.xlu1 %2900  ;;  %v2899_v62 = vpop.permute.xlu0 %2898  ;;  %v6872_v61 = vld [vmem:[#allocation20_spill] sm:$0xff] }
 0x6eb   :  { %v5698_v31 = vadd.f32 %v1254_v6, %v5604_v60  ;;  %v2909_v57 = vsel %vm4171_vm8, %v2901_v38, 0.0  ;;  %v2908_v43 = vsel %vm4171_vm8, %v2899_v62, 0.0  ;;  %v2889_v18 = vmul.f32 %v5366_v7, %v5204_v36  ;;  %v6877_v38 = vld [vmem:[#allocation27_spill] sm:$0xff] }
 0x6ec   :  { %v2793_v63 = vadd.f32 %v2788_v41, %v2748_v50  ;;  %v2808_v35 = vadd.f32 %v2803_v1, %v2763_v20  ;;  %v2794_v32 = vadd.f32 %v5632_v29, %v2749_v28  ;;  %v2809_v45 = vadd.f32 %v5637_v46, %v2764_v55  ;;  %v6873_v41 = vld [vmem:[#allocation23_spill] sm:$0xff]  ;;  %v6874_v1 = vld [vmem:[#allocation24_spill] sm:$0xff]  ;;  %v6876_v50 = vld [vmem:[#allocation26_spill] sm:$0xff] }
 0x6ed   :  { %v2873_v60 = vmul.f32 %v5335_v15, %v5455_v33  ;;  %v2888_v10 = vmul.f32 %v5366_v7, %v5455_v33  ;;  %v2919_v34 = vmul.f32 %v5373_v56, %v2909_v57  ;;  %1297 = vrot.lane.b32.xlu1 %v5698_v31, %s3829_s28  ;;  %v2934_v8 = vmul.f32 %v5468_v11, %v2909_v57  ;;  %v6868_v33 = vld [vmem:[#allocation31_spill] sm:$0xff]  ;;  %v6878_v57 = vld [vmem:[#allocation28_spill] sm:$0xff] }
 0x6ee   :  { %v2848_v13 = vadd.f32 %v2843_v5, %v2793_v63  ;;  %v2863_v16 = vadd.f32 %v2858_v3, %v2808_v35  ;;  %v2849_v17 = vadd.f32 %v2844_v40, %v2794_v32  ;;  %v2864_v29 = vadd.f32 %v2859_v51, %v2809_v45  ;;  %v2905_v53 = vpop.permute.xlu1 %2904  ;;  %v2903_v46 = vpop.permute.xlu0 %2902  ;;  %v6871_v51 = vld [vmem:[#allocation16_spill] sm:$0xff]  ;;  %v6875_v5 = vld [vmem:[#allocation25_spill] sm:$0xff] }
 0x6ef   :  { %v2933_v36 = vmul.f32 %v5468_v11, %v2908_v43  ;;  %v2911_v52 = vsel %vm4171_vm8, %v2905_v53, 0.0  ;;  %v2910_v7 = vsel %vm4171_vm8, %v2903_v46, 0.0  ;;  %v1109_v59 = vmul.f32 %v6866_v44, %v6869_v0 }
 0x6f0   :  { %v2879_v47 = vadd.f32 %v6868_v33, %v2849_v17  ;;  %v2894_v30 = vadd.f32 %v2889_v18, %v2864_v29  ;;  %v2878_v2 = vadd.f32 %v2873_v60, %v2848_v13  ;;  %v2893_v22 = vadd.f32 %v2888_v10, %v2863_v16 }
 0x6f1   :  { %v2936_v58 = vmul.f32 %v5468_v11, %v2911_v52  ;;  %v2935_v54 = vmul.f32 %v5468_v11, %v2910_v7  ;;  %v1164_v40 = vmul.f32 %v6867_v14, %v6870_v26  ;;  %v1114_v23 = vadd.f32 %v1109_v59, %v6871_v51 }
 0x6f2   :  { %v5726_v48 = vadd.f32 %v2919_v34, %v2879_v47  ;;  %v2939_v49 = vadd.f32 %v2934_v8, %v2894_v30  ;;  %v2938_v4 = vadd.f32 %v2933_v36, %v2893_v22  ;;  %v1194_v11 = vmul.f32 %v5335_v15, %v6872_v61  ;;  %v1292_v15 = vpop.permute.xlu0 %1291  ;;  %v1294_v55 = vpop.permute.xlu1 %1293 }
 0x6f3   :  { %v2941_v21 = vadd.f32 %v2936_v58, %v2896_v19  ;;  %v2940_v44 = vadd.f32 %v2935_v54, %v5644_v42  ;;  %v1169_v25 = vadd.f32 %v1164_v40, %v1114_v23  ;;  %v1239_v27 = vmul.f32 %v5373_v56, %v1229_v24 }
 0x6f4   :  { %2975 = vrot.lane.b32.xlu1 %v2939_v49, %s3829_s28  ;;  %2973 = vrot.lane.b32.xlu0 %v2938_v4, %s3829_s28  ;;  %v2921_v42 = vmul.f32 %v5373_v56, %v2911_v52  ;;  %v2920_v6 = vmul.f32 %v5373_v56, %v2910_v7  ;;  %v1302_v20 = vadd.f32 %v1294_v55, %v6876_v50  ;;  %v5802_v30 = vstv %s3513_s6 }
 0x6f5   :  { %v1199_v14 = vadd.f32 %v1194_v11, %v1169_v25  ;;  %v1301_v62 = vadd.f32 %v1292_v15, %v6877_v38  ;;  %v5818_v55 = vstv %s1321_s23 }
 0x6f6   :  { %v2926_v24 = vadd.f32 %v2921_v42, %v5680_v12  ;;  %v2925_v28 = vadd.f32 %v2920_v6, %v5641_v39  ;;  %v1296_v3 = vpop.permute.xlu0 %1295  ;;  %v2918_v12 = vmul.f32 %v5373_v56, %v2908_v43 }
 0x6f7   :  { %v1244_v19 = vadd.f32 %v1239_v27, %v1199_v14  ;;  %v1303_v63 = vadd.f32 %v1296_v3, %v6878_v57 }
 0x6f8   :  { %2979 = vrot.lane.b32.xlu1 %v2941_v21, %s3829_s28  ;;  %2977 = vrot.lane.b32.xlu0 %v2940_v44, %s3829_s28  ;;  %v5760_v39 = vadd.f32 %v2918_v12, %v2878_v2 }
 0x6fc   :  { %1263 = vrot.lane.b32.xlu1 %v6873_v41, %s3829_s28  ;;  %1261 = vrot.lane.b32.xlu0 %v6874_v1, %s3829_s28 }
 0x700   :  { %1267 = vrot.lane.b32.xlu1 %v1244_v19, %s3829_s28  ;;  %1265 = vrot.lane.b32.xlu0 %v6875_v5, %s3829_s28 }
 0x704   :  { %2949 = vrot.lane.b32.xlu1 %v2926_v24, %s3829_s28  ;;  %2947 = vrot.lane.b32.xlu0 %v2925_v28, %s3829_s28 }
 0x708   :  { %1308 = vrot.lane.b32.xlu1 %v1302_v20, %s3830_s29  ;;  %1306 = vrot.lane.b32.xlu0 %v1301_v62, %s3830_s29 }
 0x70c   :  { %1310 = vrot.lane.b32.xlu0 %v1303_v63, %s3830_s29 }
 0x710   :  { %2943 = vrot.lane.b32.xlu0 %v5760_v39, %s3829_s28 }
 0x75f   :  { %v1298_v35 = vpop.permute.xlu1 %1297 }
 0x760   :  { %v1304_v32 = vadd.f32 %v1298_v35, %v5698_v31 }
 0x762   :  { %1312 = vrot.lane.b32.xlu1 %v1304_v32, %s3830_s29 }
 0x766   :  { %2945 = vrot.lane.b32.xlu1 %v5726_v48, %s3829_s28  ;;  %v2976_v45 = vpop.permute.xlu1 %2975  ;;  %v2974_v18 = vpop.permute.xlu0 %2973 }
 0x767   :  { %v5768_v60 = vadd.f32 %v2976_v45, %v2939_v49  ;;  %v5770_v56 = vadd.f32 %v2974_v18, %v2938_v4 }
 0x769   :  { %2988 = vrot.lane.b32.xlu0 %v5770_v56, %s3830_s29 }
 0x76a   :  { %2990 = vrot.lane.b32.xlu1 %v5768_v60, %s3830_s29  ;;  %v2980_v43 = vpop.permute.xlu1 %2979  ;;  %v2978_v10 = vpop.permute.xlu0 %2977 }
 0x76b   :  { %v5776_v31 = vadd.f32 %v2980_v43, %v2941_v21  ;;  %v5778_v34 = vadd.f32 %v2978_v10, %v2940_v44 }
 0x76d   :  { %2992 = vrot.lane.b32.xlu0 %v5778_v34, %s3830_s29 }
 0x76e   :  { %2994 = vrot.lane.b32.xlu1 %v5776_v31, %s3830_s29  ;;  %v1264_v13 = vpop.permute.xlu1 %1263  ;;  %v1262_v16 = vpop.permute.xlu0 %1261 }
 0x76f   :  { %v1272_v17 = vadd.f32 %v1264_v13, %v6873_v41  ;;  %v1271_v29 = vadd.f32 %v1262_v16, %v6874_v1 }
 0x771   :  { %1276 = vrot.lane.b32.xlu0 %v1271_v29, %s3830_s29 }
 0x772   :  { %1278 = vrot.lane.b32.xlu1 %v1272_v17, %s3830_s29  ;;  %v1268_v53 = vpop.permute.xlu1 %1267  ;;  %v1266_v46 = vpop.permute.xlu0 %1265 }
 0x773   :  { %v5788_v8 = vadd.f32 %v1268_v53, %v1244_v19  ;;  %v1273_v36 = vadd.f32 %v1266_v46, %v6875_v5 }
 0x775   :  { %1280 = vrot.lane.b32.xlu0 %v1273_v36, %s3830_s29 }
 0x776   :  { %1282 = vrot.lane.b32.xlu1 %v5788_v8, %s3830_s29  ;;  %v2950_v52 = vpop.permute.xlu1 %2949  ;;  %v2948_v7 = vpop.permute.xlu0 %2947 }
 0x777   :  { %v5794_v33 = vadd.f32 %v2950_v52, %v2926_v24  ;;  %v5796_v47 = vadd.f32 %v2948_v7, %v2925_v28 }
 0x779   :  { %2962 = vrot.lane.b32.xlu0 %v5796_v47, %s3830_s29 }
 0x77a   :  { %2964 = vrot.lane.b32.xlu1 %v5794_v33, %s3830_s29  ;;  %v1309_v2 = vpop.permute.xlu1 %1308  ;;  %v1307_v22 = vpop.permute.xlu0 %1306 }
 0x77b   :  { %v1317_v0 = vadd.f32 %v1309_v2, %v1302_v20  ;;  %v1316_v59 = vadd.f32 %v1307_v22, %v1301_v62 }
 0x77d   :  { %v1336_v58 = vadd.f32 %v5802_v30, %v1317_v0  ;;  %v1335_v49 = vadd.f32 %v5802_v30, %v1316_v59 }
 0x77e   :  { %v1311_v4 = vpop.permute.xlu0 %1310 }
 0x77f   :  { %v1341_v54 = vmax.f32 %v1336_v58, 0.0  ;;  %v1340_v26 = vmax.f32 %v1335_v49, 0.0  ;;  %v1318_v40 = vadd.f32 %v1311_v4, %v1303_v63 }
 0x781   :  { %v1337_v51 = vadd.f32 %v5802_v30, %v1318_v40  ;;  %1352 = vrot.lane.b32.xlu1 %v1341_v54, %s3826_s27  ;;  %1350 = vrot.lane.b32.xlu0 %v1340_v26, %s3826_s27 }
 0x782   :  { %v2944_v25 = vpop.permute.xlu0 %2943 }
 0x783   :  { %v1342_v23 = vmax.f32 %v1337_v51, 0.0  ;;  %v5879_v26 = vadd.f32 %v2944_v25, %v5760_v39 }
 0x785   :  { %1354 = vrot.lane.b32.xlu0 %v1342_v23, %s3826_s27 }
 0x7d4   :  { %v1313_v21 = vpop.permute.xlu1 %1312 }
 0x7d5   :  { %v1319_v44 = vadd.f32 %v1313_v21, %v1304_v32 }
 0x7d7   :  { %v1338_v61 = vadd.f32 %v5802_v30, %v1319_v44 }
 0x7d8   :  { %v5811_v11 = vpop.permute.xlu1 %2945 }
 0x7d9   :  { %v1343_v27 = vmax.f32 %v1338_v61, 0.0 }
 0x7db   :  { %1356 = vrot.lane.b32.xlu1 %v1343_v27, %s3826_s27  ;;  %v2989_v14 = vpop.permute.xlu0 %2988 }
 0x7dc   :  { %v5814_v41 = vpop.permute.xlu1 %2990  ;;  %v2998_v40 = vadd.f32 %v2989_v14, %v5770_v56 }
 0x7de   :  { %v3017_v23 = vadd.f32 %v2998_v40, %v5802_v30 }
 0x7df   :  { %v2993_v1 = vpop.permute.xlu0 %2992 }
 0x7e0   :  { %v5816_v19 = vpop.permute.xlu1 %2994  ;;  %v3000_v54 = vadd.f32 %v2993_v1, %v5778_v34  ;;  %v3022_v44 = vmax.f32 %v3017_v23, 0.0 }
 0x7e2   :  { %v3019_v51 = vadd.f32 %v3000_v54, %v5802_v30 }
 0x7e3   :  { %v1277_v42 = vpop.permute.xlu0 %1276 }
 0x7e4   :  { %v1279_v6 = vpop.permute.xlu1 %1278  ;;  %v1286_v28 = vadd.f32 %v1277_v42, %v1271_v29  ;;  %v3024_v21 = vmax.f32 %v3019_v51, 0.0 }
 0x7e5   :  { %v1287_v24 = vadd.f32 %v1279_v6, %v1272_v17 }
 0x7e6   :  { %v1323_v20 = vadd.f32 %v5818_v55, %v1286_v28  ;;  %v2999_v28 = vadd.f32 %v5814_v41, %v5768_v60  ;;  %v5957_v60 = vld [vmem:[%s6740_s7] ss:$0 sm:$0xff] }
 0x7e7   :  { %v1281_v15 = vpop.permute.xlu0 %1280  ;;  %v1324_v50 = vadd.f32 %v5818_v55, %v1287_v24  ;;  %v5939_v24 = vadd.f32 %v5811_v11, %v5726_v48  ;;  %v5952_v48 = vld [vmem:[%s6740_s7 + $0x1] ss:$0 sm:$0xff]  ;;  %6883 = vst [vmem:[#allocation22_spill] sm:$0xff] %v5957_v60  ;;  %v5967_v11 = vld [vmem:[%s6740_s7 + $0xa] ss:$0 sm:$0xff] }
 0x7e8   :  { %v1283_v5 = vpop.permute.xlu1 %1282  ;;  %v1288_v38 = vadd.f32 %v1281_v15, %v1273_v36  ;;  %v1328_v63 = vmax.f32 %v1323_v20, 0.0  ;;  %v6880_v36 = vld [vmem:[#allocation19_spill] sm:$0xff]  ;;  %v3001_v15 = vadd.f32 %v5816_v19, %v5776_v31  ;;  %v3018_v31 = vadd.f32 %v2999_v28, %v5802_v30  ;;  %6882 = vst [vmem:[#allocation11_spill] sm:$0xff] %v5952_v48 }
 0x7e9   :  { %v1329_v57 = vmax.f32 %v1324_v50, 0.0  ;;  %v1289_v34 = vadd.f32 %v1283_v5, %v5788_v8 }
 0x7ea   :  { %v1325_v12 = vadd.f32 %v5818_v55, %v1288_v38  ;;  %v3020_v50 = vadd.f32 %v3001_v15, %v5802_v30  ;;  %v3023_v20 = vmax.f32 %v3018_v31, 0.0  ;;  %v5962_v30 = vld [vmem:[%s6740_s7 + $0x9] ss:$0 sm:$0xff]  ;;  %v6884_v15 = vld [vmem:[#allocation13_spill] sm:$0xff] }
 0x7eb   :  { %v5824_v3 = vpop.permute.xlu0 %2962  ;;  %v1326_v25 = vadd.f32 %v5818_v55, %v1289_v34 }
 0x7ec   :  { %v5822_v62 = vpop.permute.xlu1 %2964  ;;  %v1330_v16 = vmax.f32 %v1325_v12, 0.0  ;;  %v3025_v19 = vmax.f32 %v3020_v50, 0.0  ;;  %v2970_v23 = vadd.f32 %v5824_v3, %v5796_v47 }
 0x7ed   :  { %v1331_v61 = vmax.f32 %v1326_v25, 0.0 }
 0x7f3   :  { %v1353_v35 = vpop.permute.xlu1 %1352  ;;  %v1351_v32 = vpop.permute.xlu0 %1350 }
 0x7f4   :  { %v1361_v18 = vsel %vm840_vm9, %v1329_v57, %v1353_v35  ;;  %v1360_v43 = vsel %vm840_vm9, %v1328_v63, %v1351_v32 }
 0x7f5   :  { %v5833_v10 = vsel %vm90_vm10, %v1361_v18, 0.0  ;;  %v5837_v13 = vsel %vm90_vm10, %v1360_v43, 0.0 }
 0x7f6   :  { %v1370_v17 = vrot.slane %v5837_v13, 7  ;;  %v1371_v29 = vrot.slane %v5833_v10, 7  ;;  %v1584_v59 = vrot.slane %v5833_v10, 1  ;;  %v1583_v39 = vrot.slane %v5837_v13, 1 }
 0x7f7   :  { %v1355_v53 = vpop.permute.xlu0 %1354 }
 0x7f8   :  { %v1362_v46 = vsel %vm840_vm9, %v1330_v16, %v1355_v53  ;;  %v5846_v7 = vsel %vm379_vm5, %v6880_v36, %v1370_v17  ;;  %v5850_v2 = vsel %vm379_vm5, %v1370_v17, %v1371_v29  ;;  %v5899_v56 = vsel %vm630_vm6, %v1583_v39, %v1584_v59 }
 0x7f9   :  { %v5854_v22 = vsel %vm90_vm10, %v1362_v46, 0.0  ;;  %1379 = vrot.lane.b32.xlu0 %v5846_v7, %s3831_s0  ;;  %1381 = vrot.lane.b32.xlu1 %v5850_v2, %s3831_s0  ;;  %v1422_v57 = vmul.f32 %v5952_v48, %v5846_v7  ;;  %v1435_v63 = vmul.f32 %v5967_v11, %v5846_v7 }
 0x7fa   :  { %v1372_v0 = vrot.slane %v5854_v22, 7  ;;  %v1585_v58 = vrot.slane %v5854_v22, 1 }
 0x7fc   :  { %v5865_v49 = vsel %vm379_vm5, %v1371_v29, %v1372_v0  ;;  %v5869_v4 = vsel %vm630_vm6, %v1584_v59, %v1585_v58 }
 0x7fd   :  { %1383 = vrot.lane.b32.xlu0 %v5865_v49, %s3831_s0  ;;  %v1424_v17 = vmul.f32 %v5952_v48, %v5865_v49  ;;  %v1437_v29 = vmul.f32 %v5967_v11, %v5865_v49 }
 0x801   :  { %1443 = vrot.lane.b32.xlu0 %v5846_v7, %s3832_s3  ;;  %v5992_v7 = vld [vmem:[%s6740_s7 + $0x2] ss:$0 sm:$0xff] }
 0x805   :  { %1447 = vrot.lane.b32.xlu0 %v5865_v49, %s3832_s3 }
 0x809   :  { %2958 = vrot.lane.b32.xlu0 %v5879_v26, %s3830_s29 }
 0x80d   :  { %3031 = vrot.lane.b32.xlu0 %v3024_v21, %s3826_s27 }
 0x811   :  { %3027 = vrot.lane.b32.xlu0 %v3022_v44, %s3826_s27 }
 0x815   :  { %1481 = vrot.lane.b32.xlu0 %v5837_v13, %s3831_s0 }
 0x819   :  { %1485 = vrot.lane.b32.xlu0 %v5854_v22, %s3831_s0 }
 0x81d   :  { %1545 = vrot.lane.b32.xlu0 %v5837_v13, %s3832_s3 }
 0x821   :  { %1549 = vrot.lane.b32.xlu0 %v5854_v22, %s3832_s3 }
 0x825   :  { %1592 = vrot.lane.b32.xlu0 %v5899_v56, %s3831_s0 }
 0x84d   :  { %v1357_v27 = vpop.permute.xlu1 %1356 }
 0x84e   :  { %v1363_v14 = vsel %vm840_vm9, %v1331_v61, %v1357_v27  ;;  %v3007_v27 = vadd.f32 %v2970_v23, %v5818_v55 }
 0x84f   :  { %v5909_v1 = vsel %vm90_vm10, %v1363_v14, 0.0 }
 0x850   :  { %v1586_v42 = vrot.slane %v5909_v1, 1  ;;  %v1373_v6 = vrot.slane %v5909_v1, 7  ;;  %v3012_v3 = vmax.f32 %v3007_v27, 0.0 }
 0x852   :  { %v5917_v8 = vsel %vm630_vm6, %v1585_v58, %v1586_v42  ;;  %v5921_v5 = vsel %vm379_vm5, %v1372_v0, %v1373_v6  ;;  %v5997_v0 = vld [vmem:[%s6740_s7 + $0xb] ss:$0 sm:$0xff]  ;;  %v6023_v28 = vsel %vm630_vm6, %v1586_v42, %v6884_v15  ;;  %v6044_v42 = vld [vmem:[%s6740_s7 + $0x3] ss:$0 sm:$0xff] }
 0x853   :  { %1596 = vrot.lane.b32.xlu0 %v5917_v8, %s3831_s0  ;;  %1385 = vrot.lane.b32.xlu1 %v5921_v5, %s3831_s0 }
 0x857   :  { %1656 = vrot.lane.b32.xlu0 %v5899_v56, %s3832_s3  ;;  %1445 = vrot.lane.b32.xlu1 %v5850_v2, %s3832_s3 }
 0x85b   :  { %1660 = vrot.lane.b32.xlu0 %v5917_v8, %s3832_s3  ;;  %1449 = vrot.lane.b32.xlu1 %v5921_v5, %s3832_s3 }
 0x85f   :  { %2960 = vrot.lane.b32.xlu1 %v5939_v24, %s3830_s29 }
 0x863   :  { %3033 = vrot.lane.b32.xlu1 %v3025_v19, %s3826_s27 }
 0x867   :  { %3029 = vrot.lane.b32.xlu1 %v3023_v20, %s3826_s27 }
 0x86b   :  { %1483 = vrot.lane.b32.xlu1 %v5833_v10, %s3831_s0  ;;  %v1380_v41 = vpop.permute.xlu0 %1379 }
 0x86c   :  { %v1387_v38 = vsel %vm4142_vm7, %v1380_v41, 0.0  ;;  %v6049_v41 = vld [vmem:[%s6740_s7 + $0xc] ss:$0 sm:$0xff] }
 0x86d   :  { %v1396_v12 = vmul.f32 %v5957_v60, %v1387_v38  ;;  %v1409_v35 = vmul.f32 %v5962_v30, %v1387_v38 }
 0x86f   :  { %v1426_v32 = vadd.f32 %v1422_v57, %v1396_v12  ;;  %v1439_v18 = vadd.f32 %v1435_v63, %v1409_v35  ;;  %1487 = vrot.lane.b32.xlu1 %v5909_v1, %s3831_s0  ;;  %v1384_v43 = vpop.permute.xlu0 %1383  ;;  %v6058_v63 = vld [vmem:[%s6740_s7 + $0x4] ss:$0 sm:$0xff]  ;;  %v6063_v12 = vld [vmem:[%s6740_s7 + $0xd] ss:$0 sm:$0xff] }
 0x870   :  { %v1389_v16 = vsel %vm4142_vm7, %v1384_v43, 0.0 }
 0x871   :  { %v1398_v53 = vmul.f32 %v5957_v60, %v1389_v16  ;;  %v1411_v46 = vmul.f32 %v5962_v30, %v1389_v16 }
 0x873   :  { %v1428_v59 = vadd.f32 %v1424_v17, %v1398_v53  ;;  %v1441_v58 = vadd.f32 %v1437_v29, %v1411_v46  ;;  %1547 = vrot.lane.b32.xlu1 %v5833_v10, %s3832_s3  ;;  %v1444_v49 = vpop.permute.xlu0 %1443  ;;  %v1524_v17 = vmul.f32 %v6058_v63, %v5837_v13  ;;  %v1537_v29 = vmul.f32 %v6063_v12, %v5837_v13 }
 0x874   :  { %v1451_v54 = vsel %vm4171_vm8, %v1444_v49, 0.0  ;;  %v1526_v13 = vmul.f32 %v6058_v63, %v5854_v22 }
 0x875   :  { %v1460_v40 = vmul.f32 %v5992_v7, %v1451_v54  ;;  %v1473_v51 = vmul.f32 %v5997_v0, %v1451_v54  ;;  %v6080_v54 = vld [vmem:[%s6740_s7 + $0x5] ss:$0 sm:$0xff] }
 0x877   :  { %v1464_v21 = vadd.f32 %v1460_v40, %v1426_v32  ;;  %v1477_v44 = vadd.f32 %v1473_v51, %v1439_v18  ;;  %1551 = vrot.lane.b32.xlu1 %v5909_v1, %s3832_s3  ;;  %v1448_v39 = vpop.permute.xlu0 %1447 }
 0x878   :  { %v1453_v34 = vsel %vm4171_vm8, %v1448_v39, 0.0 }
 0x879   :  { %v1462_v25 = vmul.f32 %v5992_v7, %v1453_v34  ;;  %v1475_v61 = vmul.f32 %v5997_v0, %v1453_v34 }
 0x87b   :  { %v1466_v14 = vadd.f32 %v1462_v25, %v1428_v59  ;;  %v1479_v6 = vadd.f32 %v1475_v61, %v1441_v58  ;;  %1594 = vrot.lane.b32.xlu1 %v5869_v4, %s3831_s0  ;;  %v6016_v47 = vpop.permute.xlu0 %2958 }
 0x87f   :  { %1598 = vrot.lane.b32.xlu1 %v6023_v28, %s3831_s0  ;;  %v3032_v50 = vpop.permute.xlu0 %3031 }
 0x880   :  { %v3039_v31 = vsel %vm840_vm9, %v3012_v3, %v3032_v50 }
 0x881   :  { %v6031_v19 = vsel %vm90_vm10, %v3039_v31, 0.0 }
 0x882   :  { %3162 = vrot.lane.b32.xlu0 %v6031_v19, %s3831_s0 }
 0x883   :  { %1658 = vrot.lane.b32.xlu1 %v5869_v4, %s3832_s3  ;;  %v6037_v20 = vpop.permute.xlu0 %3027 }
 0x886   :  { %3226 = vrot.lane.b32.xlu0 %v6031_v19, %s3832_s3 }
 0x887   :  { %1662 = vrot.lane.b32.xlu1 %v6023_v28, %s3832_s3  ;;  %v1482_v38 = vpop.permute.xlu0 %1481 }
 0x888   :  { %v1489_v57 = vsel %vm4142_vm7, %v1482_v38, 0.0 }
 0x889   :  { %v1498_v35 = vmul.f32 %v6044_v42, %v1489_v57  ;;  %v1511_v32 = vmul.f32 %v6049_v41, %v1489_v57 }
 0x88b   :  { %v1502_v18 = vadd.f32 %v1498_v35, %v1464_v21  ;;  %v1515_v43 = vadd.f32 %v1511_v32, %v1477_v44  ;;  %v1486_v16 = vpop.permute.xlu0 %1485  ;;  %v1539_v21 = vmul.f32 %v6063_v12, %v5854_v22  ;;  %v6098_v22 = vld [vmem:[%s6740_s7 + $0x6] ss:$0 sm:$0xff]  ;;  %v1382_v35 = vpop.permute.xlu1 %1381  ;;  %v6109_v32 = vld [vmem:[%s6740_s7 + $0xe] ss:$0 sm:$0xff] }
 0x88c   :  { %v1491_v53 = vsel %vm4142_vm7, %v1486_v16, 0.0 }
 0x88d   :  { %v1500_v46 = vmul.f32 %v6044_v42, %v1491_v53  ;;  %v1513_v59 = vmul.f32 %v6049_v41, %v1491_v53  ;;  %v1528_v58 = vadd.f32 %v1524_v17, %v1502_v18  ;;  %v6075_v49 = vadd.f32 %v1537_v29, %v1515_v43  ;;  %v6121_v53 = vld [vmem:[%s6740_s7 + $0xf] ss:$0 sm:$0xff] }
 0x88e   :  { %v6113_v18 = vsel %vm4142_vm7, %v1382_v35, 0.0 }
 0x88f   :  { %v1504_v40 = vadd.f32 %v1500_v46, %v1466_v14  ;;  %v1517_v51 = vadd.f32 %v1513_v59, %v1479_v6  ;;  %v1546_v23 = vpop.permute.xlu0 %1545  ;;  %v1397_v29 = vmul.f32 %v5957_v60, %v6113_v18  ;;  %v1425_v59 = vmul.f32 %v5952_v48, %v5921_v5 }
 0x890   :  { %v6088_v44 = vsel %vm4171_vm8, %v1546_v23, 0.0 }
 0x891   :  { %v1562_v39 = vmul.f32 %v6080_v54, %v6088_v44  ;;  %v1530_v34 = vadd.f32 %v1526_v13, %v1504_v40  ;;  %v1543_v25 = vadd.f32 %v1539_v21, %v1517_v51  ;;  %v6132_v40 = vld [vmem:[%s6740_s7 + $0x7] ss:$0 sm:$0xff] }
 0x893   :  { %v1566_v61 = vadd.f32 %v1562_v39, %v1528_v58  ;;  %v1550_v27 = vpop.permute.xlu0 %1549  ;;  %v1423_v39 = vmul.f32 %v5952_v48, %v5850_v2 }
 0x894   :  { %v1555_v14 = vsel %vm4171_vm8, %v1550_v27, 0.0 }
 0x895   :  { %v1564_v6 = vmul.f32 %v6080_v54, %v1555_v14  ;;  %v1577_v43 = vmul.f32 %v6109_v32, %v1555_v14 }
 0x897   :  { %v1568_v3 = vadd.f32 %v1564_v6, %v1530_v34  ;;  %v1593_v50 = vpop.permute.xlu0 %1592  ;;  %v1581_v51 = vadd.f32 %v1577_v43, %v1543_v25  ;;  %v6142_v34 = vld [vmem:[%s6740_s7 + $0x8] ss:$0 sm:$0xff]  ;;  %v1635_v25 = vmul.f32 %v6132_v40, %v5899_v56 }
 0x898   :  { %v6102_v31 = vsel %vm4142_vm7, %v1593_v50, 0.0  ;;  %6885 = vst [vmem:[#allocation21_spill] sm:$0xff] %v6142_v34  ;;  %v6149_v50 = vld [vmem:[%s6740_s7 + $0x10] ss:$0 sm:$0xff] }
 0x899   :  { %v1609_v38 = vmul.f32 %v6098_v22, %v6102_v31 }
 0x89b   :  { %v1613_v57 = vadd.f32 %v1609_v38, %v1566_v61 }
 0x8c5   :  { %v1386_v16 = vpop.permute.xlu1 %1385  ;;  %v1597_v17 = vpop.permute.xlu0 %1596 }
 0x8c6   :  { %v1390_v46 = vsel %vm4142_vm7, %v1386_v16, 0.0  ;;  %v1602_v58 = vsel %vm4142_vm7, %v1597_v17, 0.0  ;;  %v1650_v16 = vmul.f32 %v6149_v50, %v5917_v8  ;;  %v1427_v17 = vadd.f32 %v1423_v39, %v1397_v29 }
 0x8c7   :  { %v1399_v23 = vmul.f32 %v5957_v60, %v1390_v46  ;;  %v1611_v13 = vmul.f32 %v6098_v22, %v1602_v58  ;;  %v1624_v21 = vmul.f32 %v6121_v53, %v1602_v58  ;;  %v1639_v58 = vadd.f32 %v1635_v25, %v1613_v57 }
 0x8c8   :  { %v2968_v39 = vadd.f32 %v6016_v47, %v5879_v26  ;;  %v6797_v26 = vrot.slane %v6031_v19, 1 }
 0x8c9   :  { %v1429_v61 = vadd.f32 %v1425_v59, %v1399_v23  ;;  %v1615_v27 = vadd.f32 %v1611_v13, %v1568_v3  ;;  %v1628_v14 = vadd.f32 %v1624_v21, %v1581_v51  ;;  %v1446_v6 = vpop.permute.xlu1 %1445  ;;  %v1657_v38 = vpop.permute.xlu0 %1656  ;;  %v1637_v3 = vmul.f32 %v6132_v40, %v5917_v8 }
 0x8ca   :  { %v6153_v35 = vsel %vm4171_vm8, %v1446_v6, 0.0  ;;  %v6157_v43 = vsel %vm4171_vm8, %v1657_v38, 0.0  ;;  %v2971_v23 = vadd.f32 %v5822_v62, %v5794_v33 }
 0x8cb   :  { %v1461_v59 = vmul.f32 %v5992_v7, %v6153_v35  ;;  %v1673_v51 = vmul.f32 %v6142_v34, %v6157_v43  ;;  %v1641_v13 = vadd.f32 %v1637_v3, %v1615_v27  ;;  %v6169_v21 = vadd.f32 %v1650_v16, %v1628_v14 }
 0x8cc   :  { %v3008_v62 = vadd.f32 %v2971_v23, %v5818_v55 }
 0x8cd   :  { %v1465_v6 = vadd.f32 %v1461_v59, %v1427_v17  ;;  %v6171_v38 = vadd.f32 %v1673_v51, %v1639_v58  ;;  %v1450_v48 = vpop.permute.xlu1 %1449  ;;  %v1661_v60 = vpop.permute.xlu0 %1660 }
 0x8ce   :  { %v1454_v8 = vsel %vm4171_vm8, %v1450_v48, 0.0  ;;  %v6177_v57 = vsel %vm4171_vm8, %v1661_v60, 0.0  ;;  %v3013_v3 = vmax.f32 %v3008_v62, 0.0  ;;  %v3005_v48 = vadd.f32 %v2968_v39, %v5818_v55 }
 0x8cf   :  { %v1463_v29 = vmul.f32 %v5992_v7, %v1454_v8  ;;  %v1675_v33 = vmul.f32 %v6142_v34, %v6177_v57 }
 0x8d1   :  { %v1467_v27 = vadd.f32 %v1463_v29, %v1429_v61  ;;  %v6185_v14 = vadd.f32 %v1675_v33, %v1641_v13  ;;  %v2961_v25 = vpop.permute.xlu1 %2960  ;;  %v3010_v61 = vmax.f32 %v3005_v48, 0.0  ;;  %v3049_v33 = vrot.slane %v6031_v19, 7 }
 0x8d2   :  { %v2969_v60 = vadd.f32 %v2961_v25, %v5939_v24  ;;  %v1438_v25 = vmul.f32 %v5967_v11, %v5921_v5 }
 0x8d3   :  { %v3037_v23 = vsel %vm840_vm9, %v3010_v61, %v6037_v20 }
 0x8d4   :  { %v3006_v51 = vadd.f32 %v2969_v60, %v5818_v55  ;;  %v1412_v55 = vmul.f32 %v5962_v30, %v1390_v46  ;;  %v6218_v62 = vsel %vm90_vm10, %v3037_v23, 0.0 }
 0x8d5   :  { %v3034_v16 = vpop.permute.xlu1 %3033  ;;  %v3047_v61 = vrot.slane %v6218_v62, 7 }
 0x8d6   :  { %v3040_v17 = vsel %vm840_vm9, %v3013_v3, %v3034_v16  ;;  %v3011_v39 = vmax.f32 %v3006_v51, 0.0  ;;  %v1476_v3 = vmul.f32 %v5997_v0, %v1454_v8  ;;  %v1442_v60 = vadd.f32 %v1438_v25, %v1412_v55 }
 0x8d7   :  { %v6193_v59 = vsel %vm90_vm10, %v3040_v17, 0.0  ;;  %v1527_v25 = vmul.f32 %v6058_v63, %v5909_v1 }
 0x8d8   :  { %3164 = vrot.lane.b32.xlu1 %v6193_v59, %s3831_s0  ;;  %v3263_v47 = vrot.slane %v6193_v59, 1  ;;  %v3050_v13 = vrot.slane %v6193_v59, 7  ;;  %v1480_v51 = vadd.f32 %v1476_v3, %v1442_v60  ;;  %v1540_v3 = vmul.f32 %v6063_v12, %v5909_v1 }
 0x8d9   :  { %v3030_v58 = vpop.permute.xlu1 %3029 }
 0x8da   :  { %v6204_v24 = vsel %vm630_vm6, %v6797_v26, %v3263_v47  ;;  %v6233_v48 = vsel %vm379_vm5, %v3049_v33, %v3050_v13  ;;  %v3038_v16 = vsel %vm840_vm9, %v3011_v39, %v3030_v58 }
 0x8db   :  { %3273 = vrot.lane.b32.xlu0 %v6204_v24, %s3831_s0  ;;  %v6244_v23 = vsel %vm90_vm10, %v3038_v16, 0.0  ;;  %v6265_v16 = vsel %vm379_vm5, %v6880_v36, %v3047_v61 }
 0x8dc   :  { %3228 = vrot.lane.b32.xlu1 %v6193_v59, %s3832_s3  ;;  %v3048_v60 = vrot.slane %v6244_v23, 7 }
 0x8dd   :  { %v1484_v29 = vpop.permute.xlu1 %1483 }
 0x8de   :  { %v6222_v20 = vsel %vm4142_vm7, %v1484_v29, 0.0 }
 0x8df   :  { %v1499_v46 = vmul.f32 %v6044_v42, %v6222_v20  ;;  %3158 = vrot.lane.b32.xlu0 %v6218_v62, %s3831_s0 }
 0x8e0   :  { %3062 = vrot.lane.b32.xlu1 %v6233_v48, %s3831_s0 }
 0x8e1   :  { %v1503_v5 = vadd.f32 %v1499_v46, %v1465_v6  ;;  %v1488_v17 = vpop.permute.xlu1 %1487  ;;  %v1525_v6 = vmul.f32 %v6058_v63, %v5833_v10 }
 0x8e2   :  { %v1492_v8 = vsel %vm4142_vm7, %v1488_v17, 0.0 }
 0x8e3   :  { %v1501_v13 = vmul.f32 %v6044_v42, %v1492_v8  ;;  %v1514_v58 = vmul.f32 %v6049_v41, %v1492_v8  ;;  %3222 = vrot.lane.b32.xlu0 %v6218_v62, %s3832_s3  ;;  %v1529_v17 = vadd.f32 %v1525_v6, %v1503_v5 }
 0x8e4   :  { %3126 = vrot.lane.b32.xlu1 %v6233_v48, %s3832_s3 }
 0x8e5   :  { %v1505_v55 = vadd.f32 %v1501_v13, %v1467_v27  ;;  %v1518_v29 = vadd.f32 %v1514_v58, %v1480_v51  ;;  %v1548_v39 = vpop.permute.xlu1 %1547  ;;  %v6270_v27 = vsel %vm630_vm6, %v3263_v47, %v6884_v15  ;;  %v6283_v47 = vsel %vm379_vm5, %v3048_v60, %v3049_v33 }
 0x8e6   :  { %v6260_v46 = vsel %vm4171_vm8, %v1548_v39, 0.0  ;;  %v1410_v33 = vmul.f32 %v5962_v30, %v6113_v18 }
 0x8e7   :  { %v1563_v1 = vmul.f32 %v6080_v54, %v6260_v46  ;;  %3056 = vrot.lane.b32.xlu0 %v6265_v16, %s3831_s0  ;;  %v1531_v8 = vadd.f32 %v1527_v25, %v1505_v55  ;;  %v1544_v51 = vadd.f32 %v1540_v3, %v1518_v29  ;;  %v1436_v25 = vmul.f32 %v5967_v11, %v5850_v2 }
 0x8e8   :  { %3275 = vrot.lane.b32.xlu1 %v6270_v27, %s3831_s0  ;;  %v6315_v2 = vsel %vm379_vm5, %v3047_v61, %v3048_v60  ;;  %v1651_v61 = vmul.f32 %v6149_v50, %v6023_v28 }
 0x8e9   :  { %v1567_v36 = vadd.f32 %v1563_v1, %v1529_v17  ;;  %v1552_v13 = vpop.permute.xlu1 %1551  ;;  %v1474_v1 = vmul.f32 %v5997_v0, %v6153_v35  ;;  %v1440_v35 = vadd.f32 %v1436_v25, %v1410_v33 }
 0x8ea   :  { %v1556_v15 = vsel %vm4171_vm8, %v1552_v13, 0.0  ;;  %v1636_v13 = vmul.f32 %v6132_v40, %v5869_v4 }
 0x8eb   :  { %v1565_v5 = vmul.f32 %v6080_v54, %v1556_v15  ;;  %3060 = vrot.lane.b32.xlu0 %v6283_v47, %s3831_s0  ;;  %v1578_v29 = vmul.f32 %v6109_v32, %v1556_v15  ;;  %v3261_v15 = vrot.slane %v6244_v23, 1  ;;  %v1478_v60 = vadd.f32 %v1474_v1, %v1440_v35 }
 0x8ec   :  { %3160 = vrot.lane.b32.xlu1 %v6244_v23, %s3831_s0 }
 0x8ed   :  { %v1569_v58 = vadd.f32 %v1565_v5, %v1531_v8  ;;  %v1595_v6 = vpop.permute.xlu1 %1594  ;;  %v1582_v18 = vadd.f32 %v1578_v29, %v1544_v51  ;;  %v3260_v51 = vrot.slane %v6218_v62, 1  ;;  %v1638_v29 = vmul.f32 %v6132_v40, %v6023_v28 }
 0x8ee   :  { %v1601_v55 = vsel %vm4142_vm7, %v1595_v6, 0.0 }
 0x8ef   :  { %v1610_v39 = vmul.f32 %v6098_v22, %v1601_v55  ;;  %3120 = vrot.lane.b32.xlu0 %v6265_v16, %s3832_s3  ;;  %v6334_v25 = vsel %vm630_vm6, %v3260_v51, %v3261_v15 }
 0x8f0   :  { %3224 = vrot.lane.b32.xlu1 %v6244_v23, %s3832_s3 }
 0x8f1   :  { %v1614_v3 = vadd.f32 %v1610_v39, %v1567_v36  ;;  %v1599_v17 = vpop.permute.xlu1 %1598  ;;  %v1512_v36 = vmul.f32 %v6049_v41, %v6222_v20  ;;  %v1575_v39 = vmul.f32 %v6109_v32, %v6088_v44  ;;  %v1622_v20 = vmul.f32 %v6121_v53, %v6102_v31 }
 0x8f2   :  { %v1603_v8 = vsel %vm4142_vm7, %v1599_v17, 0.0 }
 0x8f3   :  { %v1612_v5 = vmul.f32 %v6098_v22, %v1603_v8  ;;  %v1625_v6 = vmul.f32 %v6121_v53, %v1603_v8  ;;  %3124 = vrot.lane.b32.xlu0 %v6283_v47, %s3832_s3  ;;  %v1640_v45 = vadd.f32 %v1636_v13, %v1614_v3  ;;  %v1516_v28 = vadd.f32 %v1512_v36, %v1478_v60  ;;  %v6347_v3 = vld [vmem:[%s6740_s7 + $0x11] ss:$0 sm:$0xff]  ;;  %s3532_s7 = sld [smem:[#allocation6 + $0x1]] }
 0x8f4   :  { %3058 = vrot.lane.b32.xlu1 %v6315_v2, %s3831_s0  ;;  %v1579_v31 = vadd.f32 %v1575_v39, %v6075_v49  ;;  %v1538_v13 = vmul.f32 %v6063_v12, %v5833_v10  ;;  %v1623_v10 = vmul.f32 %v6121_v53, %v1601_v55 }
 0x8f5   :  { %v1616_v17 = vadd.f32 %v1612_v5, %v1569_v58  ;;  %v1629_v8 = vadd.f32 %v1625_v6, %v1582_v18  ;;  %v1659_v26 = vpop.permute.xlu1 %1658  ;;  %v1576_v5 = vmul.f32 %v6109_v32, %v6260_v46  ;;  %v1648_v46 = vmul.f32 %v6149_v50, %v5899_v56 }
 0x8f6   :  { %v1665_v33 = vsel %vm4171_vm8, %v1659_v26, 0.0  ;;  %v1626_v35 = vadd.f32 %v1622_v20, %v1579_v31  ;;  %v1542_v51 = vadd.f32 %v1538_v13, %v1516_v28  ;;  %v1649_v56 = vmul.f32 %v6149_v50, %v5869_v4 }
 0x8f7   :  { %v1674_v44 = vmul.f32 %v6142_v34, %v1665_v33  ;;  %3269 = vrot.lane.b32.xlu0 %v6334_v25, %s3831_s0  ;;  %v1642_v58 = vadd.f32 %v1638_v29, %v1616_v17  ;;  %v1655_v18 = vadd.f32 %v1651_v61, %v1629_v8  ;;  %v1686_v29 = vmul.f32 %v6347_v3, %v6157_v43 }
 0x8f8   :  { %3122 = vrot.lane.b32.xlu1 %v6315_v2, %s3832_s3  ;;  %v1580_v17 = vadd.f32 %v1576_v5, %v1542_v51  ;;  %v1652_v8 = vadd.f32 %v1648_v46, %v1626_v35  ;;  %v1687_v43 = vmul.f32 %v6347_v3, %v1665_v33  ;;  %v6891_v5 = vld [vmem:[#allocation22_spill] sm:$0xff]  ;;  %v3115_v51 = vmul.f32 %v5967_v11, %v6233_v48 }
 0x8f9   :  { %v6342_v1 = vadd.f32 %v1674_v44, %v1640_v45  ;;  %v1663_v26 = vpop.permute.xlu1 %1662  ;;  %v6886_v45 = vrot.slane %v6031_v19, 1 }
 0x8fa   :  { %v1667_v6 = vsel %vm4171_vm8, %v1663_v26, 0.0  ;;  %v1627_v52 = vadd.f32 %v1623_v10, %v1580_v17  ;;  %v6377_v55 = vadd.f32 %v1686_v29, %v1652_v8  ;;  %v6422_v17 = vmul.f32 %v6058_v63, %v6031_v19 }
 0x8fb   :  { %v1676_v49 = vmul.f32 %v6142_v34, %v1667_v6  ;;  %3333 = vrot.lane.b32.xlu0 %v6334_v25, %s3832_s3  ;;  %v6362_v36 = vsel %vm630_vm6, %v3261_v15, %v6886_v45  ;;  %v1688_v15 = vmul.f32 %v6347_v3, %v6177_v57  ;;  %v1689_v44 = vmul.f32 %v6347_v3, %v1667_v6  ;;  %v3163_v57 = vpop.permute.xlu0 %3162 }
 0x8fc   :  { %3271 = vrot.lane.b32.xlu1 %v6362_v36, %s3831_s0  ;;  %v1653_v61 = vadd.f32 %v1649_v56, %v1627_v52 }
 0x8fd   :  { %v6371_v39 = vadd.f32 %v1676_v49, %v1642_v58  ;;  %v6389_v20 = vadd.f32 %v1688_v15, %v6169_v21  ;;  %v6398_v4 = vadd.f32 %v1689_v44, %v1655_v18  ;;  %v6892_v49 = vld [vmem:[#allocation11_spill] sm:$0xff]  ;;  %v6434_v44 = vmul.f32 %v6063_v12, %v6031_v19 }
 0x8fe   :  { %v6391_v60 = vadd.f32 %v1687_v43, %v1653_v61  ;;  %v3102_v45 = vmul.f32 %v6892_v49, %v6233_v48  ;;  %v6428_v48 = vmul.f32 %v6892_v49, %v6265_v16  ;;  %v3112_v43 = vmul.f32 %v5967_v11, %v6265_v16 }
 0x8ff   :  { %6887 = vst [vmem:[#allocation15_spill] sm:$0xff] %v6371_v39  ;;  %3337 = vrot.lane.b32.xlu0 %v6204_v24, %s3832_s3  ;;  %6888 = vst [vmem:[#allocation18_spill] sm:$0xff] %v6389_v20  ;;  %v6402_v33 = vpop.permute.xlu0 %3226  ;;  %v3204_v16 = vmul.f32 %v6058_v63, %v6193_v59  ;;  %v3217_v19 = vmul.f32 %v6063_v12, %v6193_v59  ;;  %v6464_v59 = vmul.f32 %v6063_v12, %v6244_v23 }
 0x900   :  { %3335 = vrot.lane.b32.xlu1 %v6362_v36, %s3832_s3  ;;  %6889 = vst [vmem:[#allocation10_spill] sm:$0xff] %v6391_v60  ;;  %6890 = vst [vmem:[#allocation14_spill] sm:$0xff] %v6398_v4 }
 0x903   :  { %1718 = vrot.lane.b32.xlu0 %v6377_v55, %s3829_s28 }
 0x904   :  { %3339 = vrot.lane.b32.xlu1 %v6270_v27, %s3832_s3 }
 0x907   :  { %1722 = vrot.lane.b32.xlu0 %v6389_v20, %s3829_s28 }
 0x908   :  { %1720 = vrot.lane.b32.xlu1 %v6391_v60, %s3829_s28 }
 0x90c   :  { %1724 = vrot.lane.b32.xlu1 %v6398_v4, %s3829_s28 }
 0x94a   :  { %v3165_v21 = vpop.permute.xlu1 %3164 }
 0x94b   :  { %v3169_v46 = vsel %vm4142_vm7, %v3165_v21, 0.0  ;;  %v6438_v21 = vmul.f32 %v6063_v12, %v6218_v62  ;;  %v3101_v12 = vmul.f32 %v6892_v49, %v6283_v47 }
 0x94d   :  { %v6404_v58 = vpop.permute.xlu0 %3273 }
 0x94e   :  { %v3229_v28 = vpop.permute.xlu1 %3228 }
 0x951   :  { %v3159_v31 = vpop.permute.xlu0 %3158 }
 0x952   :  { %v3063_v26 = vpop.permute.xlu1 %3062 }
 0x953   :  { %v3067_v13 = vsel %vm4142_vm7, %v3063_v26, 0.0  ;;  %v3178_v26 = vmul.f32 %v6044_v42, %v3169_v46 }
 0x954   :  { %v3076_v6 = vmul.f32 %v6891_v5, %v3067_v13  ;;  %v3089_v18 = vmul.f32 %v5962_v30, %v3067_v13  ;;  %v3191_v13 = vmul.f32 %v6049_v41, %v3169_v46 }
 0x955   :  { %v6410_v35 = vpop.permute.xlu0 %3222 }
 0x956   :  { %v3127_v10 = vpop.permute.xlu1 %3126  ;;  %v3106_v8 = vadd.f32 %v3102_v45, %v3076_v6  ;;  %v3119_v52 = vadd.f32 %v3115_v51, %v3089_v18  ;;  %v3233_v51 = vsel %vm4171_vm8, %v3229_v28, 0.0 }
 0x957   :  { %v3131_v29 = vsel %vm4171_vm8, %v3127_v10, 0.0  ;;  %v6450_v10 = vmul.f32 %v6132_v40, %v6204_v24 }
 0x958   :  { %v3140_v15 = vmul.f32 %v5992_v7, %v3131_v29  ;;  %v3153_v56 = vmul.f32 %v5997_v0, %v3131_v29 }
 0x959   :  { %v3057_v61 = vpop.permute.xlu0 %3056 }
 0x95a   :  { %v3144_v6 = vadd.f32 %v3140_v15, %v3106_v8  ;;  %v3157_v18 = vadd.f32 %v3153_v56, %v3119_v52  ;;  %v3276_v45 = vpop.permute.xlu1 %3275  ;;  %v6454_v46 = vsel %vm4142_vm7, %v3057_v61, 0.0  ;;  %v6458_v8 = vmul.f32 %v6058_v63, %v6244_v23 }
 0x95b   :  { %v3280_v28 = vsel %vm4142_vm7, %v3276_v45, 0.0  ;;  %v6468_v15 = vmul.f32 %v6149_v50, %v6204_v24  ;;  %v3315_v56 = vmul.f32 %v6132_v40, %v6270_v27  ;;  %v3242_v61 = vmul.f32 %v6080_v54, %v3233_v51 }
 0x95c   :  { %v3182_v29 = vadd.f32 %v3178_v26, %v3144_v6  ;;  %v3195_v4 = vadd.f32 %v3191_v13, %v3157_v18  ;;  %v3255_v26 = vmul.f32 %v6109_v32, %v3233_v51  ;;  %v3086_v45 = vmul.f32 %v5962_v30, %v6454_v46 }
 0x95d   :  { %v3061_v52 = vpop.permute.xlu0 %3060  ;;  %v3328_v23 = vmul.f32 %v6149_v50, %v6270_v27  ;;  %v3289_v20 = vmul.f32 %v6098_v22, %v3280_v28  ;;  %v3302_v51 = vmul.f32 %v6121_v53, %v3280_v28  ;;  %v3100_v27 = vmul.f32 %v6892_v49, %v6315_v2 }
 0x95e   :  { %v3208_v13 = vadd.f32 %v3204_v16, %v3182_v29  ;;  %v3221_v6 = vadd.f32 %v3217_v19, %v3195_v4  ;;  %v3161_v18 = vpop.permute.xlu1 %3160  ;;  %v3066_v24 = vsel %vm4142_vm7, %v3061_v52, 0.0  ;;  %v3168_v4 = vsel %vm4142_vm7, %v3163_v57, 0.0 }
 0x95f   :  { %v6488_v16 = vsel %vm4142_vm7, %v3159_v31, 0.0  ;;  %v3114_v19 = vmul.f32 %v5967_v11, %v6283_v47  ;;  %v3116_v57 = vadd.f32 %v3112_v43, %v3086_v45  ;;  %v3113_v47 = vmul.f32 %v5967_v11, %v6315_v2 }
 0x960   :  { %v3246_v60 = vadd.f32 %v3242_v61, %v3208_v13  ;;  %v3259_v39 = vadd.f32 %v3255_v26, %v3221_v6  ;;  %v3075_v26 = vmul.f32 %v6891_v5, %v3066_v24  ;;  %v3088_v6 = vmul.f32 %v5962_v30, %v3066_v24 }
 0x961   :  { %v3121_v29 = vpop.permute.xlu0 %3120  ;;  %v3177_v34 = vmul.f32 %v6044_v42, %v3168_v4  ;;  %v3232_v49 = vsel %vm4171_vm8, %v6402_v33, 0.0  ;;  %v3279_v43 = vsel %vm4142_vm7, %v6404_v58, 0.0  ;;  %v3188_v11 = vmul.f32 %v6049_v41, %v6488_v16 }
 0x962   :  { %v3293_v52 = vadd.f32 %v3289_v20, %v3246_v60  ;;  %v3306_v61 = vadd.f32 %v3302_v51, %v3259_v39  ;;  %v3128_v28 = vsel %vm4171_vm8, %v3121_v29, 0.0  ;;  %v3225_v13 = vpop.permute.xlu1 %3224  ;;  %v3325_v20 = vmul.f32 %v6149_v50, %v6334_v25 }
 0x963   :  { %v3150_v31 = vmul.f32 %v5997_v0, %v3128_v28  ;;  %v3190_v24 = vmul.f32 %v6049_v41, %v3168_v4  ;;  %v3118_v29 = vadd.f32 %v3114_v19, %v3088_v6  ;;  %v3254_v4 = vmul.f32 %v6109_v32, %v3232_v49 }
 0x964   :  { %v6504_v39 = vadd.f32 %v3315_v56, %v3293_v52  ;;  %v6506_v60 = vadd.f32 %v3328_v23, %v3306_v61  ;;  %v6520_v56 = vsel %vm4171_vm8, %v6410_v35, 0.0  ;;  %v3105_v23 = vadd.f32 %v3101_v12, %v3075_v26 }
 0x965   :  { %v3154_v2 = vadd.f32 %v3150_v31, %v3116_v57  ;;  %v3125_v45 = vpop.permute.xlu0 %3124  ;;  %v3241_v57 = vmul.f32 %v6080_v54, %v3232_v49  ;;  %v3288_v31 = vmul.f32 %v6098_v22, %v3279_v43  ;;  %v3167_v12 = vsel %vm4142_vm7, %v3161_v18, 0.0 }
 0x966   :  { %6893 = vst [vmem:[#allocation17_spill] sm:$0xff] %v6504_v39  ;;  %v3130_v33 = vsel %vm4171_vm8, %v3125_v45, 0.0  ;;  %v3059_v51 = vpop.permute.xlu1 %3058  ;;  %v3301_v39 = vmul.f32 %v6121_v53, %v3279_v43  ;;  %v3073_v18 = vmul.f32 %v6891_v5, %v6454_v46 }
 0x967   :  { %v3192_v52 = vadd.f32 %v3188_v11, %v3154_v2  ;;  %v3139_v58 = vmul.f32 %v5992_v7, %v3130_v33  ;;  %v3152_v61 = vmul.f32 %v5997_v0, %v3130_v33  ;;  %v3065_v35 = vsel %vm4142_vm7, %v3059_v51, 0.0 }
 0x968   :  { %v3074_v19 = vmul.f32 %v6891_v5, %v3065_v35  ;;  %v3252_v11 = vmul.f32 %v6109_v32, %v6520_v56  ;;  %v3087_v2 = vmul.f32 %v5962_v30, %v3065_v35 }
 0x969   :  { %v3143_v26 = vadd.f32 %v3139_v58, %v3105_v23  ;;  %v3156_v45 = vadd.f32 %v3152_v61, %v3118_v29  ;;  %v3270_v6 = vpop.permute.xlu0 %3269  ;;  %v3218_v49 = vadd.f32 %v6438_v21, %v3192_v52  ;;  %v3176_v58 = vmul.f32 %v6044_v42, %v3167_v12 }
 0x96a   :  { %v6540_v33 = vsel %vm4142_vm7, %v3270_v6, 0.0  ;;  %v3123_v51 = vpop.permute.xlu1 %3122  ;;  %v3231_v61 = vsel %vm4171_vm8, %v3225_v13, 0.0  ;;  %v3104_v6 = vadd.f32 %v3100_v27, %v3074_v19  ;;  %v3189_v27 = vmul.f32 %v6049_v41, %v3167_v12 }
 0x96b   :  { %v3181_v23 = vadd.f32 %v3177_v34, %v3143_v26  ;;  %v3194_v29 = vadd.f32 %v3190_v24, %v3156_v45  ;;  %v3256_v30 = vadd.f32 %v3252_v11, %v3218_v49  ;;  %v3299_v21 = vmul.f32 %v6121_v53, %v6540_v33 }
 0x96c   :  { %v3129_v43 = vsel %vm4171_vm8, %v3123_v51, 0.0  ;;  %v3117_v34 = vadd.f32 %v3113_v47, %v3087_v2  ;;  %v3137_v45 = vmul.f32 %v5992_v7, %v3128_v28  ;;  %v3103_v47 = vadd.f32 %v6428_v48, %v3073_v18 }
 0x96d   :  { %v3207_v52 = vadd.f32 %v6422_v17, %v3181_v23  ;;  %v3220_v35 = vadd.f32 %v6434_v44, %v3194_v29  ;;  %v3334_v5 = vpop.permute.xlu0 %3333  ;;  %v3303_v46 = vadd.f32 %v3299_v21, %v3256_v30  ;;  %v3138_v24 = vmul.f32 %v5992_v7, %v3129_v43 }
 0x96e   :  { %v3151_v26 = vmul.f32 %v5997_v0, %v3129_v43  ;;  %v3272_v13 = vpop.permute.xlu1 %3271  ;;  %v6559_v11 = vsel %vm4171_vm8, %v3334_v5, 0.0  ;;  %v3240_v2 = vmul.f32 %v6080_v54, %v3231_v61  ;;  %v3253_v0 = vmul.f32 %v6109_v32, %v3231_v61 }
 0x96f   :  { %v3245_v17 = vadd.f32 %v3241_v57, %v3207_v52  ;;  %v3258_v44 = vadd.f32 %v3254_v4, %v3220_v35  ;;  %v3142_v19 = vadd.f32 %v3138_v24, %v3104_v6  ;;  %v3329_v51 = vadd.f32 %v3325_v20, %v3303_v46 }
 0x970   :  { %v3155_v49 = vadd.f32 %v3151_v26, %v3117_v34  ;;  %v3363_v7 = vmul.f32 %v6347_v3, %v6559_v11  ;;  %v3141_v21 = vadd.f32 %v3137_v45, %v3103_v47  ;;  %v3278_v20 = vsel %vm4142_vm7, %v3272_v13, 0.0 }
 0x971   :  { %v3338_v28 = vpop.permute.xlu0 %3337  ;;  %v3180_v23 = vadd.f32 %v3176_v58, %v3142_v19  ;;  %v3292_v30 = vadd.f32 %v3288_v31, %v3245_v17  ;;  %v3305_v57 = vadd.f32 %v3301_v39, %v3258_v44  ;;  %v3175_v39 = vmul.f32 %v6044_v42, %v6488_v16  ;;  %v6895_v44 = vld [vmem:[#allocation18_spill] sm:$0xff] }
 0x972   :  { %v3193_v29 = vadd.f32 %v3189_v27, %v3155_v49  ;;  %v3336_v4 = vpop.permute.xlu1 %3335  ;;  %v6567_v41 = vadd.f32 %v3363_v7, %v3329_v51  ;;  %v3343_v48 = vsel %vm4171_vm8, %v3338_v28, 0.0  ;;  %v3287_v52 = vmul.f32 %v6098_v22, %v3278_v20  ;;  %v6897_v51 = vld [vmem:[#allocation17_spill] sm:$0xff]  ;;  %v6899_v28 = vld [vmem:[#allocation14_spill] sm:$0xff] }
 0x973   :  { %v3206_v32 = vadd.f32 %v6458_v8, %v3180_v23  ;;  %v3318_v18 = vadd.f32 %v6450_v10, %v3292_v30  ;;  %v3331_v58 = vadd.f32 %v6468_v15, %v3305_v57  ;;  %v3365_v31 = vmul.f32 %v6347_v3, %v3343_v48 }
 0x974   :  { %v3219_v12 = vadd.f32 %v6464_v59, %v3193_v29  ;;  %3395 = vrot.lane.b32.xlu0 %v6567_v41, %s3829_s28  ;;  %v3300_v8 = vmul.f32 %v6121_v53, %v3278_v20  ;;  %v3179_v59 = vadd.f32 %v3175_v39, %v3141_v21  ;;  %v3342_v10 = vsel %vm4171_vm8, %v3336_v4, 0.0 }
 0x975   :  { %v3244_v37 = vadd.f32 %v3240_v2, %v3206_v32  ;;  %v3369_v6 = vadd.f32 %v3365_v31, %v3331_v58  ;;  %v3313_v42 = vmul.f32 %v6132_v40, %v6362_v36  ;;  %v3326_v16 = vmul.f32 %v6149_v50, %v6362_v36  ;;  %v6898_v2 = vld [vmem:[#allocation10_spill] sm:$0xff] }
 0x976   :  { %v3257_v61 = vadd.f32 %v3253_v0, %v3219_v12  ;;  %v3340_v35 = vpop.permute.xlu1 %3339  ;;  %v3201_v5 = vmul.f32 %v6058_v63, %v6218_v62  ;;  %v3364_v24 = vmul.f32 %v6347_v3, %v3342_v10  ;;  %v3239_v17 = vmul.f32 %v6080_v54, %v6520_v56  ;;  %v1719_v63 = vpop.permute.xlu0 %1718 }
 0x977   :  { %v3291_v15 = vadd.f32 %v3287_v52, %v3244_v37  ;;  %v3344_v53 = vsel %vm4171_vm8, %v3340_v35, 0.0  ;;  %v3286_v50 = vmul.f32 %v6098_v22, %v6540_v33  ;;  %v1726_v54 = vadd.f32 %v1719_v63, %v6377_v55  ;;  %v6896_v55 = vld [vmem:[#allocation15_spill] sm:$0xff] }
 0x978   :  { %v3304_v43 = vadd.f32 %v3300_v8, %v3257_v61  ;;  %3399 = vrot.lane.b32.xlu0 %v3369_v6, %s3829_s28  ;;  %v3205_v26 = vadd.f32 %v3201_v5, %v3179_v59  ;;  %v3366_v45 = vmul.f32 %v6347_v3, %v3344_v53  ;;  %v3312_v56 = vmul.f32 %v6132_v40, %v6334_v25 }
 0x979   :  { %v3317_v34 = vadd.f32 %v3313_v42, %v3291_v15 }
 0x97a   :  { %v3330_v46 = vadd.f32 %v3326_v16, %v3304_v43  ;;  %v3243_v9 = vadd.f32 %v3239_v17, %v3205_v26  ;;  %v3370_v62 = vadd.f32 %v3366_v45, %v6506_v60  ;;  %v1723_v36 = vpop.permute.xlu0 %1722  ;;  %v6894_v60 = vld [vmem:[#allocation21_spill] sm:$0xff]  ;;  %v1721_v25 = vpop.permute.xlu1 %1720 }
 0x97b   :  { %v3350_v33 = vmul.f32 %v6894_v60, %v6559_v11  ;;  %v1728_v27 = vadd.f32 %v1723_v36, %v6895_v44  ;;  %v3353_v19 = vmul.f32 %v6894_v60, %v3344_v53  ;;  %v3352_v40 = vmul.f32 %v6894_v60, %v3343_v48 }
 0x97c   :  { %v3368_v13 = vadd.f32 %v3364_v24, %v3330_v46  ;;  %1694 = vrot.lane.b32.xlu0 %v6171_v38, %s3829_s28  ;;  %v3290_v3 = vadd.f32 %v3286_v50, %v3243_v9  ;;  %v1727_v0 = vadd.f32 %v1721_v25, %v6898_v2  ;;  %v3351_v29 = vmul.f32 %v6894_v60, %v3342_v10 }
 0x97d   :  { %v3357_v47 = vadd.f32 %v3353_v19, %v6897_v51  ;;  %v3356_v11 = vadd.f32 %v3352_v40, %v3318_v18 }
 0x97e   :  { %3397 = vrot.lane.b32.xlu1 %v3368_v13, %s3829_s28  ;;  %v3316_v22 = vadd.f32 %v3312_v56, %v3290_v3  ;;  %v1725_v7 = vpop.permute.xlu1 %1724  ;;  %v3355_v30 = vadd.f32 %v3351_v29, %v3317_v34 }
 0x97f   :  { %v1729_v23 = vadd.f32 %v1725_v7, %v6899_v28 }
 0x980   :  { %1698 = vrot.lane.b32.xlu0 %v6185_v14, %s3829_s28  ;;  %v3354_v49 = vadd.f32 %v3350_v33, %v3316_v22 }
 0x982   :  { %3401 = vrot.lane.b32.xlu1 %v3370_v62, %s3829_s28 }
 0x984   :  { %1730 = vrot.lane.b32.xlu0 %v1726_v54, %s3830_s29 }
 0x986   :  { %1696 = vrot.lane.b32.xlu1 %v6342_v1, %s3829_s28 }
 0x988   :  { %1734 = vrot.lane.b32.xlu0 %v1728_v27, %s3830_s29 }
 0x98a   :  { %1700 = vrot.lane.b32.xlu1 %v6896_v55, %s3829_s28 }
 0x98c   :  { %3371 = vrot.lane.b32.xlu0 %v3354_v49, %s3829_s28 }
 0x98e   :  { %3377 = vrot.lane.b32.xlu1 %v3357_v47, %s3829_s28 }
 0x990   :  { %3375 = vrot.lane.b32.xlu0 %v3356_v11, %s3829_s28 }
 0x992   :  { %1732 = vrot.lane.b32.xlu1 %v1727_v0, %s3830_s29 }
 0x996   :  { %1736 = vrot.lane.b32.xlu1 %v1729_v23, %s3830_s29 }
 0x99a   :  { %3373 = vrot.lane.b32.xlu1 %v3355_v30, %s3829_s28  ;;  %s1742_s28 = sld [smem:[#allocation6]] }
 0x9a0   :  { %v1743_v25 = vstv %s1742_s28 }
 0x9e6   :  { %v3396_v57 = vpop.permute.xlu0 %3395 }
 0x9e7   :  { %v3403_v4 = vadd.f32 %v3396_v57, %v6567_v41 }
 0x9e9   :  { %3407 = vrot.lane.b32.xlu0 %v3403_v4, %s3830_s29 }
 0x9ea   :  { %v3400_v21 = vpop.permute.xlu0 %3399 }
 0x9eb   :  { %v3405_v20 = vadd.f32 %v3400_v21, %v3369_v6 }
 0x9ed   :  { %3411 = vrot.lane.b32.xlu0 %v3405_v20, %s3830_s29 }
 0x9ee   :  { %v1695_v48 = vpop.permute.xlu0 %1694 }
 0x9ef   :  { %v6636_v32 = vadd.f32 %v1695_v48, %v6171_v38  ;;  %v1753_v38 = vstv %s3532_s7 }
 0x9f0   :  { %v3398_v12 = vpop.permute.xlu1 %3397 }
 0x9f1   :  { %v3404_v18 = vadd.f32 %v3398_v12, %v3368_v13  ;;  %1706 = vrot.lane.b32.xlu0 %v6636_v32, %s3830_s29 }
 0x9f2   :  { %v1699_v58 = vpop.permute.xlu0 %1698 }
 0x9f3   :  { %3409 = vrot.lane.b32.xlu1 %v3404_v18, %s3830_s29  ;;  %v6642_v41 = vadd.f32 %v1699_v58, %v6185_v14 }
 0x9f4   :  { %v3402_v39 = vpop.permute.xlu1 %3401 }
 0x9f5   :  { %v3406_v31 = vadd.f32 %v3402_v39, %v3370_v62  ;;  %1710 = vrot.lane.b32.xlu0 %v6642_v41, %s3830_s29 }
 0x9f6   :  { %v1731_v37 = vpop.permute.xlu0 %1730 }
 0x9f7   :  { %3413 = vrot.lane.b32.xlu1 %v3406_v31, %s3830_s29  ;;  %v1738_v61 = vadd.f32 %v1731_v37, %v1726_v54 }
 0x9f8   :  { %v1697_v52 = vpop.permute.xlu1 %1696 }
 0x9f9   :  { %v6648_v8 = vadd.f32 %v1697_v52, %v6342_v1  ;;  %v1754_v35 = vadd.f32 %v1753_v38, %v1738_v61 }
 0x9fa   :  { %v1735_v14 = vpop.permute.xlu0 %1734 }
 0x9fb   :  { %1708 = vrot.lane.b32.xlu1 %v6648_v8, %s3830_s29  ;;  %v1758_v59 = vmax.f32 %v1754_v35, 0.0  ;;  %v1740_v6 = vadd.f32 %v1735_v14, %v1728_v27 }
 0x9fc   :  { %v1701_v10 = vpop.permute.xlu1 %1700 }
 0x9fd   :  { %v6653_v15 = vadd.f32 %v1701_v10, %v6896_v55  ;;  %v1756_v43 = vadd.f32 %v1753_v38, %v1740_v6  ;;  %1762 = vrot.lane.b32.xlu0 %v1758_v59, %s3826_s27 }
 0x9fe   :  { %v3372_v42 = vpop.permute.xlu0 %3371 }
 0x9ff   :  { %1712 = vrot.lane.b32.xlu1 %v6653_v15, %s3830_s29  ;;  %v1760_v1 = vmax.f32 %v1756_v43, 0.0  ;;  %v6660_v53 = vadd.f32 %v3372_v42, %v3354_v49 }
 0xa00   :  { %v3378_v16 = vpop.permute.xlu1 %3377 }
 0xa01   :  { %v3382_v5 = vadd.f32 %v3378_v16, %v3357_v47  ;;  %1766 = vrot.lane.b32.xlu0 %v1760_v1, %s3826_s27 }
 0xa02   :  { %v3376_v46 = vpop.permute.xlu0 %3375 }
 0xa03   :  { %3389 = vrot.lane.b32.xlu1 %v3382_v5, %s3830_s29  ;;  %v6664_v13 = vadd.f32 %v3376_v46, %v3356_v11 }
 0xa04   :  { %v1733_v34 = vpop.permute.xlu1 %1732 }
 0xa05   :  { %v1739_v24 = vadd.f32 %v1733_v34, %v1727_v0  ;;  %3383 = vrot.lane.b32.xlu0 %v6660_v53, %s3830_s29 }
 0xa07   :  { %v1755_v26 = vadd.f32 %v1753_v38, %v1739_v24 }
 0xa08   :  { %v1737_v45 = vpop.permute.xlu1 %1736 }
 0xa09   :  { %v1759_v17 = vmax.f32 %v1755_v26, 0.0  ;;  %v1741_v63 = vadd.f32 %v1737_v45, %v1729_v23  ;;  %3387 = vrot.lane.b32.xlu0 %v6664_v13, %s3830_s29 }
 0xa0b   :  { %v1757_v9 = vadd.f32 %v1753_v38, %v1741_v63  ;;  %1764 = vrot.lane.b32.xlu1 %v1759_v17, %s3826_s27 }
 0xa0c   :  { %v3374_v62 = vpop.permute.xlu1 %3373 }
 0xa0d   :  { %v1761_v50 = vmax.f32 %v1757_v9, 0.0  ;;  %v6670_v3 = vadd.f32 %v3374_v62, %v3355_v30 }
 0xa0f   :  { %1768 = vrot.lane.b32.xlu1 %v1761_v50, %s3826_s27 }
 0xa13   :  { %3385 = vrot.lane.b32.xlu1 %v6670_v3, %s3830_s29 }
 0xa5b   :  { %v3408_v54 = vpop.permute.xlu0 %3407 }
 0xa5c   :  { %v3415_v36 = vadd.f32 %v3408_v54, %v3403_v4 }
 0xa5e   :  { %v3431_v56 = vadd.f32 %v3415_v36, %v1753_v38 }
 0xa5f   :  { %v3412_v22 = vpop.permute.xlu0 %3411 }
 0xa60   :  { %v3435_v60 = vmax.f32 %v3431_v56, 0.0  ;;  %v3417_v33 = vadd.f32 %v3412_v22, %v3405_v20 }
 0xa62   :  { %v3433_v44 = vadd.f32 %v3417_v33, %v1753_v38  ;;  %3439 = vrot.lane.b32.xlu0 %v3435_v60, %s3826_s27 }
 0xa63   :  { %v1707_v27 = vpop.permute.xlu0 %1706 }
 0xa64   :  { %v3437_v19 = vmax.f32 %v3433_v44, 0.0  ;;  %v1714_v40 = vadd.f32 %v1707_v27, %v6636_v32 }
 0xa65   :  { %v3410_v55 = vpop.permute.xlu1 %3409 }
 0xa66   :  { %v3416_v49 = vadd.f32 %v3410_v55, %v3404_v18  ;;  %3443 = vrot.lane.b32.xlu0 %v3437_v19, %s3826_s27  ;;  %v1744_v7 = vadd.f32 %v1743_v25, %v1714_v40 }
 0xa67   :  { %v1711_v47 = vpop.permute.xlu0 %1710 }
 0xa68   :  { %v3432_v51 = vadd.f32 %v3416_v49, %v1753_v38  ;;  %v1716_v28 = vadd.f32 %v1711_v47, %v6642_v41  ;;  %v1748_v57 = vmax.f32 %v1744_v7, 0.0 }
 0xa69   :  { %v3414_v11 = vpop.permute.xlu1 %3413 }
 0xa6a   :  { %v3436_v2 = vmax.f32 %v3432_v51, 0.0  ;;  %v3418_v0 = vadd.f32 %v3414_v11, %v3406_v31  ;;  %v1746_v4 = vadd.f32 %v1743_v25, %v1716_v28 }
 0xa6c   :  { %v3434_v23 = vadd.f32 %v3418_v0, %v1753_v38  ;;  %3441 = vrot.lane.b32.xlu1 %v3436_v2, %s3826_s27  ;;  %v1750_v12 = vmax.f32 %v1746_v4, 0.0 }
 0xa6d   :  { %v1709_v29 = vpop.permute.xlu1 %1708 }
 0xa6e   :  { %v3438_v30 = vmax.f32 %v3434_v23, 0.0  ;;  %v1715_v18 = vadd.f32 %v1709_v29, %v6648_v8 }
 0xa6f   :  { %v1763_v21 = vpop.permute.xlu0 %1762 }
 0xa70   :  { %3445 = vrot.lane.b32.xlu1 %v3438_v30, %s3826_s27  ;;  %v1770_v48 = vsel %vm840_vm9, %v1748_v57, %v1763_v21  ;;  %v1745_v38 = vadd.f32 %v1743_v25, %v1715_v18 }
 0xa71   :  { %v1713_v32 = vpop.permute.xlu1 %1712  ;;  %1774 = vst.msk [vmem:[%s6744_s11] sm:$0xff] %vm258_vm3, %v1770_v48 }
 0xa72   :  { %v1717_v37 = vadd.f32 %v1713_v32, %v6653_v15  ;;  %v1749_v52 = vmax.f32 %v1745_v38, 0.0 }
 0xa73   :  { %v1767_v58 = vpop.permute.xlu0 %1766 }
 0xa74   :  { %v1772_v41 = vsel %vm840_vm9, %v1750_v12, %v1767_v58  ;;  %v1747_v35 = vadd.f32 %v1743_v25, %v1717_v37 }
 0xa75   :  { %v3390_v39 = vpop.permute.xlu1 %3389  ;;  %1776 = vst.msk [vmem:[%s6744_s11 + $0x10] sm:$0xff] %vm258_vm3, %v1772_v41 }
 0xa76   :  { %v3394_v31 = vadd.f32 %v3390_v39, %v3382_v5  ;;  %v1751_v59 = vmax.f32 %v1747_v35, 0.0 }
 0xa77   :  { %v3384_v15 = vpop.permute.xlu0 %3383 }
 0xa78   :  { %v3424_v61 = vadd.f32 %v3394_v31, %v1743_v25  ;;  %v3391_v43 = vadd.f32 %v3384_v15, %v6660_v53 }
 0xa7a   :  { %v3421_v1 = vadd.f32 %v3391_v43, %v1743_v25 }
 0xa7b   :  { %v3388_v42 = vpop.permute.xlu0 %3387 }
 0xa7c   :  { %v3393_v16 = vadd.f32 %v3388_v42, %v6664_v13  ;;  %v3425_v34 = vmax.f32 %v3421_v1, 0.0 }
 0xa7d   :  { %v1765_v14 = vpop.permute.xlu1 %1764 }
 0xa7e   :  { %v1771_v8 = vsel %vm840_vm9, %v1749_v52, %v1765_v14  ;;  %v3423_v46 = vadd.f32 %v3393_v16, %v1743_v25 }
 0xa7f   :  { %1775 = vst.msk [vmem:[%s6744_s11 + $0x8] sm:$0xff] %vm258_vm3, %v1771_v8 }
 0xa80   :  { %v3427_v17 = vmax.f32 %v3423_v46, 0.0 }
 0xa81   :  { %v1769_v6 = vpop.permute.xlu1 %1768 }
 0xa82   :  { %v1773_v10 = vsel %vm840_vm9, %v1751_v59, %v1769_v6 }
 0xa83   :  { %1777 = vst.msk [vmem:[%s6744_s11 + $0x18] sm:$0xff] %vm258_vm3, %v1773_v10 }
 0xa85   :  { %v3386_v5 = vpop.permute.xlu1 %3385 }
 0xa86   :  { %v3392_v24 = vadd.f32 %v3386_v5, %v6670_v3  ;;  %v3428_v3 = vmax.f32 %v3424_v61, 0.0 }
 0xa88   :  { %v3422_v53 = vadd.f32 %v3392_v24, %v1743_v25 }
 0xa8a   :  { %v3426_v9 = vmax.f32 %v3422_v53, 0.0 }
 0xad4   :  { %v3440_v26 = vpop.permute.xlu0 %3439 }
 0xad5   :  { %v3447_v45 = vsel %vm840_vm9, %v3425_v34, %v3440_v26 }
 0xad6   :  { %3617 = vst.msk [vmem:[%s6744_s11 + $0x20] sm:$0xff] %vm258_vm3, %v3447_v45 }
 0xad8   :  { %v3444_v63 = vpop.permute.xlu0 %3443 }
 0xad9   :  { %v3449_v13 = vsel %vm840_vm9, %v3427_v17, %v3444_v63 }
 0xada   :  { %3619 = vst.msk [vmem:[%s6744_s11 + $0x30] sm:$0xff] %vm258_vm3, %v3449_v13 }
 0xade   :  { %v3442_v50 = vpop.permute.xlu1 %3441 }
 0xadf   :  { %v3448_v62 = vsel %vm840_vm9, %v3426_v9, %v3442_v50 }
 0xae0   :  { %3618 = vst.msk [vmem:[%s6744_s11 + $0x28] sm:$0xff] %vm258_vm3, %v3448_v62 }
 0xae2   :  { %v3446_v54 = vpop.permute.xlu1 %3445 }
 0xae3   :  { %v3450_v36 = vsel %vm840_vm9, %v3428_v3, %v3446_v54 }
 0xae4   :  { %3620 = vst.msk [vmem:[%s6744_s11 + $0x38] sm:$0xff] %vm258_vm3, %v3450_v36 }
 0xae5   :  { %3460 = vsyncpa [#allocation3], 1 }
 0xae6   :  { %3461 = vsyncpa [#allocation5], 1 }

</bundles_post_ra>
